<compile_context>
chip_gen: v7x
topology: tpu7x:2x2x1
jax: 0.10.0
libtpu: 0.0.40
codegen_flags: <defaults>
</compile_context>

<pallas_src>
import functools
import numpy as np
import jax
import jax.numpy as jnp
from jax.experimental import pallas as pl
from jax.experimental.pallas import tpu as pltpu

_LN_EPS = 1e-5      # nn.LayerNorm default
_LANE = 128
_NEG_INF = -1e30


def _round_up(x, m):
    return ((x + m - 1) // m) * m


def speller_kernel(h_ref, hT_ref, ctx0_ref, w_lstm_ref, b_lstm_ref,
                   w_cd_ref, b_cd_ref,
                   y_out_ref, a_out_ref,
                   yfb_ref, ctx_ref, hs_ref, cs_ref, xls_ref, xcd_ref,
                   *, Hy, Hc, Hs, T, sos, s_chunk, unroll):
    B = ctx0_ref.shape[0]
    t_pad = h_ref.shape[1]

    # ---- one-time state init (VMEM scratch persists across grid steps) ----
    @pl.when(pl.program_id(0) == 0)
    def _init():
        lane = jax.lax.broadcasted_iota(jnp.int32, (B, Hy), 1)
        yfb_ref[...] = (lane == sos).astype(jnp.float32)     # <sos> one-hot
        ctx_ref[...] = ctx0_ref[...]                         # h[:, 0, :] (exact f32)
        hs_ref[...] = jnp.zeros_like(hs_ref)                 # hidden = [None]
        cs_ref[...] = jnp.zeros_like(cs_ref)
        xls_ref[...] = jnp.zeros_like(xls_ref)               # zero the K-padding lanes
        xcd_ref[...] = jnp.zeros_like(xcd_ref)

    # Small biases as values; weights stay ref-indexed at the dot sites.
    b_lstm = b_lstm_ref[...]                                 # (1, 4*Hs) f32
    b_cd = b_cd_ref[...]                                     # (1, Hy_pad) f32

    # Additive score mask for zero-padded encoder frames (hoisted, loop-invariant).
    t_ids = jax.lax.broadcasted_iota(jnp.int32, (B, 1, t_pad), 2)
    score_bias = jnp.where(t_ids < T, 0.0, _NEG_INF).astype(jnp.float32)

    def step(i, carry):
        yfb, ctx, hs, cs = carry        # (B,Hy) (B,Hc) (B,Hs) (B,Hs), all f32

        # ---- BatchRNN: LayerNorm (no affine) over cat([yfb, ctx]) via
        #      per-piece partial sums (f32 elementwise; v5e-safe).
        inv_n = 1.0 / float(Hy + Hc)
        mu = (jnp.sum(yfb, -1, keepdims=True)
              + jnp.sum(ctx, -1, keepdims=True)) * inv_n
        dy, dc = yfb - mu, ctx - mu
        var = (jnp.sum(dy * dy, -1, keepdims=True)
               + jnp.sum(dc * dc, -1, keepdims=True)) * inv_n
        inv_std = jax.lax.rsqrt(var + _LN_EPS)

        # ---- Fused single-timestep LSTM: stage LHS = [LN(yfb)|LN(ctx)|h|0-pad]
        #      and hit the K-stacked weight with ONE MXU push.
        xls_ref[:, 0:Hy] = dy * inv_std
        xls_ref[:, Hy:Hy + Hc] = dc * inv_std
        xls_ref[:, Hy + Hc:Hy + Hc + Hs] = hs
        gates = jnp.dot(xls_ref[...].astype(w_lstm_ref.dtype), w_lstm_ref[...],
                        preferred_element_type=jnp.float32) + b_lstm   # (B, 4*Hs)
        # gate columns pre-ordered (i,f,o,g): one sigmoid + one tanh EUP push
        sg = jax.nn.sigmoid(gates[:, 0:3 * Hs])
        g_g = jnp.tanh(gates[:, 3 * Hs:4 * Hs])
        i_g, f_g, o_g = sg[:, 0:Hs], sg[:, Hs:2 * Hs], sg[:, 2 * Hs:3 * Hs]
        c_new = f_g * cs + i_g * g_g
        s_new = o_g * jnp.tanh(c_new)                        # (B, Hs) RNN output

        # ---- Attention (dot score, no projection, 1 head) on the MXU; the
        #      pre-transposed (B,Hc,T) copy avoids any per-step transpose.
        s3 = s_new.astype(hT_ref.dtype)[:, None, :]          # (B,1,Hs); Hs == Hc
        e = jnp.einsum('bqc,bct->bqt', s3, hT_ref[...],
                       preferred_element_type=jnp.float32) + score_bias
        e_max = jnp.max(e, axis=-1, keepdims=True)
        p = jnp.exp(e - e_max)
        a3 = p / jnp.sum(p, axis=-1, keepdims=True)          # exact softmax (parity)
        ctx3 = jnp.einsum('bqt,btc->bqc', a3.astype(h_ref.dtype), h_ref[...],
                          preferred_element_type=jnp.float32)
        ctx_new = ctx3[:, 0, :]                              # (B, Hc)

        # ---- chardist: LayerNorm over cat([s_new, ctx_new]) + fused Linear
        #      (output dim zero-padded to a lane-dense 128 multiple).
        inv_m = 1.0 / float(Hs + Hc)
        mu2 = (jnp.sum(s_new, -1, keepdims=True)
               + jnp.sum(ctx_new, -1, keepdims=True)) * inv_m
        ds, dctx = s_new - mu2, ctx_new - mu2
        var2 = (jnp.sum(ds * ds, -1, keepdims=True)
                + jnp.sum(dctx * dctx, -1, keepdims=True)) * inv_m
        inv_std2 = jax.lax.rsqrt(var2 + _LN_EPS)
        xcd_ref[:, 0:Hs] = ds * inv_std2
        xcd_ref[:, Hs:Hs + Hc] = dctx * inv_std2
        y_hat = jnp.dot(xcd_ref[...].astype(w_cd_ref.dtype), w_cd_ref[...],
                        preferred_element_type=jnp.float32) + b_cd     # (B, Hy_pad)

        # Lane-dense stores into this chunk's output blocks.
        y_out_ref[i] = y_hat
        a_out_ref[i] = a3[:, 0, :]

        # Greedy feedback (y is None): next input = cat([y_hat, ctx_new]).
        return (y_hat[:, 0:Hy], ctx_new, s_new, c_new)

    carry = (yfb_ref[...], ctx_ref[...], hs_ref[...], cs_ref[...])
    carry = jax.lax.fori_loop(0, s_chunk, step, carry, unroll=unroll)
    yfb, ctx, hs, cs = carry
    yfb_ref[...] = yfb
    ctx_ref[...] = ctx
    hs_ref[...] = hs
    cs_ref[...] = cs


def prepare_params(raw, *, Hy, Hc, Hs, hy_pad, k1_pad, k2_pad,
                   matmul_dtype=jnp.bfloat16):
    """PyTorch-layout params -> kernel layout: gate columns reordered
    (i,f,g,o)->(i,f,o,g), LSTM weights K-stacked, everything lane/K padded,
    matmul operands cast to bf16 (biases stay f32)."""
    def reorder(w):                                    # (4*Hs, ...) along dim 0
        i, f, g, o = jnp.split(w, 4, axis=0)
        return jnp.concatenate([i, f, o, g], axis=0)

    w_ih = reorder(raw["w_ih"])                        # (4Hs, Hy+Hc)
    w_hh = reorder(raw["w_hh"])                        # (4Hs, Hs)
    b_lstm = reorder(raw["b_ih"] + raw["b_hh"])        # (4Hs,)

    # One K-stacked LSTM weight: rows = [label-feedback | context | hidden | 0-pad]
    w_lstm = jnp.concatenate([w_ih, w_hh], axis=1).T   # (Hy+Hc+Hs, 4Hs)
    w_lstm = jnp.pad(w_lstm, ((0, k1_pad - w_lstm.shape[0]), (0, 0)))

    # chardist weight: rows = [rnn-state | context | 0-pad]; cols padded to hy_pad
    w_cd = jnp.pad(raw["w_cd"].T, ((0, k2_pad - (Hs + Hc)), (0, hy_pad - Hy)))
    b_cd = jnp.pad(raw["b_cd"], (0, hy_pad - Hy))

    return dict(
        w_lstm=w_lstm.astype(matmul_dtype),
        b_lstm=b_lstm.reshape(1, 4 * Hs).astype(jnp.float32),
        w_cd=w_cd.astype(matmul_dtype),
        b_cd=b_cd.reshape(1, hy_pad).astype(jnp.float32))


def speller_forward(h, raw_params, *, label_vec_size, max_seq_len, s_chunk=8):
    """Full greedy decode on-TPU; returns (y_hats (B,S,Hy), attentions (B,1,S,T))."""
    B, T, Hc = h.shape
    Hs = raw_params["w_hh"].shape[1]
    Hy = label_vec_size
    sos = Hy - 2

    t_pad = _round_up(T, _LANE)
    hy_pad = _round_up(Hy, _LANE)
    k1_pad = _round_up(Hy + Hc + Hs, _LANE)
    k2_pad = _round_up(Hs + Hc, _LANE)
    s_chunk = max(1, min(s_chunk, max_seq_len))
    n_chunks = pl.cdiv(max_seq_len, s_chunk)
    s_pad = n_chunks * s_chunk

    params = prepare_params(raw_params, Hy=Hy, Hc=Hc, Hs=Hs, hy_pad=hy_pad,
                            k1_pad=k1_pad, k2_pad=k2_pad)

    h32 = h.astype(jnp.float32)
    ctx0 = h32[:, 0, :]                                   # exact f32 step-0 context
    # bf16 encoder output in BOTH layouts; padded frames are zero (masked in-kernel).
    h_bf = jnp.pad(h32, ((0, 0), (0, t_pad - T), (0, 0))).astype(jnp.bfloat16)
    hT_bf = jnp.swapaxes(h_bf, 1, 2)                      # (B, Hc, t_pad)

    kernel = functools.partial(
        speller_kernel, Hy=Hy, Hc=Hc, Hs=Hs, T=T, sos=sos,
        s_chunk=s_chunk, unroll=min(s_chunk, 4))

    def full(shape):
        return pl.BlockSpec(shape, lambda i, _n=len(shape): (0,) * _n)

    # VMEM budget sized to the actual resident set (x2 for Pallas double
    # buffering of every BlockSpec'd operand), with headroom.
    # TODO(synk): production shapes on v7x (64 MiB VMEM) additionally need h
    # tiled over T with an online softmax and a "parallel" batch-split grid
    # axis across the two TensorCores (+ MRB stationary-weight gate matmuls).
    def nbytes(shape, dtype):
        return int(np.prod(shape)) * np.dtype(dtype).itemsize
    resident = 2 * (
        nbytes((B, t_pad, Hc), jnp.bfloat16) * 2
        + nbytes((B, Hc), jnp.float32)
        + nbytes((k1_pad, 4 * Hs), jnp.bfloat16) + nbytes((1, 4 * Hs), jnp.float32)
        + nbytes((k2_pad, hy_pad), jnp.bfloat16) + nbytes((1, hy_pad), jnp.float32)
        + nbytes((s_chunk, B, hy_pad), jnp.float32)
        + nbytes((s_chunk, B, t_pad), jnp.float32))
    vmem_limit = int(min(max(4 * resident, 32 << 20), 64 << 20))

    y_raw, a_raw = pl.pallas_call(
        kernel,
        out_shape=(jax.ShapeDtypeStruct((s_pad, B, hy_pad), jnp.float32),
                   jax.ShapeDtypeStruct((s_pad, B, t_pad), jnp.float32)),
        grid_spec=pltpu.PrefetchScalarGridSpec(
            num_scalar_prefetch=0,
            grid=(n_chunks,),                 # S-chunks; carry lives in scratch
            in_specs=[
                full((B, t_pad, Hc)),         # encoder output (context matmul)
                full((B, Hc, t_pad)),         # pre-transposed copy (score matmul)
                full((B, Hc)),                # exact f32 step-0 context h[:,0,:]
                full((k1_pad, 4 * Hs)),       # fused LSTM weight [W_ih^T ; W_hh^T]
                full((1, 4 * Hs)),            # LSTM bias (b_ih+b_hh), gate-reordered
                full((k2_pad, hy_pad)),       # fused chardist weight (lane-padded)
                full((1, hy_pad)),            # chardist bias (lane-padded)
            ],
            out_specs=[
                pl.BlockSpec((s_chunk, B, hy_pad), lambda i: (i, 0, 0)),
                pl.BlockSpec((s_chunk, B, t_pad), lambda i: (i, 0, 0)),
            ],
            scratch_shapes=[
                pltpu.VMEM((B, Hy), jnp.float32),      # label-feedback carry
                pltpu.VMEM((B, Hc), jnp.float32),      # context carry
                pltpu.VMEM((B, Hs), jnp.float32),      # LSTM hidden carry
                pltpu.VMEM((B, Hs), jnp.float32),      # LSTM cell carry
                pltpu.VMEM((B, k1_pad), jnp.float32),  # fused LSTM LHS staging
                pltpu.VMEM((B, k2_pad), jnp.float32),  # fused chardist LHS staging
            ]),
        compiler_params=pltpu.CompilerParams(
            dimension_semantics=("arbitrary",),        # sequential carry over chunks
            vmem_limit_bytes=vmem_limit),
    )(h_bf, hT_bf, ctx0, params["w_lstm"], params["b_lstm"],
      params["w_cd"], params["b_cd"])

    # Strip padding; match the module's output layout.
    y_hats = jnp.transpose(y_raw[:max_seq_len, :, :Hy], (1, 0, 2))        # (B,S,Hy)
    attentions = jnp.transpose(a_raw[:max_seq_len, :, :T], (1, 0, 2))[:, None]
    return y_hats, attentions                                             # (B,1,S,T)


def init_params(key, *, listen_vec_size, label_vec_size, rnn_hidden_size):
    """PyTorch-equivalent parameter init (LSTM + chardist Linear), raw layout."""
    Hc, Hy, Hs = listen_vec_size, label_vec_size, rnn_hidden_size
    ks = jax.random.split(key, 6)
    b_l = 1.0 / np.sqrt(Hs)
    b_c = 1.0 / np.sqrt(Hs + Hc)
    u = lambda k, shp, b: jax.random.uniform(k, shp, jnp.float32, -b, b)
    return dict(
        w_ih=u(ks[0], (4 * Hs, Hy + Hc), b_l),   # LSTM weight_ih_l0 (i,f,g,o)
        w_hh=u(ks[1], (4 * Hs, Hs), b_l),        # LSTM weight_hh_l0
        b_ih=u(ks[2], (4 * Hs,), b_l),
        b_hh=u(ks[3], (4 * Hs,), b_l),
        w_cd=u(ks[4], (Hy, Hs + Hc), b_c),       # chardist Linear weight
        b_cd=u(ks[5], (Hy,), b_c))


if __name__ == "__main__":
    # Small shapes: batch=2, encoder frames=16, listen/hidden=32, labels=16.
    B, T_enc = 2, 16
    Hc = Hs = 32            # apply_attend_proj=False & 1 head => Hs == Hc
    Hy = 16                 # label_vec_size (sos=14, eos=15)
    MAX_SEQ_LEN = 8
    eos = Hy - 1

    key = jax.random.PRNGKey(0)
    k_h, k_p = jax.random.split(key)
    h = jax.random.normal(k_h, (B, T_enc, Hc), dtype=jnp.float32)
    params = init_params(k_p, listen_vec_size=Hc, label_vec_size=Hy,
                         rnn_hidden_size=Hs)

    y_hats, attentions = speller_forward(h, params, label_vec_size=Hy,
                                         max_seq_len=MAX_SEQ_LEN, s_chunk=4)
    y_hats = jax.block_until_ready(y_hats)
    attentions = jax.block_until_ready(attentions)

    # Early-break (`if all argmax == eos: break`) and seq_lens are data-dependent
    # host-side control flow in the reference; the kernel computes all steps
    # (earlier steps are unaffected), then we truncate/derive lengths here.
    # TODO(synk): the dynamic in-loop `break` itself has no clean Pallas equivalent.
    y_np = np.asarray(y_hats)
    am = np.argmax(y_np, axis=-1)                      # (B, S)  == onehot2int
    all_eos = (am == eos).all(axis=0)                  # (S,)
    hit = np.nonzero(all_eos)[0]
    s_eff = int(hit[0]) + 1 if hit.size else MAX_SEQ_LEN
    y_hats_out = y_np[:, :s_eff]                       # (B, S_eff, Hy)
    attentions_out = np.asarray(attentions)[:, :, :s_eff]   # (B, 1, S_eff, T)
    seq_lens = np.full((B,), MAX_SEQ_LEN, dtype=np.int32)
    for b in range(B):
        idx = np.nonzero(am[b, :s_eff] == eos)[0]
        if idx.size:
            seq_lens[b] = idx[0]

    assert y_hats_out.shape == (B, s_eff, Hy)
    assert attentions_out.shape == (B, 1, s_eff, T_enc)
    assert seq_lens.shape == (B,)
    assert np.isfinite(y_hats_out).all() and np.isfinite(attentions_out).all()
    print("KERNEL_OK")
</pallas_src>

<mosaic_0001>
module attributes {stable_mosaic.version = 11 : i64} {
  func.func @speller_kernel(%arg0: i32, %arg1: memref<2x128x32xbf16, #tpu.memory_space<vmem>>, %arg2: memref<2x32x128xbf16, #tpu.memory_space<vmem>>, %arg3: memref<2x32xf32, #tpu.memory_space<vmem>>, %arg4: memref<128x128xbf16, #tpu.memory_space<vmem>>, %arg5: memref<1x128xf32, #tpu.memory_space<vmem>>, %arg6: memref<128x128xbf16, #tpu.memory_space<vmem>>, %arg7: memref<1x128xf32, #tpu.memory_space<vmem>>, %arg8: memref<4x2x128xf32, #tpu.memory_space<vmem>>, %arg9: memref<4x2x128xf32, #tpu.memory_space<vmem>>, %arg10: memref<2x16xf32, #tpu.memory_space<vmem>>, %arg11: memref<2x32xf32, #tpu.memory_space<vmem>>, %arg12: memref<2x32xf32, #tpu.memory_space<vmem>>, %arg13: memref<2x32xf32, #tpu.memory_space<vmem>>, %arg14: memref<2x128xf32, #tpu.memory_space<vmem>>, %arg15: memref<2x128xf32, #tpu.memory_space<vmem>>) attributes {dimension_semantics = [#tpu.dimension_semantics<arbitrary>], iteration_bounds = array<i64: 2>, scalar_prefetch = 0 : i64, scratch_operands = 6 : i64, tpu.core_type = #tpu.core_type<tc>, window_params = [{pipeline_mode = #tpu.pipeline_mode<synchronous>, transform_indices = @transform_0, window_bounds = array<i64: 2, 128, 32>}, {pipeline_mode = #tpu.pipeline_mode<synchronous>, transform_indices = @transform_1, window_bounds = array<i64: 2, 32, 128>}, {pipeline_mode = #tpu.pipeline_mode<synchronous>, transform_indices = @transform_2, window_bounds = array<i64: 2, 32>}, {pipeline_mode = #tpu.pipeline_mode<synchronous>, transform_indices = @transform_3, window_bounds = array<i64: 128, 128>}, {pipeline_mode = #tpu.pipeline_mode<synchronous>, transform_indices = @transform_4, window_bounds = array<i64: 1, 128>}, {pipeline_mode = #tpu.pipeline_mode<synchronous>, transform_indices = @transform_5, window_bounds = array<i64: 128, 128>}, {pipeline_mode = #tpu.pipeline_mode<synchronous>, transform_indices = @transform_6, window_bounds = array<i64: 1, 128>}, {transform_indices = @transform_7, window_bounds = array<i64: 4, 2, 128>}, {transform_indices = @transform_8, window_bounds = array<i64: 4, 2, 128>}]} {
    %c0_i32 = arith.constant 0 : i32
    %0 = arith.cmpi eq, %arg0, %c0_i32 : i32
    %1 = arith.extui %0 : i1 to i32
    %c0_i32_0 = arith.constant 0 : i32
    %2 = arith.cmpi ne, %1, %c0_i32_0 : i32
    scf.if %2 {
      %479 = tpu.iota {dimensions = array<i32: 1>} : vector<2x16xi32>
      %c14_i32 = arith.constant 14 : i32
      %480 = vector.broadcast %c14_i32 : i32 to vector<2x16xi32>
      %481 = arith.cmpi eq, %479, %480 : vector<2x16xi32>
      %482 = arith.extui %481 : vector<2x16xi1> to vector<2x16xi32>
      %483 = arith.sitofp %482 : vector<2x16xi32> to vector<2x16xf32>
      %c0_215 = arith.constant 0 : index
      %c0_216 = arith.constant 0 : index
      %484 = vector.load %arg10[%c0_215, %c0_216] : memref<2x16xf32, #tpu.memory_space<vmem>>, vector<2x16xf32>
      tpu.vector_store %arg10[%c0_215, %c0_216], %483 {strides = array<i32>} : memref<2x16xf32, #tpu.memory_space<vmem>>, vector<2x16xf32>,
      %c0_217 = arith.constant 0 : index
      %c0_218 = arith.constant 0 : index
      %485 = vector.load %arg3[%c0_217, %c0_218] : memref<2x32xf32, #tpu.memory_space<vmem>>, vector<2x32xf32>
      %c0_219 = arith.constant 0 : index
      %c0_220 = arith.constant 0 : index
      %486 = vector.load %arg11[%c0_219, %c0_220] : memref<2x32xf32, #tpu.memory_space<vmem>>, vector<2x32xf32>
      tpu.vector_store %arg11[%c0_219, %c0_220], %485 {strides = array<i32>} : memref<2x32xf32, #tpu.memory_space<vmem>>, vector<2x32xf32>,
      %cst_221 = arith.constant 0.000000e+00 : f32
      %487 = vector.broadcast %cst_221 : f32 to vector<2x32xf32>
      %c0_222 = arith.constant 0 : index
      %c0_223 = arith.constant 0 : index
      %488 = vector.load %arg12[%c0_222, %c0_223] : memref<2x32xf32, #tpu.memory_space<vmem>>, vector<2x32xf32>
      tpu.vector_store %arg12[%c0_222, %c0_223], %487 {strides = array<i32>} : memref<2x32xf32, #tpu.memory_space<vmem>>, vector<2x32xf32>,
      %cst_224 = arith.constant 0.000000e+00 : f32
      %489 = vector.broadcast %cst_224 : f32 to vector<2x32xf32>
      %c0_225 = arith.constant 0 : index
      %c0_226 = arith.constant 0 : index
      %490 = vector.load %arg13[%c0_225, %c0_226] : memref<2x32xf32, #tpu.memory_space<vmem>>, vector<2x32xf32>
      tpu.vector_store %arg13[%c0_225, %c0_226], %489 {strides = array<i32>} : memref<2x32xf32, #tpu.memory_space<vmem>>, vector<2x32xf32>,
      %cst_227 = arith.constant 0.000000e+00 : f32
      %491 = vector.broadcast %cst_227 : f32 to vector<2x128xf32>
      %c0_228 = arith.constant 0 : index
      %c0_229 = arith.constant 0 : index
      %492 = vector.load %arg14[%c0_228, %c0_229] : memref<2x128xf32, #tpu.memory_space<vmem>>, vector<2x128xf32>
      tpu.vector_store %arg14[%c0_228, %c0_229], %491 {strides = array<i32>} : memref<2x128xf32, #tpu.memory_space<vmem>>, vector<2x128xf32>,
      %cst_230 = arith.constant 0.000000e+00 : f32
      %493 = vector.broadcast %cst_230 : f32 to vector<2x128xf32>
      %c0_231 = arith.constant 0 : index
      %c0_232 = arith.constant 0 : index
      %494 = vector.load %arg15[%c0_231, %c0_232] : memref<2x128xf32, #tpu.memory_space<vmem>>, vector<2x128xf32>
      tpu.vector_store %arg15[%c0_231, %c0_232], %493 {strides = array<i32>} : memref<2x128xf32, #tpu.memory_space<vmem>>, vector<2x128xf32>,
    } else {
    }
    %c0 = arith.constant 0 : index
    %c0_1 = arith.constant 0 : index
    %3 = vector.load %arg5[%c0, %c0_1] : memref<1x128xf32, #tpu.memory_space<vmem>>, vector<1x128xf32>
    %c0_2 = arith.constant 0 : index
    %c0_3 = arith.constant 0 : index
    %4 = vector.load %arg7[%c0_2, %c0_3] : memref<1x128xf32, #tpu.memory_space<vmem>>, vector<1x128xf32>
    %5 = tpu.iota {dimensions = array<i32: 2>} : vector<2x1x128xi32>
    %c16_i32 = arith.constant 16 : i32
    %6 = vector.broadcast %c16_i32 : i32 to vector<2x1x128xi32>
    %7 = arith.cmpi slt, %5, %6 : vector<2x1x128xi32>
    %cst = arith.constant 0.000000e+00 : f32
    %cst_4 = arith.constant -1.000000e+30 : f32
    %8 = vector.broadcast %cst : f32 to vector<2x1x128xf32>
    %9 = vector.broadcast %cst_4 : f32 to vector<2x1x128xf32>
    %10 = arith.select %7, %8, %9 : vector<2x1x128xi1>, vector<2x1x128xf32>
    %c0_5 = arith.constant 0 : index
    %c0_6 = arith.constant 0 : index
    %11 = vector.load %arg10[%c0_5, %c0_6] : memref<2x16xf32, #tpu.memory_space<vmem>>, vector<2x16xf32>
    %c0_7 = arith.constant 0 : index
    %c0_8 = arith.constant 0 : index
    %12 = vector.load %arg11[%c0_7, %c0_8] : memref<2x32xf32, #tpu.memory_space<vmem>>, vector<2x32xf32>
    %c0_9 = arith.constant 0 : index
    %c0_10 = arith.constant 0 : index
    %13 = vector.load %arg12[%c0_9, %c0_10] : memref<2x32xf32, #tpu.memory_space<vmem>>, vector<2x32xf32>
    %c0_11 = arith.constant 0 : index
    %c0_12 = arith.constant 0 : index
    %14 = vector.load %arg13[%c0_11, %c0_12] : memref<2x32xf32, #tpu.memory_space<vmem>>, vector<2x32xf32>
    %c0_i32_13 = arith.constant 0 : i32
    %cst_14 = arith.constant dense<0.000000e+00> : vector<2xf32>
    %15 = vector.multi_reduction <add>, %11, %cst_14 [1] : vector<2x16xf32> to vector<2xf32>
    %16 = vector.shape_cast %15 : vector<2xf32> to vector<2x1xf32>
    %cst_15 = arith.constant dense<0.000000e+00> : vector<2xf32>
    %17 = vector.multi_reduction <add>, %12, %cst_15 [1] : vector<2x32xf32> to vector<2xf32>
    %18 = vector.shape_cast %17 : vector<2xf32> to vector<2x1xf32>
    %19 = arith.addf %16, %18 : vector<2x1xf32>
    %cst_16 = arith.constant 0.020833334 : f32
    %20 = vector.broadcast %cst_16 : f32 to vector<2x1xf32>
    %21 = arith.mulf %19, %20 : vector<2x1xf32>
    %22 = vector.broadcast %21 : vector<2x1xf32> to vector<2x16xf32>
    %23 = arith.subf %11, %22 : vector<2x16xf32>
    %24 = vector.broadcast %21 : vector<2x1xf32> to vector<2x32xf32>
    %25 = arith.subf %12, %24 : vector<2x32xf32>
    %26 = arith.mulf %23, %23 : vector<2x16xf32>
    %cst_17 = arith.constant dense<0.000000e+00> : vector<2xf32>
    %27 = vector.multi_reduction <add>, %26, %cst_17 [1] : vector<2x16xf32> to vector<2xf32>
    %28 = vector.shape_cast %27 : vector<2xf32> to vector<2x1xf32>
    %29 = arith.mulf %25, %25 : vector<2x32xf32>
    %cst_18 = arith.constant dense<0.000000e+00> : vector<2xf32>
    %30 = vector.multi_reduction <add>, %29, %cst_18 [1] : vector<2x32xf32> to vector<2xf32>
    %31 = vector.shape_cast %30 : vector<2xf32> to vector<2x1xf32>
    %32 = arith.addf %28, %31 : vector<2x1xf32>
    %cst_19 = arith.constant 0.020833334 : f32
    %33 = vector.broadcast %cst_19 : f32 to vector<2x1xf32>
    %34 = arith.mulf %32, %33 : vector<2x1xf32>
    %cst_20 = arith.constant 9.99999974E-6 : f32
    %35 = vector.broadcast %cst_20 : f32 to vector<2x1xf32>
    %36 = arith.addf %34, %35 : vector<2x1xf32>
    %37 = math.rsqrt %36 : vector<2x1xf32>
    %38 = vector.broadcast %37 : vector<2x1xf32> to vector<2x16xf32>
    %39 = arith.mulf %23, %38 : vector<2x16xf32>
    %c0_21 = arith.constant 0 : index
    %c0_22 = arith.constant 0 : index
    %40 = vector.load %arg14[%c0_21, %c0_22] : memref<2x128xf32, #tpu.memory_space<vmem>>, vector<2x16xf32>
    tpu.vector_store %arg14[%c0_21, %c0_22], %39 {strides = array<i32>} : memref<2x128xf32, #tpu.memory_space<vmem>>, vector<2x16xf32>,
    %41 = vector.broadcast %37 : vector<2x1xf32> to vector<2x32xf32>
    %42 = arith.mulf %25, %41 : vector<2x32xf32>
    %c0_23 = arith.constant 0 : index
    %c16 = arith.constant 16 : index
    %43 = vector.load %arg14[%c0_23, %c16] : memref<2x128xf32, #tpu.memory_space<vmem>>, vector<2x32xf32>
    tpu.vector_store %arg14[%c0_23, %c16], %42 {strides = array<i32>} : memref<2x128xf32, #tpu.memory_space<vmem>>, vector<2x32xf32>,
    %c0_24 = arith.constant 0 : index
    %c48 = arith.constant 48 : index
    %44 = vector.load %arg14[%c0_24, %c48] : memref<2x128xf32, #tpu.memory_space<vmem>>, vector<2x32xf32>
    tpu.vector_store %arg14[%c0_24, %c48], %13 {strides = array<i32>} : memref<2x128xf32, #tpu.memory_space<vmem>>, vector<2x32xf32>,
    %c0_25 = arith.constant 0 : index
    %c0_26 = arith.constant 0 : index
    %45 = vector.load %arg14[%c0_25, %c0_26] : memref<2x128xf32, #tpu.memory_space<vmem>>, vector<2x128xf32>
    %46 = arith.truncf %45 : vector<2x128xf32> to vector<2x128xbf16>
    %c0_27 = arith.constant 0 : index
    %c0_28 = arith.constant 0 : index
    %47 = vector.load %arg4[%c0_27, %c0_28] : memref<128x128xbf16, #tpu.memory_space<vmem>>, vector<128x128xbf16>
    %cst_29 = arith.constant dense<0.000000e+00> : vector<2x128xf32>
    %48 = tpu.matmul %46, %47, %cst_29 {dimension_numbers = #tpu.dot_dimension_numbers<[1], [0], [0], [1], [0, 0, 1, 1], [], []>} : vector<2x128xbf16>, vector<128x128xbf16>, vector<2x128xf32> -> vector<2x128xf32>
    %49 = vector.broadcast %3 : vector<1x128xf32> to vector<2x128xf32>
    %50 = arith.addf %48, %49 : vector<2x128xf32>
    %51 = vector.extract_strided_slice %50 {offsets = [0, 0], sizes = [2, 96], strides = [1, 1]} : vector<2x128xf32> to vector<2x96xf32>
    %52 = arith.negf %51 : vector<2x96xf32>
    %53 = math.exp %52 : vector<2x96xf32>
    %cst_30 = arith.constant 1.000000e+00 : f32
    %54 = vector.broadcast %cst_30 : f32 to vector<2x96xf32>
    %55 = arith.addf %54, %53 : vector<2x96xf32>
    %56 = arith.divf %54, %55 : vector<2x96xf32>
    %57 = vector.extract_strided_slice %50 {offsets = [0, 96], sizes = [2, 32], strides = [1, 1]} : vector<2x128xf32> to vector<2x32xf32>
    %58 = math.tanh %57 : vector<2x32xf32>
    %59 = vector.extract_strided_slice %56 {offsets = [0, 0], sizes = [2, 32], strides = [1, 1]} : vector<2x96xf32> to vector<2x32xf32>
    %60 = vector.extract_strided_slice %56 {offsets = [0, 32], sizes = [2, 32], strides = [1, 1]} : vector<2x96xf32> to vector<2x32xf32>
    %61 = vector.extract_strided_slice %56 {offsets = [0, 64], sizes = [2, 32], strides = [1, 1]} : vector<2x96xf32> to vector<2x32xf32>
    %62 = arith.mulf %60, %14 : vector<2x32xf32>
    %63 = arith.mulf %59, %58 : vector<2x32xf32>
    %64 = arith.addf %62, %63 : vector<2x32xf32>
    %65 = math.tanh %64 : vector<2x32xf32>
    %66 = arith.mulf %61, %65 : vector<2x32xf32>
    %67 = arith.truncf %66 : vector<2x32xf32> to vector<2x32xbf16>
    %68 = vector.shape_cast %67 : vector<2x32xbf16> to vector<2x1x32xbf16>
    %c0_31 = arith.constant 0 : index
    %c0_32 = arith.constant 0 : index
    %c0_33 = arith.constant 0 : index
    %69 = vector.load %arg2[%c0_31, %c0_32, %c0_33] : memref<2x32x128xbf16, #tpu.memory_space<vmem>>, vector<2x32x128xbf16>
    "tpu.trace_start"() <{level = 10 : i32, message = "bqc,bct->bqt"}> : () -> ()
    %cst_34 = arith.constant dense<0.000000e+00> : vector<2x1x128xf32>
    %70 = tpu.matmul %68, %69, %cst_34 {dimension_numbers = #tpu.dot_dimension_numbers<[2], [1], [1], [2], [0, 0, 0, 1, 1, 2], [0], [0]>} : vector<2x1x32xbf16>, vector<2x32x128xbf16>, vector<2x1x128xf32> -> vector<2x1x128xf32>
    "tpu.trace_stop"() : () -> ()
    %71 = arith.addf %70, %10 : vector<2x1x128xf32>
    %cst_35 = arith.constant dense<0xFF800000> : vector<2x1xf32>
    %72 = vector.multi_reduction <maximumf>, %71, %cst_35 [2] : vector<2x1x128xf32> to vector<2x1xf32>
    %73 = vector.shape_cast %72 : vector<2x1xf32> to vector<2x1x1xf32>
    %74 = vector.broadcast %73 : vector<2x1x1xf32> to vector<2x1x128xf32>
    %75 = arith.subf %71, %74 : vector<2x1x128xf32>
    %76 = math.exp %75 : vector<2x1x128xf32>
    %cst_36 = arith.constant dense<0.000000e+00> : vector<2x1xf32>
    %77 = vector.multi_reduction <add>, %76, %cst_36 [2] : vector<2x1x128xf32> to vector<2x1xf32>
    %78 = vector.shape_cast %77 : vector<2x1xf32> to vector<2x1x1xf32>
    %79 = vector.broadcast %78 : vector<2x1x1xf32> to vector<2x1x128xf32>
    %80 = arith.divf %76, %79 : vector<2x1x128xf32>
    %81 = arith.truncf %80 : vector<2x1x128xf32> to vector<2x1x128xbf16>
    %c0_37 = arith.constant 0 : index
    %c0_38 = arith.constant 0 : index
    %c0_39 = arith.constant 0 : index
    %82 = vector.load %arg1[%c0_37, %c0_38, %c0_39] : memref<2x128x32xbf16, #tpu.memory_space<vmem>>, vector<2x128x32xbf16>
    "tpu.trace_start"() <{level = 10 : i32, message = "bqt,btc->bqc"}> : () -> ()
    %cst_40 = arith.constant dense<0.000000e+00> : vector<2x1x32xf32>
    %83 = tpu.matmul %81, %82, %cst_40 {dimension_numbers = #tpu.dot_dimension_numbers<[2], [1], [1], [2], [0, 0, 0, 1, 1, 2], [0], [0]>} : vector<2x1x128xbf16>, vector<2x128x32xbf16>, vector<2x1x32xf32> -> vector<2x1x32xf32>
    "tpu.trace_stop"() : () -> ()
    %84 = vector.shape_cast %83 : vector<2x1x32xf32> to vector<2x32xf32>
    %cst_41 = arith.constant dense<0.000000e+00> : vector<2xf32>
    %85 = vector.multi_reduction <add>, %66, %cst_41 [1] : vector<2x32xf32> to vector<2xf32>
    %86 = vector.shape_cast %85 : vector<2xf32> to vector<2x1xf32>
    %cst_42 = arith.constant dense<0.000000e+00> : vector<2xf32>
    %87 = vector.multi_reduction <add>, %84, %cst_42 [1] : vector<2x32xf32> to vector<2xf32>
    %88 = vector.shape_cast %87 : vector<2xf32> to vector<2x1xf32>
    %89 = arith.addf %86, %88 : vector<2x1xf32>
    %cst_43 = arith.constant 1.562500e-02 : f32
    %90 = vector.broadcast %cst_43 : f32 to vector<2x1xf32>
    %91 = arith.mulf %89, %90 : vector<2x1xf32>
    %92 = vector.broadcast %91 : vector<2x1xf32> to vector<2x32xf32>
    %93 = arith.subf %66, %92 : vector<2x32xf32>
    %94 = vector.broadcast %91 : vector<2x1xf32> to vector<2x32xf32>
    %95 = arith.subf %84, %94 : vector<2x32xf32>
    %96 = arith.mulf %93, %93 : vector<2x32xf32>
    %cst_44 = arith.constant dense<0.000000e+00> : vector<2xf32>
    %97 = vector.multi_reduction <add>, %96, %cst_44 [1] : vector<2x32xf32> to vector<2xf32>
    %98 = vector.shape_cast %97 : vector<2xf32> to vector<2x1xf32>
    %99 = arith.mulf %95, %95 : vector<2x32xf32>
    %cst_45 = arith.constant dense<0.000000e+00> : vector<2xf32>
    %100 = vector.multi_reduction <add>, %99, %cst_45 [1] : vector<2x32xf32> to vector<2xf32>
    %101 = vector.shape_cast %100 : vector<2xf32> to vector<2x1xf32>
    %102 = arith.addf %98, %101 : vector<2x1xf32>
    %cst_46 = arith.constant 1.562500e-02 : f32
    %103 = vector.broadcast %cst_46 : f32 to vector<2x1xf32>
    %104 = arith.mulf %102, %103 : vector<2x1xf32>
    %cst_47 = arith.constant 9.99999974E-6 : f32
    %105 = vector.broadcast %cst_47 : f32 to vector<2x1xf32>
    %106 = arith.addf %104, %105 : vector<2x1xf32>
    %107 = math.rsqrt %106 : vector<2x1xf32>
    %108 = vector.broadcast %107 : vector<2x1xf32> to vector<2x32xf32>
    %109 = arith.mulf %93, %108 : vector<2x32xf32>
    %c0_48 = arith.constant 0 : index
    %c0_49 = arith.constant 0 : index
    %110 = vector.load %arg15[%c0_48, %c0_49] : memref<2x128xf32, #tpu.memory_space<vmem>>, vector<2x32xf32>
    tpu.vector_store %arg15[%c0_48, %c0_49], %109 {strides = array<i32>} : memref<2x128xf32, #tpu.memory_space<vmem>>, vector<2x32xf32>,
    %111 = vector.broadcast %107 : vector<2x1xf32> to vector<2x32xf32>
    %112 = arith.mulf %95, %111 : vector<2x32xf32>
    %c0_50 = arith.constant 0 : index
    %c32 = arith.constant 32 : index
    %113 = vector.load %arg15[%c0_50, %c32] : memref<2x128xf32, #tpu.memory_space<vmem>>, vector<2x32xf32>
    tpu.vector_store %arg15[%c0_50, %c32], %112 {strides = array<i32>} : memref<2x128xf32, #tpu.memory_space<vmem>>, vector<2x32xf32>,
    %c0_51 = arith.constant 0 : index
    %c0_52 = arith.constant 0 : index
    %114 = vector.load %arg15[%c0_51, %c0_52] : memref<2x128xf32, #tpu.memory_space<vmem>>, vector<2x128xf32>
    %115 = arith.truncf %114 : vector<2x128xf32> to vector<2x128xbf16>
    %c0_53 = arith.constant 0 : index
    %c0_54 = arith.constant 0 : index
    %116 = vector.load %arg6[%c0_53, %c0_54] : memref<128x128xbf16, #tpu.memory_space<vmem>>, vector<128x128xbf16>
    %cst_55 = arith.constant dense<0.000000e+00> : vector<2x128xf32>
    %117 = tpu.matmul %115, %116, %cst_55 {dimension_numbers = #tpu.dot_dimension_numbers<[1], [0], [0], [1], [0, 0, 1, 1], [], []>} : vector<2x128xbf16>, vector<128x128xbf16>, vector<2x128xf32> -> vector<2x128xf32>
    %118 = vector.broadcast %4 : vector<1x128xf32> to vector<2x128xf32>
    %119 = arith.addf %117, %118 : vector<2x128xf32>
    %120 = arith.index_cast %c0_i32_13 : i32 to index
    %c0_56 = arith.constant 0 : index
    %c0_57 = arith.constant 0 : index
    %121 = vector.load %arg8[%120, %c0_56, %c0_57] : memref<4x2x128xf32, #tpu.memory_space<vmem>>, vector<1x2x128xf32>
    %122 = vector.shape_cast %121 : vector<1x2x128xf32> to vector<2x128xf32>
    %123 = vector.shape_cast %119 : vector<2x128xf32> to vector<1x2x128xf32>
    tpu.vector_store %arg8[%120, %c0_56, %c0_57], %123 {strides = array<i32>} : memref<4x2x128xf32, #tpu.memory_space<vmem>>, vector<1x2x128xf32>,
    %124 = vector.shape_cast %80 : vector<2x1x128xf32> to vector<2x128xf32>
    %125 = arith.index_cast %c0_i32_13 : i32 to index
    %c0_58 = arith.constant 0 : index
    %c0_59 = arith.constant 0 : index
    %126 = vector.load %arg9[%125, %c0_58, %c0_59] : memref<4x2x128xf32, #tpu.memory_space<vmem>>, vector<1x2x128xf32>
    %127 = vector.shape_cast %126 : vector<1x2x128xf32> to vector<2x128xf32>
    %128 = vector.shape_cast %124 : vector<2x128xf32> to vector<1x2x128xf32>
    tpu.vector_store %arg9[%125, %c0_58, %c0_59], %128 {strides = array<i32>} : memref<4x2x128xf32, #tpu.memory_space<vmem>>, vector<1x2x128xf32>,
    %129 = vector.extract_strided_slice %119 {offsets = [0, 0], sizes = [2, 16], strides = [1, 1]} : vector<2x128xf32> to vector<2x16xf32>
    %c1_i32 = arith.constant 1 : i32
    %cst_60 = arith.constant dense<0.000000e+00> : vector<2xf32>
    %130 = vector.multi_reduction <add>, %129, %cst_60 [1] : vector<2x16xf32> to vector<2xf32>
    %131 = vector.shape_cast %130 : vector<2xf32> to vector<2x1xf32>
    %cst_61 = arith.constant dense<0.000000e+00> : vector<2xf32>
    %132 = vector.multi_reduction <add>, %84, %cst_61 [1] : vector<2x32xf32> to vector<2xf32>
    %133 = vector.shape_cast %132 : vector<2xf32> to vector<2x1xf32>
    %134 = arith.addf %131, %133 : vector<2x1xf32>
    %cst_62 = arith.constant 0.020833334 : f32
    %135 = vector.broadcast %cst_62 : f32 to vector<2x1xf32>
    %136 = arith.mulf %134, %135 : vector<2x1xf32>
    %137 = vector.broadcast %136 : vector<2x1xf32> to vector<2x16xf32>
    %138 = arith.subf %129, %137 : vector<2x16xf32>
    %139 = vector.broadcast %136 : vector<2x1xf32> to vector<2x32xf32>
    %140 = arith.subf %84, %139 : vector<2x32xf32>
    %141 = arith.mulf %138, %138 : vector<2x16xf32>
    %cst_63 = arith.constant dense<0.000000e+00> : vector<2xf32>
    %142 = vector.multi_reduction <add>, %141, %cst_63 [1] : vector<2x16xf32> to vector<2xf32>
    %143 = vector.shape_cast %142 : vector<2xf32> to vector<2x1xf32>
    %144 = arith.mulf %140, %140 : vector<2x32xf32>
    %cst_64 = arith.constant dense<0.000000e+00> : vector<2xf32>
    %145 = vector.multi_reduction <add>, %144, %cst_64 [1] : vector<2x32xf32> to vector<2xf32>
    %146 = vector.shape_cast %145 : vector<2xf32> to vector<2x1xf32>
    %147 = arith.addf %143, %146 : vector<2x1xf32>
    %cst_65 = arith.constant 0.020833334 : f32
    %148 = vector.broadcast %cst_65 : f32 to vector<2x1xf32>
    %149 = arith.mulf %147, %148 : vector<2x1xf32>
    %cst_66 = arith.constant 9.99999974E-6 : f32
    %150 = vector.broadcast %cst_66 : f32 to vector<2x1xf32>
    %151 = arith.addf %149, %150 : vector<2x1xf32>
    %152 = math.rsqrt %151 : vector<2x1xf32>
    %153 = vector.broadcast %152 : vector<2x1xf32> to vector<2x16xf32>
    %154 = arith.mulf %138, %153 : vector<2x16xf32>
    %c0_67 = arith.constant 0 : index
    %c0_68 = arith.constant 0 : index
    %155 = vector.load %arg14[%c0_67, %c0_68] : memref<2x128xf32, #tpu.memory_space<vmem>>, vector<2x16xf32>
    tpu.vector_store %arg14[%c0_67, %c0_68], %154 {strides = array<i32>} : memref<2x128xf32, #tpu.memory_space<vmem>>, vector<2x16xf32>,
    %156 = vector.broadcast %152 : vector<2x1xf32> to vector<2x32xf32>
    %157 = arith.mulf %140, %156 : vector<2x32xf32>
    %c0_69 = arith.constant 0 : index
    %c16_70 = arith.constant 16 : index
    %158 = vector.load %arg14[%c0_69, %c16_70] : memref<2x128xf32, #tpu.memory_space<vmem>>, vector<2x32xf32>
    tpu.vector_store %arg14[%c0_69, %c16_70], %157 {strides = array<i32>} : memref<2x128xf32, #tpu.memory_space<vmem>>, vector<2x32xf32>,
    %c0_71 = arith.constant 0 : index
    %c48_72 = arith.constant 48 : index
    %159 = vector.load %arg14[%c0_71, %c48_72] : memref<2x128xf32, #tpu.memory_space<vmem>>, vector<2x32xf32>
    tpu.vector_store %arg14[%c0_71, %c48_72], %66 {strides = array<i32>} : memref<2x128xf32, #tpu.memory_space<vmem>>, vector<2x32xf32>,
    %c0_73 = arith.constant 0 : index
    %c0_74 = arith.constant 0 : index
    %160 = vector.load %arg14[%c0_73, %c0_74] : memref<2x128xf32, #tpu.memory_space<vmem>>, vector<2x128xf32>
    %161 = arith.truncf %160 : vector<2x128xf32> to vector<2x128xbf16>
    %c0_75 = arith.constant 0 : index
    %c0_76 = arith.constant 0 : index
    %162 = vector.load %arg4[%c0_75, %c0_76] : memref<128x128xbf16, #tpu.memory_space<vmem>>, vector<128x128xbf16>
    %cst_77 = arith.constant dense<0.000000e+00> : vector<2x128xf32>
    %163 = tpu.matmul %161, %162, %cst_77 {dimension_numbers = #tpu.dot_dimension_numbers<[1], [0], [0], [1], [0, 0, 1, 1], [], []>} : vector<2x128xbf16>, vector<128x128xbf16>, vector<2x128xf32> -> vector<2x128xf32>
    %164 = vector.broadcast %3 : vector<1x128xf32> to vector<2x128xf32>
    %165 = arith.addf %163, %164 : vector<2x128xf32>
    %166 = vector.extract_strided_slice %165 {offsets = [0, 0], sizes = [2, 96], strides = [1, 1]} : vector<2x128xf32> to vector<2x96xf32>
    %167 = arith.negf %166 : vector<2x96xf32>
    %168 = math.exp %167 : vector<2x96xf32>
    %cst_78 = arith.constant 1.000000e+00 : f32
    %169 = vector.broadcast %cst_78 : f32 to vector<2x96xf32>
    %170 = arith.addf %169, %168 : vector<2x96xf32>
    %171 = arith.divf %169, %170 : vector<2x96xf32>
    %172 = vector.extract_strided_slice %165 {offsets = [0, 96], sizes = [2, 32], strides = [1, 1]} : vector<2x128xf32> to vector<2x32xf32>
    %173 = math.tanh %172 : vector<2x32xf32>
    %174 = vector.extract_strided_slice %171 {offsets = [0, 0], sizes = [2, 32], strides = [1, 1]} : vector<2x96xf32> to vector<2x32xf32>
    %175 = vector.extract_strided_slice %171 {offsets = [0, 32], sizes = [2, 32], strides = [1, 1]} : vector<2x96xf32> to vector<2x32xf32>
    %176 = vector.extract_strided_slice %171 {offsets = [0, 64], sizes = [2, 32], strides = [1, 1]} : vector<2x96xf32> to vector<2x32xf32>
    %177 = arith.mulf %175, %64 : vector<2x32xf32>
    %178 = arith.mulf %174, %173 : vector<2x32xf32>
    %179 = arith.addf %177, %178 : vector<2x32xf32>
    %180 = math.tanh %179 : vector<2x32xf32>
    %181 = arith.mulf %176, %180 : vector<2x32xf32>
    %182 = arith.truncf %181 : vector<2x32xf32> to vector<2x32xbf16>
    %183 = vector.shape_cast %182 : vector<2x32xbf16> to vector<2x1x32xbf16>
    %c0_79 = arith.constant 0 : index
    %c0_80 = arith.constant 0 : index
    %c0_81 = arith.constant 0 : index
    %184 = vector.load %arg2[%c0_79, %c0_80, %c0_81] : memref<2x32x128xbf16, #tpu.memory_space<vmem>>, vector<2x32x128xbf16>
    "tpu.trace_start"() <{level = 10 : i32, message = "bqc,bct->bqt"}> : () -> ()
    %cst_82 = arith.constant dense<0.000000e+00> : vector<2x1x128xf32>
    %185 = tpu.matmul %183, %184, %cst_82 {dimension_numbers = #tpu.dot_dimension_numbers<[2], [1], [1], [2], [0, 0, 0, 1, 1, 2], [0], [0]>} : vector<2x1x32xbf16>, vector<2x32x128xbf16>, vector<2x1x128xf32> -> vector<2x1x128xf32>
    "tpu.trace_stop"() : () -> ()
    %186 = arith.addf %185, %10 : vector<2x1x128xf32>
    %cst_83 = arith.constant dense<0xFF800000> : vector<2x1xf32>
    %187 = vector.multi_reduction <maximumf>, %186, %cst_83 [2] : vector<2x1x128xf32> to vector<2x1xf32>
    %188 = vector.shape_cast %187 : vector<2x1xf32> to vector<2x1x1xf32>
    %189 = vector.broadcast %188 : vector<2x1x1xf32> to vector<2x1x128xf32>
    %190 = arith.subf %186, %189 : vector<2x1x128xf32>
    %191 = math.exp %190 : vector<2x1x128xf32>
    %cst_84 = arith.constant dense<0.000000e+00> : vector<2x1xf32>
    %192 = vector.multi_reduction <add>, %191, %cst_84 [2] : vector<2x1x128xf32> to vector<2x1xf32>
    %193 = vector.shape_cast %192 : vector<2x1xf32> to vector<2x1x1xf32>
    %194 = vector.broadcast %193 : vector<2x1x1xf32> to vector<2x1x128xf32>
    %195 = arith.divf %191, %194 : vector<2x1x128xf32>
    %196 = arith.truncf %195 : vector<2x1x128xf32> to vector<2x1x128xbf16>
    %c0_85 = arith.constant 0 : index
    %c0_86 = arith.constant 0 : index
    %c0_87 = arith.constant 0 : index
    %197 = vector.load %arg1[%c0_85, %c0_86, %c0_87] : memref<2x128x32xbf16, #tpu.memory_space<vmem>>, vector<2x128x32xbf16>
    "tpu.trace_start"() <{level = 10 : i32, message = "bqt,btc->bqc"}> : () -> ()
    %cst_88 = arith.constant dense<0.000000e+00> : vector<2x1x32xf32>
    %198 = tpu.matmul %196, %197, %cst_88 {dimension_numbers = #tpu.dot_dimension_numbers<[2], [1], [1], [2], [0, 0, 0, 1, 1, 2], [0], [0]>} : vector<2x1x128xbf16>, vector<2x128x32xbf16>, vector<2x1x32xf32> -> vector<2x1x32xf32>
    "tpu.trace_stop"() : () -> ()
    %199 = vector.shape_cast %198 : vector<2x1x32xf32> to vector<2x32xf32>
    %cst_89 = arith.constant dense<0.000000e+00> : vector<2xf32>
    %200 = vector.multi_reduction <add>, %181, %cst_89 [1] : vector<2x32xf32> to vector<2xf32>
    %201 = vector.shape_cast %200 : vector<2xf32> to vector<2x1xf32>
    %cst_90 = arith.constant dense<0.000000e+00> : vector<2xf32>
    %202 = vector.multi_reduction <add>, %199, %cst_90 [1] : vector<2x32xf32> to vector<2xf32>
    %203 = vector.shape_cast %202 : vector<2xf32> to vector<2x1xf32>
    %204 = arith.addf %201, %203 : vector<2x1xf32>
    %cst_91 = arith.constant 1.562500e-02 : f32
    %205 = vector.broadcast %cst_91 : f32 to vector<2x1xf32>
    %206 = arith.mulf %204, %205 : vector<2x1xf32>
    %207 = vector.broadcast %206 : vector<2x1xf32> to vector<2x32xf32>
    %208 = arith.subf %181, %207 : vector<2x32xf32>
    %209 = vector.broadcast %206 : vector<2x1xf32> to vector<2x32xf32>
    %210 = arith.subf %199, %209 : vector<2x32xf32>
    %211 = arith.mulf %208, %208 : vector<2x32xf32>
    %cst_92 = arith.constant dense<0.000000e+00> : vector<2xf32>
    %212 = vector.multi_reduction <add>, %211, %cst_92 [1] : vector<2x32xf32> to vector<2xf32>
    %213 = vector.shape_cast %212 : vector<2xf32> to vector<2x1xf32>
    %214 = arith.mulf %210, %210 : vector<2x32xf32>
    %cst_93 = arith.constant dense<0.000000e+00> : vector<2xf32>
    %215 = vector.multi_reduction <add>, %214, %cst_93 [1] : vector<2x32xf32> to vector<2xf32>
    %216 = vector.shape_cast %215 : vector<2xf32> to vector<2x1xf32>
    %217 = arith.addf %213, %216 : vector<2x1xf32>
    %cst_94 = arith.constant 1.562500e-02 : f32
    %218 = vector.broadcast %cst_94 : f32 to vector<2x1xf32>
    %219 = arith.mulf %217, %218 : vector<2x1xf32>
    %cst_95 = arith.constant 9.99999974E-6 : f32
    %220 = vector.broadcast %cst_95 : f32 to vector<2x1xf32>
    %221 = arith.addf %219, %220 : vector<2x1xf32>
    %222 = math.rsqrt %221 : vector<2x1xf32>
    %223 = vector.broadcast %222 : vector<2x1xf32> to vector<2x32xf32>
    %224 = arith.mulf %208, %223 : vector<2x32xf32>
    %c0_96 = arith.constant 0 : index
    %c0_97 = arith.constant 0 : index
    %225 = vector.load %arg15[%c0_96, %c0_97] : memref<2x128xf32, #tpu.memory_space<vmem>>, vector<2x32xf32>
    tpu.vector_store %arg15[%c0_96, %c0_97], %224 {strides = array<i32>} : memref<2x128xf32, #tpu.memory_space<vmem>>, vector<2x32xf32>,
    %226 = vector.broadcast %222 : vector<2x1xf32> to vector<2x32xf32>
    %227 = arith.mulf %210, %226 : vector<2x32xf32>
    %c0_98 = arith.constant 0 : index
    %c32_99 = arith.constant 32 : index
    %228 = vector.load %arg15[%c0_98, %c32_99] : memref<2x128xf32, #tpu.memory_space<vmem>>, vector<2x32xf32>
    tpu.vector_store %arg15[%c0_98, %c32_99], %227 {strides = array<i32>} : memref<2x128xf32, #tpu.memory_space<vmem>>, vector<2x32xf32>,
    %c0_100 = arith.constant 0 : index
    %c0_101 = arith.constant 0 : index
    %229 = vector.load %arg15[%c0_100, %c0_101] : memref<2x128xf32, #tpu.memory_space<vmem>>, vector<2x128xf32>
    %230 = arith.truncf %229 : vector<2x128xf32> to vector<2x128xbf16>
    %c0_102 = arith.constant 0 : index
    %c0_103 = arith.constant 0 : index
    %231 = vector.load %arg6[%c0_102, %c0_103] : memref<128x128xbf16, #tpu.memory_space<vmem>>, vector<128x128xbf16>
    %cst_104 = arith.constant dense<0.000000e+00> : vector<2x128xf32>
    %232 = tpu.matmul %230, %231, %cst_104 {dimension_numbers = #tpu.dot_dimension_numbers<[1], [0], [0], [1], [0, 0, 1, 1], [], []>} : vector<2x128xbf16>, vector<128x128xbf16>, vector<2x128xf32> -> vector<2x128xf32>
    %233 = vector.broadcast %4 : vector<1x128xf32> to vector<2x128xf32>
    %234 = arith.addf %232, %233 : vector<2x128xf32>
    %235 = arith.index_cast %c1_i32 : i32 to index
    %c0_105 = arith.constant 0 : index
    %c0_106 = arith.constant 0 : index
    %236 = vector.load %arg8[%235, %c0_105, %c0_106] : memref<4x2x128xf32, #tpu.memory_space<vmem>>, vector<1x2x128xf32>
    %237 = vector.shape_cast %236 : vector<1x2x128xf32> to vector<2x128xf32>
    %238 = vector.shape_cast %234 : vector<2x128xf32> to vector<1x2x128xf32>
    tpu.vector_store %arg8[%235, %c0_105, %c0_106], %238 {strides = array<i32>} : memref<4x2x128xf32, #tpu.memory_space<vmem>>, vector<1x2x128xf32>,
    %239 = vector.shape_cast %195 : vector<2x1x128xf32> to vector<2x128xf32>
    %240 = arith.index_cast %c1_i32 : i32 to index
    %c0_107 = arith.constant 0 : index
    %c0_108 = arith.constant 0 : index
    %241 = vector.load %arg9[%240, %c0_107, %c0_108] : memref<4x2x128xf32, #tpu.memory_space<vmem>>, vector<1x2x128xf32>
    %242 = vector.shape_cast %241 : vector<1x2x128xf32> to vector<2x128xf32>
    %243 = vector.shape_cast %239 : vector<2x128xf32> to vector<1x2x128xf32>
    tpu.vector_store %arg9[%240, %c0_107, %c0_108], %243 {strides = array<i32>} : memref<4x2x128xf32, #tpu.memory_space<vmem>>, vector<1x2x128xf32>,
    %244 = vector.extract_strided_slice %234 {offsets = [0, 0], sizes = [2, 16], strides = [1, 1]} : vector<2x128xf32> to vector<2x16xf32>
    %c2_i32 = arith.constant 2 : i32
    %cst_109 = arith.constant dense<0.000000e+00> : vector<2xf32>
    %245 = vector.multi_reduction <add>, %244, %cst_109 [1] : vector<2x16xf32> to vector<2xf32>
    %246 = vector.shape_cast %245 : vector<2xf32> to vector<2x1xf32>
    %cst_110 = arith.constant dense<0.000000e+00> : vector<2xf32>
    %247 = vector.multi_reduction <add>, %199, %cst_110 [1] : vector<2x32xf32> to vector<2xf32>
    %248 = vector.shape_cast %247 : vector<2xf32> to vector<2x1xf32>
    %249 = arith.addf %246, %248 : vector<2x1xf32>
    %cst_111 = arith.constant 0.020833334 : f32
    %250 = vector.broadcast %cst_111 : f32 to vector<2x1xf32>
    %251 = arith.mulf %249, %250 : vector<2x1xf32>
    %252 = vector.broadcast %251 : vector<2x1xf32> to vector<2x16xf32>
    %253 = arith.subf %244, %252 : vector<2x16xf32>
    %254 = vector.broadcast %251 : vector<2x1xf32> to vector<2x32xf32>
    %255 = arith.subf %199, %254 : vector<2x32xf32>
    %256 = arith.mulf %253, %253 : vector<2x16xf32>
    %cst_112 = arith.constant dense<0.000000e+00> : vector<2xf32>
    %257 = vector.multi_reduction <add>, %256, %cst_112 [1] : vector<2x16xf32> to vector<2xf32>
    %258 = vector.shape_cast %257 : vector<2xf32> to vector<2x1xf32>
    %259 = arith.mulf %255, %255 : vector<2x32xf32>
    %cst_113 = arith.constant dense<0.000000e+00> : vector<2xf32>
    %260 = vector.multi_reduction <add>, %259, %cst_113 [1] : vector<2x32xf32> to vector<2xf32>
    %261 = vector.shape_cast %260 : vector<2xf32> to vector<2x1xf32>
    %262 = arith.addf %258, %261 : vector<2x1xf32>
    %cst_114 = arith.constant 0.020833334 : f32
    %263 = vector.broadcast %cst_114 : f32 to vector<2x1xf32>
    %264 = arith.mulf %262, %263 : vector<2x1xf32>
    %cst_115 = arith.constant 9.99999974E-6 : f32
    %265 = vector.broadcast %cst_115 : f32 to vector<2x1xf32>
    %266 = arith.addf %264, %265 : vector<2x1xf32>
    %267 = math.rsqrt %266 : vector<2x1xf32>
    %268 = vector.broadcast %267 : vector<2x1xf32> to vector<2x16xf32>
    %269 = arith.mulf %253, %268 : vector<2x16xf32>
    %c0_116 = arith.constant 0 : index
    %c0_117 = arith.constant 0 : index
    %270 = vector.load %arg14[%c0_116, %c0_117] : memref<2x128xf32, #tpu.memory_space<vmem>>, vector<2x16xf32>
    tpu.vector_store %arg14[%c0_116, %c0_117], %269 {strides = array<i32>} : memref<2x128xf32, #tpu.memory_space<vmem>>, vector<2x16xf32>,
    %271 = vector.broadcast %267 : vector<2x1xf32> to vector<2x32xf32>
    %272 = arith.mulf %255, %271 : vector<2x32xf32>
    %c0_118 = arith.constant 0 : index
    %c16_119 = arith.constant 16 : index
    %273 = vector.load %arg14[%c0_118, %c16_119] : memref<2x128xf32, #tpu.memory_space<vmem>>, vector<2x32xf32>
    tpu.vector_store %arg14[%c0_118, %c16_119], %272 {strides = array<i32>} : memref<2x128xf32, #tpu.memory_space<vmem>>, vector<2x32xf32>,
    %c0_120 = arith.constant 0 : index
    %c48_121 = arith.constant 48 : index
    %274 = vector.load %arg14[%c0_120, %c48_121] : memref<2x128xf32, #tpu.memory_space<vmem>>, vector<2x32xf32>
    tpu.vector_store %arg14[%c0_120, %c48_121], %181 {strides = array<i32>} : memref<2x128xf32, #tpu.memory_space<vmem>>, vector<2x32xf32>,
    %c0_122 = arith.constant 0 : index
    %c0_123 = arith.constant 0 : index
    %275 = vector.load %arg14[%c0_122, %c0_123] : memref<2x128xf32, #tpu.memory_space<vmem>>, vector<2x128xf32>
    %276 = arith.truncf %275 : vector<2x128xf32> to vector<2x128xbf16>
    %c0_124 = arith.constant 0 : index
    %c0_125 = arith.constant 0 : index
    %277 = vector.load %arg4[%c0_124, %c0_125] : memref<128x128xbf16, #tpu.memory_space<vmem>>, vector<128x128xbf16>
    %cst_126 = arith.constant dense<0.000000e+00> : vector<2x128xf32>
    %278 = tpu.matmul %276, %277, %cst_126 {dimension_numbers = #tpu.dot_dimension_numbers<[1], [0], [0], [1], [0, 0, 1, 1], [], []>} : vector<2x128xbf16>, vector<128x128xbf16>, vector<2x128xf32> -> vector<2x128xf32>
    %279 = vector.broadcast %3 : vector<1x128xf32> to vector<2x128xf32>
    %280 = arith.addf %278, %279 : vector<2x128xf32>
    %281 = vector.extract_strided_slice %280 {offsets = [0, 0], sizes = [2, 96], strides = [1, 1]} : vector<2x128xf32> to vector<2x96xf32>
    %282 = arith.negf %281 : vector<2x96xf32>
    %283 = math.exp %282 : vector<2x96xf32>
    %cst_127 = arith.constant 1.000000e+00 : f32
    %284 = vector.broadcast %cst_127 : f32 to vector<2x96xf32>
    %285 = arith.addf %284, %283 : vector<2x96xf32>
    %286 = arith.divf %284, %285 : vector<2x96xf32>
    %287 = vector.extract_strided_slice %280 {offsets = [0, 96], sizes = [2, 32], strides = [1, 1]} : vector<2x128xf32> to vector<2x32xf32>
    %288 = math.tanh %287 : vector<2x32xf32>
    %289 = vector.extract_strided_slice %286 {offsets = [0, 0], sizes = [2, 32], strides = [1, 1]} : vector<2x96xf32> to vector<2x32xf32>
    %290 = vector.extract_strided_slice %286 {offsets = [0, 32], sizes = [2, 32], strides = [1, 1]} : vector<2x96xf32> to vector<2x32xf32>
    %291 = vector.extract_strided_slice %286 {offsets = [0, 64], sizes = [2, 32], strides = [1, 1]} : vector<2x96xf32> to vector<2x32xf32>
    %292 = arith.mulf %290, %179 : vector<2x32xf32>
    %293 = arith.mulf %289, %288 : vector<2x32xf32>
    %294 = arith.addf %292, %293 : vector<2x32xf32>
    %295 = math.tanh %294 : vector<2x32xf32>
    %296 = arith.mulf %291, %295 : vector<2x32xf32>
    %297 = arith.truncf %296 : vector<2x32xf32> to vector<2x32xbf16>
    %298 = vector.shape_cast %297 : vector<2x32xbf16> to vector<2x1x32xbf16>
    %c0_128 = arith.constant 0 : index
    %c0_129 = arith.constant 0 : index
    %c0_130 = arith.constant 0 : index
    %299 = vector.load %arg2[%c0_128, %c0_129, %c0_130] : memref<2x32x128xbf16, #tpu.memory_space<vmem>>, vector<2x32x128xbf16>
    "tpu.trace_start"() <{level = 10 : i32, message = "bqc,bct->bqt"}> : () -> ()
    %cst_131 = arith.constant dense<0.000000e+00> : vector<2x1x128xf32>
    %300 = tpu.matmul %298, %299, %cst_131 {dimension_numbers = #tpu.dot_dimension_numbers<[2], [1], [1], [2], [0, 0, 0, 1, 1, 2], [0], [0]>} : vector<2x1x32xbf16>, vector<2x32x128xbf16>, vector<2x1x128xf32> -> vector<2x1x128xf32>
    "tpu.trace_stop"() : () -> ()
    %301 = arith.addf %300, %10 : vector<2x1x128xf32>
    %cst_132 = arith.constant dense<0xFF800000> : vector<2x1xf32>
    %302 = vector.multi_reduction <maximumf>, %301, %cst_132 [2] : vector<2x1x128xf32> to vector<2x1xf32>
    %303 = vector.shape_cast %302 : vector<2x1xf32> to vector<2x1x1xf32>
    %304 = vector.broadcast %303 : vector<2x1x1xf32> to vector<2x1x128xf32>
    %305 = arith.subf %301, %304 : vector<2x1x128xf32>
    %306 = math.exp %305 : vector<2x1x128xf32>
    %cst_133 = arith.constant dense<0.000000e+00> : vector<2x1xf32>
    %307 = vector.multi_reduction <add>, %306, %cst_133 [2] : vector<2x1x128xf32> to vector<2x1xf32>
    %308 = vector.shape_cast %307 : vector<2x1xf32> to vector<2x1x1xf32>
    %309 = vector.broadcast %308 : vector<2x1x1xf32> to vector<2x1x128xf32>
    %310 = arith.divf %306, %309 : vector<2x1x128xf32>
    %311 = arith.truncf %310 : vector<2x1x128xf32> to vector<2x1x128xbf16>
    %c0_134 = arith.constant 0 : index
    %c0_135 = arith.constant 0 : index
    %c0_136 = arith.constant 0 : index
    %312 = vector.load %arg1[%c0_134, %c0_135, %c0_136] : memref<2x128x32xbf16, #tpu.memory_space<vmem>>, vector<2x128x32xbf16>
    "tpu.trace_start"() <{level = 10 : i32, message = "bqt,btc->bqc"}> : () -> ()
    %cst_137 = arith.constant dense<0.000000e+00> : vector<2x1x32xf32>
    %313 = tpu.matmul %311, %312, %cst_137 {dimension_numbers = #tpu.dot_dimension_numbers<[2], [1], [1], [2], [0, 0, 0, 1, 1, 2], [0], [0]>} : vector<2x1x128xbf16>, vector<2x128x32xbf16>, vector<2x1x32xf32> -> vector<2x1x32xf32>
    "tpu.trace_stop"() : () -> ()
    %314 = vector.shape_cast %313 : vector<2x1x32xf32> to vector<2x32xf32>
    %cst_138 = arith.constant dense<0.000000e+00> : vector<2xf32>
    %315 = vector.multi_reduction <add>, %296, %cst_138 [1] : vector<2x32xf32> to vector<2xf32>
    %316 = vector.shape_cast %315 : vector<2xf32> to vector<2x1xf32>
    %cst_139 = arith.constant dense<0.000000e+00> : vector<2xf32>
    %317 = vector.multi_reduction <add>, %314, %cst_139 [1] : vector<2x32xf32> to vector<2xf32>
    %318 = vector.shape_cast %317 : vector<2xf32> to vector<2x1xf32>
    %319 = arith.addf %316, %318 : vector<2x1xf32>
    %cst_140 = arith.constant 1.562500e-02 : f32
    %320 = vector.broadcast %cst_140 : f32 to vector<2x1xf32>
    %321 = arith.mulf %319, %320 : vector<2x1xf32>
    %322 = vector.broadcast %321 : vector<2x1xf32> to vector<2x32xf32>
    %323 = arith.subf %296, %322 : vector<2x32xf32>
    %324 = vector.broadcast %321 : vector<2x1xf32> to vector<2x32xf32>
    %325 = arith.subf %314, %324 : vector<2x32xf32>
    %326 = arith.mulf %323, %323 : vector<2x32xf32>
    %cst_141 = arith.constant dense<0.000000e+00> : vector<2xf32>
    %327 = vector.multi_reduction <add>, %326, %cst_141 [1] : vector<2x32xf32> to vector<2xf32>
    %328 = vector.shape_cast %327 : vector<2xf32> to vector<2x1xf32>
    %329 = arith.mulf %325, %325 : vector<2x32xf32>
    %cst_142 = arith.constant dense<0.000000e+00> : vector<2xf32>
    %330 = vector.multi_reduction <add>, %329, %cst_142 [1] : vector<2x32xf32> to vector<2xf32>
    %331 = vector.shape_cast %330 : vector<2xf32> to vector<2x1xf32>
    %332 = arith.addf %328, %331 : vector<2x1xf32>
    %cst_143 = arith.constant 1.562500e-02 : f32
    %333 = vector.broadcast %cst_143 : f32 to vector<2x1xf32>
    %334 = arith.mulf %332, %333 : vector<2x1xf32>
    %cst_144 = arith.constant 9.99999974E-6 : f32
    %335 = vector.broadcast %cst_144 : f32 to vector<2x1xf32>
    %336 = arith.addf %334, %335 : vector<2x1xf32>
    %337 = math.rsqrt %336 : vector<2x1xf32>
    %338 = vector.broadcast %337 : vector<2x1xf32> to vector<2x32xf32>
    %339 = arith.mulf %323, %338 : vector<2x32xf32>
    %c0_145 = arith.constant 0 : index
    %c0_146 = arith.constant 0 : index
    %340 = vector.load %arg15[%c0_145, %c0_146] : memref<2x128xf32, #tpu.memory_space<vmem>>, vector<2x32xf32>
    tpu.vector_store %arg15[%c0_145, %c0_146], %339 {strides = array<i32>} : memref<2x128xf32, #tpu.memory_space<vmem>>, vector<2x32xf32>,
    %341 = vector.broadcast %337 : vector<2x1xf32> to vector<2x32xf32>
    %342 = arith.mulf %325, %341 : vector<2x32xf32>
    %c0_147 = arith.constant 0 : index
    %c32_148 = arith.constant 32 : index
    %343 = vector.load %arg15[%c0_147, %c32_148] : memref<2x128xf32, #tpu.memory_space<vmem>>, vector<2x32xf32>
    tpu.vector_store %arg15[%c0_147, %c32_148], %342 {strides = array<i32>} : memref<2x128xf32, #tpu.memory_space<vmem>>, vector<2x32xf32>,
    %c0_149 = arith.constant 0 : index
    %c0_150 = arith.constant 0 : index
    %344 = vector.load %arg15[%c0_149, %c0_150] : memref<2x128xf32, #tpu.memory_space<vmem>>, vector<2x128xf32>
    %345 = arith.truncf %344 : vector<2x128xf32> to vector<2x128xbf16>
    %c0_151 = arith.constant 0 : index
    %c0_152 = arith.constant 0 : index
    %346 = vector.load %arg6[%c0_151, %c0_152] : memref<128x128xbf16, #tpu.memory_space<vmem>>, vector<128x128xbf16>
    %cst_153 = arith.constant dense<0.000000e+00> : vector<2x128xf32>
    %347 = tpu.matmul %345, %346, %cst_153 {dimension_numbers = #tpu.dot_dimension_numbers<[1], [0], [0], [1], [0, 0, 1, 1], [], []>} : vector<2x128xbf16>, vector<128x128xbf16>, vector<2x128xf32> -> vector<2x128xf32>
    %348 = vector.broadcast %4 : vector<1x128xf32> to vector<2x128xf32>
    %349 = arith.addf %347, %348 : vector<2x128xf32>
    %350 = arith.index_cast %c2_i32 : i32 to index
    %c0_154 = arith.constant 0 : index
    %c0_155 = arith.constant 0 : index
    %351 = vector.load %arg8[%350, %c0_154, %c0_155] : memref<4x2x128xf32, #tpu.memory_space<vmem>>, vector<1x2x128xf32>
    %352 = vector.shape_cast %351 : vector<1x2x128xf32> to vector<2x128xf32>
    %353 = vector.shape_cast %349 : vector<2x128xf32> to vector<1x2x128xf32>
    tpu.vector_store %arg8[%350, %c0_154, %c0_155], %353 {strides = array<i32>} : memref<4x2x128xf32, #tpu.memory_space<vmem>>, vector<1x2x128xf32>,
    %354 = vector.shape_cast %310 : vector<2x1x128xf32> to vector<2x128xf32>
    %355 = arith.index_cast %c2_i32 : i32 to index
    %c0_156 = arith.constant 0 : index
    %c0_157 = arith.constant 0 : index
    %356 = vector.load %arg9[%355, %c0_156, %c0_157] : memref<4x2x128xf32, #tpu.memory_space<vmem>>, vector<1x2x128xf32>
    %357 = vector.shape_cast %356 : vector<1x2x128xf32> to vector<2x128xf32>
    %358 = vector.shape_cast %354 : vector<2x128xf32> to vector<1x2x128xf32>
    tpu.vector_store %arg9[%355, %c0_156, %c0_157], %358 {strides = array<i32>} : memref<4x2x128xf32, #tpu.memory_space<vmem>>, vector<1x2x128xf32>,
    %359 = vector.extract_strided_slice %349 {offsets = [0, 0], sizes = [2, 16], strides = [1, 1]} : vector<2x128xf32> to vector<2x16xf32>
    %c3_i32 = arith.constant 3 : i32
    %cst_158 = arith.constant dense<0.000000e+00> : vector<2xf32>
    %360 = vector.multi_reduction <add>, %359, %cst_158 [1] : vector<2x16xf32> to vector<2xf32>
    %361 = vector.shape_cast %360 : vector<2xf32> to vector<2x1xf32>
    %cst_159 = arith.constant dense<0.000000e+00> : vector<2xf32>
    %362 = vector.multi_reduction <add>, %314, %cst_159 [1] : vector<2x32xf32> to vector<2xf32>
    %363 = vector.shape_cast %362 : vector<2xf32> to vector<2x1xf32>
    %364 = arith.addf %361, %363 : vector<2x1xf32>
    %cst_160 = arith.constant 0.020833334 : f32
    %365 = vector.broadcast %cst_160 : f32 to vector<2x1xf32>
    %366 = arith.mulf %364, %365 : vector<2x1xf32>
    %367 = vector.broadcast %366 : vector<2x1xf32> to vector<2x16xf32>
    %368 = arith.subf %359, %367 : vector<2x16xf32>
    %369 = vector.broadcast %366 : vector<2x1xf32> to vector<2x32xf32>
    %370 = arith.subf %314, %369 : vector<2x32xf32>
    %371 = arith.mulf %368, %368 : vector<2x16xf32>
    %cst_161 = arith.constant dense<0.000000e+00> : vector<2xf32>
    %372 = vector.multi_reduction <add>, %371, %cst_161 [1] : vector<2x16xf32> to vector<2xf32>
    %373 = vector.shape_cast %372 : vector<2xf32> to vector<2x1xf32>
    %374 = arith.mulf %370, %370 : vector<2x32xf32>
    %cst_162 = arith.constant dense<0.000000e+00> : vector<2xf32>
    %375 = vector.multi_reduction <add>, %374, %cst_162 [1] : vector<2x32xf32> to vector<2xf32>
    %376 = vector.shape_cast %375 : vector<2xf32> to vector<2x1xf32>
    %377 = arith.addf %373, %376 : vector<2x1xf32>
    %cst_163 = arith.constant 0.020833334 : f32
    %378 = vector.broadcast %cst_163 : f32 to vector<2x1xf32>
    %379 = arith.mulf %377, %378 : vector<2x1xf32>
    %cst_164 = arith.constant 9.99999974E-6 : f32
    %380 = vector.broadcast %cst_164 : f32 to vector<2x1xf32>
    %381 = arith.addf %379, %380 : vector<2x1xf32>
    %382 = math.rsqrt %381 : vector<2x1xf32>
    %383 = vector.broadcast %382 : vector<2x1xf32> to vector<2x16xf32>
    %384 = arith.mulf %368, %383 : vector<2x16xf32>
    %c0_165 = arith.constant 0 : index
    %c0_166 = arith.constant 0 : index
    %385 = vector.load %arg14[%c0_165, %c0_166] : memref<2x128xf32, #tpu.memory_space<vmem>>, vector<2x16xf32>
    tpu.vector_store %arg14[%c0_165, %c0_166], %384 {strides = array<i32>} : memref<2x128xf32, #tpu.memory_space<vmem>>, vector<2x16xf32>,
    %386 = vector.broadcast %382 : vector<2x1xf32> to vector<2x32xf32>
    %387 = arith.mulf %370, %386 : vector<2x32xf32>
    %c0_167 = arith.constant 0 : index
    %c16_168 = arith.constant 16 : index
    %388 = vector.load %arg14[%c0_167, %c16_168] : memref<2x128xf32, #tpu.memory_space<vmem>>, vector<2x32xf32>
    tpu.vector_store %arg14[%c0_167, %c16_168], %387 {strides = array<i32>} : memref<2x128xf32, #tpu.memory_space<vmem>>, vector<2x32xf32>,
    %c0_169 = arith.constant 0 : index
    %c48_170 = arith.constant 48 : index
    %389 = vector.load %arg14[%c0_169, %c48_170] : memref<2x128xf32, #tpu.memory_space<vmem>>, vector<2x32xf32>
    tpu.vector_store %arg14[%c0_169, %c48_170], %296 {strides = array<i32>} : memref<2x128xf32, #tpu.memory_space<vmem>>, vector<2x32xf32>,
    %c0_171 = arith.constant 0 : index
    %c0_172 = arith.constant 0 : index
    %390 = vector.load %arg14[%c0_171, %c0_172] : memref<2x128xf32, #tpu.memory_space<vmem>>, vector<2x128xf32>
    %391 = arith.truncf %390 : vector<2x128xf32> to vector<2x128xbf16>
    %c0_173 = arith.constant 0 : index
    %c0_174 = arith.constant 0 : index
    %392 = vector.load %arg4[%c0_173, %c0_174] : memref<128x128xbf16, #tpu.memory_space<vmem>>, vector<128x128xbf16>
    %cst_175 = arith.constant dense<0.000000e+00> : vector<2x128xf32>
    %393 = tpu.matmul %391, %392, %cst_175 {dimension_numbers = #tpu.dot_dimension_numbers<[1], [0], [0], [1], [0, 0, 1, 1], [], []>} : vector<2x128xbf16>, vector<128x128xbf16>, vector<2x128xf32> -> vector<2x128xf32>
    %394 = vector.broadcast %3 : vector<1x128xf32> to vector<2x128xf32>
    %395 = arith.addf %393, %394 : vector<2x128xf32>
    %396 = vector.extract_strided_slice %395 {offsets = [0, 0], sizes = [2, 96], strides = [1, 1]} : vector<2x128xf32> to vector<2x96xf32>
    %397 = arith.negf %396 : vector<2x96xf32>
    %398 = math.exp %397 : vector<2x96xf32>
    %cst_176 = arith.constant 1.000000e+00 : f32
    %399 = vector.broadcast %cst_176 : f32 to vector<2x96xf32>
    %400 = arith.addf %399, %398 : vector<2x96xf32>
    %401 = arith.divf %399, %400 : vector<2x96xf32>
    %402 = vector.extract_strided_slice %395 {offsets = [0, 96], sizes = [2, 32], strides = [1, 1]} : vector<2x128xf32> to vector<2x32xf32>
    %403 = math.tanh %402 : vector<2x32xf32>
    %404 = vector.extract_strided_slice %401 {offsets = [0, 0], sizes = [2, 32], strides = [1, 1]} : vector<2x96xf32> to vector<2x32xf32>
    %405 = vector.extract_strided_slice %401 {offsets = [0, 32], sizes = [2, 32], strides = [1, 1]} : vector<2x96xf32> to vector<2x32xf32>
    %406 = vector.extract_strided_slice %401 {offsets = [0, 64], sizes = [2, 32], strides = [1, 1]} : vector<2x96xf32> to vector<2x32xf32>
    %407 = arith.mulf %405, %294 : vector<2x32xf32>
    %408 = arith.mulf %404, %403 : vector<2x32xf32>
    %409 = arith.addf %407, %408 : vector<2x32xf32>
    %410 = math.tanh %409 : vector<2x32xf32>
    %411 = arith.mulf %406, %410 : vector<2x32xf32>
    %412 = arith.truncf %411 : vector<2x32xf32> to vector<2x32xbf16>
    %413 = vector.shape_cast %412 : vector<2x32xbf16> to vector<2x1x32xbf16>
    %c0_177 = arith.constant 0 : index
    %c0_178 = arith.constant 0 : index
    %c0_179 = arith.constant 0 : index
    %414 = vector.load %arg2[%c0_177, %c0_178, %c0_179] : memref<2x32x128xbf16, #tpu.memory_space<vmem>>, vector<2x32x128xbf16>
    "tpu.trace_start"() <{level = 10 : i32, message = "bqc,bct->bqt"}> : () -> ()
    %cst_180 = arith.constant dense<0.000000e+00> : vector<2x1x128xf32>
    %415 = tpu.matmul %413, %414, %cst_180 {dimension_numbers = #tpu.dot_dimension_numbers<[2], [1], [1], [2], [0, 0, 0, 1, 1, 2], [0], [0]>} : vector<2x1x32xbf16>, vector<2x32x128xbf16>, vector<2x1x128xf32> -> vector<2x1x128xf32>
    "tpu.trace_stop"() : () -> ()
    %416 = arith.addf %415, %10 : vector<2x1x128xf32>
    %cst_181 = arith.constant dense<0xFF800000> : vector<2x1xf32>
    %417 = vector.multi_reduction <maximumf>, %416, %cst_181 [2] : vector<2x1x128xf32> to vector<2x1xf32>
    %418 = vector.shape_cast %417 : vector<2x1xf32> to vector<2x1x1xf32>
    %419 = vector.broadcast %418 : vector<2x1x1xf32> to vector<2x1x128xf32>
    %420 = arith.subf %416, %419 : vector<2x1x128xf32>
    %421 = math.exp %420 : vector<2x1x128xf32>
    %cst_182 = arith.constant dense<0.000000e+00> : vector<2x1xf32>
    %422 = vector.multi_reduction <add>, %421, %cst_182 [2] : vector<2x1x128xf32> to vector<2x1xf32>
    %423 = vector.shape_cast %422 : vector<2x1xf32> to vector<2x1x1xf32>
    %424 = vector.broadcast %423 : vector<2x1x1xf32> to vector<2x1x128xf32>
    %425 = arith.divf %421, %424 : vector<2x1x128xf32>
    %426 = arith.truncf %425 : vector<2x1x128xf32> to vector<2x1x128xbf16>
    %c0_183 = arith.constant 0 : index
    %c0_184 = arith.constant 0 : index
    %c0_185 = arith.constant 0 : index
    %427 = vector.load %arg1[%c0_183, %c0_184, %c0_185] : memref<2x128x32xbf16, #tpu.memory_space<vmem>>, vector<2x128x32xbf16>
    "tpu.trace_start"() <{level = 10 : i32, message = "bqt,btc->bqc"}> : () -> ()
    %cst_186 = arith.constant dense<0.000000e+00> : vector<2x1x32xf32>
    %428 = tpu.matmul %426, %427, %cst_186 {dimension_numbers = #tpu.dot_dimension_numbers<[2], [1], [1], [2], [0, 0, 0, 1, 1, 2], [0], [0]>} : vector<2x1x128xbf16>, vector<2x128x32xbf16>, vector<2x1x32xf32> -> vector<2x1x32xf32>
    "tpu.trace_stop"() : () -> ()
    %429 = vector.shape_cast %428 : vector<2x1x32xf32> to vector<2x32xf32>
    %cst_187 = arith.constant dense<0.000000e+00> : vector<2xf32>
    %430 = vector.multi_reduction <add>, %411, %cst_187 [1] : vector<2x32xf32> to vector<2xf32>
    %431 = vector.shape_cast %430 : vector<2xf32> to vector<2x1xf32>
    %cst_188 = arith.constant dense<0.000000e+00> : vector<2xf32>
    %432 = vector.multi_reduction <add>, %429, %cst_188 [1] : vector<2x32xf32> to vector<2xf32>
    %433 = vector.shape_cast %432 : vector<2xf32> to vector<2x1xf32>
    %434 = arith.addf %431, %433 : vector<2x1xf32>
    %cst_189 = arith.constant 1.562500e-02 : f32
    %435 = vector.broadcast %cst_189 : f32 to vector<2x1xf32>
    %436 = arith.mulf %434, %435 : vector<2x1xf32>
    %437 = vector.broadcast %436 : vector<2x1xf32> to vector<2x32xf32>
    %438 = arith.subf %411, %437 : vector<2x32xf32>
    %439 = vector.broadcast %436 : vector<2x1xf32> to vector<2x32xf32>
    %440 = arith.subf %429, %439 : vector<2x32xf32>
    %441 = arith.mulf %438, %438 : vector<2x32xf32>
    %cst_190 = arith.constant dense<0.000000e+00> : vector<2xf32>
    %442 = vector.multi_reduction <add>, %441, %cst_190 [1] : vector<2x32xf32> to vector<2xf32>
    %443 = vector.shape_cast %442 : vector<2xf32> to vector<2x1xf32>
    %444 = arith.mulf %440, %440 : vector<2x32xf32>
    %cst_191 = arith.constant dense<0.000000e+00> : vector<2xf32>
    %445 = vector.multi_reduction <add>, %444, %cst_191 [1] : vector<2x32xf32> to vector<2xf32>
    %446 = vector.shape_cast %445 : vector<2xf32> to vector<2x1xf32>
    %447 = arith.addf %443, %446 : vector<2x1xf32>
    %cst_192 = arith.constant 1.562500e-02 : f32
    %448 = vector.broadcast %cst_192 : f32 to vector<2x1xf32>
    %449 = arith.mulf %447, %448 : vector<2x1xf32>
    %cst_193 = arith.constant 9.99999974E-6 : f32
    %450 = vector.broadcast %cst_193 : f32 to vector<2x1xf32>
    %451 = arith.addf %449, %450 : vector<2x1xf32>
    %452 = math.rsqrt %451 : vector<2x1xf32>
    %453 = vector.broadcast %452 : vector<2x1xf32> to vector<2x32xf32>
    %454 = arith.mulf %438, %453 : vector<2x32xf32>
    %c0_194 = arith.constant 0 : index
    %c0_195 = arith.constant 0 : index
    %455 = vector.load %arg15[%c0_194, %c0_195] : memref<2x128xf32, #tpu.memory_space<vmem>>, vector<2x32xf32>
    tpu.vector_store %arg15[%c0_194, %c0_195], %454 {strides = array<i32>} : memref<2x128xf32, #tpu.memory_space<vmem>>, vector<2x32xf32>,
    %456 = vector.broadcast %452 : vector<2x1xf32> to vector<2x32xf32>
    %457 = arith.mulf %440, %456 : vector<2x32xf32>
    %c0_196 = arith.constant 0 : index
    %c32_197 = arith.constant 32 : index
    %458 = vector.load %arg15[%c0_196, %c32_197] : memref<2x128xf32, #tpu.memory_space<vmem>>, vector<2x32xf32>
    tpu.vector_store %arg15[%c0_196, %c32_197], %457 {strides = array<i32>} : memref<2x128xf32, #tpu.memory_space<vmem>>, vector<2x32xf32>,
    %c0_198 = arith.constant 0 : index
    %c0_199 = arith.constant 0 : index
    %459 = vector.load %arg15[%c0_198, %c0_199] : memref<2x128xf32, #tpu.memory_space<vmem>>, vector<2x128xf32>
    %460 = arith.truncf %459 : vector<2x128xf32> to vector<2x128xbf16>
    %c0_200 = arith.constant 0 : index
    %c0_201 = arith.constant 0 : index
    %461 = vector.load %arg6[%c0_200, %c0_201] : memref<128x128xbf16, #tpu.memory_space<vmem>>, vector<128x128xbf16>
    %cst_202 = arith.constant dense<0.000000e+00> : vector<2x128xf32>
    %462 = tpu.matmul %460, %461, %cst_202 {dimension_numbers = #tpu.dot_dimension_numbers<[1], [0], [0], [1], [0, 0, 1, 1], [], []>} : vector<2x128xbf16>, vector<128x128xbf16>, vector<2x128xf32> -> vector<2x128xf32>
    %463 = vector.broadcast %4 : vector<1x128xf32> to vector<2x128xf32>
    %464 = arith.addf %462, %463 : vector<2x128xf32>
    %465 = arith.index_cast %c3_i32 : i32 to index
    %c0_203 = arith.constant 0 : index
    %c0_204 = arith.constant 0 : index
    %466 = vector.load %arg8[%465, %c0_203, %c0_204] : memref<4x2x128xf32, #tpu.memory_space<vmem>>, vector<1x2x128xf32>
    %467 = vector.shape_cast %466 : vector<1x2x128xf32> to vector<2x128xf32>
    %468 = vector.shape_cast %464 : vector<2x128xf32> to vector<1x2x128xf32>
    tpu.vector_store %arg8[%465, %c0_203, %c0_204], %468 {strides = array<i32>} : memref<4x2x128xf32, #tpu.memory_space<vmem>>, vector<1x2x128xf32>,
    %469 = vector.shape_cast %425 : vector<2x1x128xf32> to vector<2x128xf32>
    %470 = arith.index_cast %c3_i32 : i32 to index
    %c0_205 = arith.constant 0 : index
    %c0_206 = arith.constant 0 : index
    %471 = vector.load %arg9[%470, %c0_205, %c0_206] : memref<4x2x128xf32, #tpu.memory_space<vmem>>, vector<1x2x128xf32>
    %472 = vector.shape_cast %471 : vector<1x2x128xf32> to vector<2x128xf32>
    %473 = vector.shape_cast %469 : vector<2x128xf32> to vector<1x2x128xf32>
    tpu.vector_store %arg9[%470, %c0_205, %c0_206], %473 {strides = array<i32>} : memref<4x2x128xf32, #tpu.memory_space<vmem>>, vector<1x2x128xf32>,
    %474 = vector.extract_strided_slice %464 {offsets = [0, 0], sizes = [2, 16], strides = [1, 1]} : vector<2x128xf32> to vector<2x16xf32>
    %c4_i32 = arith.constant 4 : i32
    %c0_207 = arith.constant 0 : index
    %c0_208 = arith.constant 0 : index
    %475 = vector.load %arg10[%c0_207, %c0_208] : memref<2x16xf32, #tpu.memory_space<vmem>>, vector<2x16xf32>
    tpu.vector_store %arg10[%c0_207, %c0_208], %474 {strides = array<i32>} : memref<2x16xf32, #tpu.memory_space<vmem>>, vector<2x16xf32>,
    %c0_209 = arith.constant 0 : index
    %c0_210 = arith.constant 0 : index
    %476 = vector.load %arg11[%c0_209, %c0_210] : memref<2x32xf32, #tpu.memory_space<vmem>>, vector<2x32xf32>
    tpu.vector_store %arg11[%c0_209, %c0_210], %429 {strides = array<i32>} : memref<2x32xf32, #tpu.memory_space<vmem>>, vector<2x32xf32>,
    %c0_211 = arith.constant 0 : index
    %c0_212 = arith.constant 0 : index
    %477 = vector.load %arg12[%c0_211, %c0_212] : memref<2x32xf32, #tpu.memory_space<vmem>>, vector<2x32xf32>
    tpu.vector_store %arg12[%c0_211, %c0_212], %411 {strides = array<i32>} : memref<2x32xf32, #tpu.memory_space<vmem>>, vector<2x32xf32>,
    %c0_213 = arith.constant 0 : index
    %c0_214 = arith.constant 0 : index
    %478 = vector.load %arg13[%c0_213, %c0_214] : memref<2x32xf32, #tpu.memory_space<vmem>>, vector<2x32xf32>
    tpu.vector_store %arg13[%c0_213, %c0_214], %409 {strides = array<i32>} : memref<2x32xf32, #tpu.memory_space<vmem>>, vector<2x32xf32>,
    return
  }
  func.func @transform_0(%arg0: i32) -> (i32, i32, i32) {
    %c0_i32 = arith.constant 0 : i32
    %c0_i32_0 = arith.constant 0 : i32
    %c0_i32_1 = arith.constant 0 : i32
    %c0_i32_2 = arith.constant 0 : i32
    return %c0_i32, %c0_i32_0, %c0_i32_1 : i32, i32, i32
  }
  func.func @transform_1(%arg0: i32) -> (i32, i32, i32) {
    %c0_i32 = arith.constant 0 : i32
    %c0_i32_0 = arith.constant 0 : i32
    %c0_i32_1 = arith.constant 0 : i32
    %c0_i32_2 = arith.constant 0 : i32
    return %c0_i32, %c0_i32_0, %c0_i32_1 : i32, i32, i32
  }
  func.func @transform_2(%arg0: i32) -> (i32, i32) {
    %c0_i32 = arith.constant 0 : i32
    %c0_i32_0 = arith.constant 0 : i32
    %c0_i32_1 = arith.constant 0 : i32
    return %c0_i32, %c0_i32_0 : i32, i32
  }
  func.func @transform_3(%arg0: i32) -> (i32, i32) {
    %c0_i32 = arith.constant 0 : i32
    %c0_i32_0 = arith.constant 0 : i32
    %c0_i32_1 = arith.constant 0 : i32
    return %c0_i32, %c0_i32_0 : i32, i32
  }
  func.func @transform_4(%arg0: i32) -> (i32, i32) {
    %c0_i32 = arith.constant 0 : i32
    %c0_i32_0 = arith.constant 0 : i32
    %c0_i32_1 = arith.constant 0 : i32
    return %c0_i32, %c0_i32_0 : i32, i32
  }
  func.func @transform_5(%arg0: i32) -> (i32, i32) {
    %c0_i32 = arith.constant 0 : i32
    %c0_i32_0 = arith.constant 0 : i32
    %c0_i32_1 = arith.constant 0 : i32
    return %c0_i32, %c0_i32_0 : i32, i32
  }
  func.func @transform_6(%arg0: i32) -> (i32, i32) {
    %c0_i32 = arith.constant 0 : i32
    %c0_i32_0 = arith.constant 0 : i32
    %c0_i32_1 = arith.constant 0 : i32
    return %c0_i32, %c0_i32_0 : i32, i32
  }
  func.func @transform_7(%arg0: i32) -> (i32, i32, i32) {
    %c0_i32 = arith.constant 0 : i32
    %c0_i32_0 = arith.constant 0 : i32
    %c0_i32_1 = arith.constant 0 : i32
    return %arg0, %c0_i32, %c0_i32_0 : i32, i32, i32
  }
  func.func @transform_8(%arg0: i32) -> (i32, i32, i32) {
    %c0_i32 = arith.constant 0 : i32
    %c0_i32_0 = arith.constant 0 : i32
    %c0_i32_1 = arith.constant 0 : i32
    return %arg0, %c0_i32, %c0_i32_0 : i32, i32, i32
  }
}

</mosaic_0001>

<bundles_post_ra>
// kernel: tpu_custom_call.1
= control target key start
LH: loop header
LB: loop body
LE: loop exit
PB: predicated region body
PF: predicated region fallthrough
CT: control target
= control target key end

     0   :  { %s5674_s0 = inlined_call_operand.vmem [shape: bf16[2,128,32], index: 0, kind: input, shape index: {}]   ;;  %s5675_s1 = inlined_call_operand.vmem [shape: bf16[2,32,128], index: 1, kind: input, shape index: {}]   ;;  %s5676_s2 = inlined_call_operand.vmem [shape: f32[2,32], index: 2, kind: input, shape index: {}]   ;;  %s5677_s3 = inlined_call_operand.vmem [shape: bf16[128,128], index: 3, kind: input, shape index: {}]   ;;  %s5678_s4 = inlined_call_operand.vmem [shape: f32[1,128], index: 4, kind: input, shape index: {}]   ;;  %s5679_s5 = inlined_call_operand.vmem [shape: bf16[128,128], index: 5, kind: input, shape index: {}]   ;;  %s5680_s6 = inlined_call_operand.vmem [shape: f32[1,128], index: 6, kind: input, shape index: {}]   ;;  %s5681_s7 = inlined_call_operand.hbm [shape: f32[8,2,128], index: 7, kind: output, shape index: {0}]   ;;  %s5682_s8 = inlined_call_operand.hbm [shape: f32[8,2,128], index: 8, kind: output, shape index: {1}]  }
   0x1   :  { %5691 = sst [smem:[#allocation14_spill]] %s5676_s2 }
   0x2   :  { %5692 = sst [smem:[#allocation15_spill]] %s5678_s4 }
   0x3   :  { %14 = vsyncpa [#allocation9], 0 }
   0x4   :  { %16 = vsyncpa [#allocation9 + $0x1], 0 }
   0x5   :  { %17 = vsyncpa [#allocation11], 0 }
   0x6   :  { %19 = vsyncpa [#allocation11 + $0x1], 0  ;;  %s4604_s27 = smov 0   ;;  %s4606_s28 = smov 0  }
   0x7   :  { %s4608_s29 = smov 0   ;;  %s4610_s30 = smov 0  }
   0x8 LB: > { %s4625_s9 = sadd.s32 4294967295, %s4543_s30   ;;  %s3430_s10 = sadd.s32 4294967294, %s4543_s30   ;;  %s4543_s30 = sphi %s4610_s30, %s5704_s30   ;;  %s4539_s29 = sphi %s4608_s29, %s5703_s29   ;;  %s4535_s28 = sphi %s4606_s28, %s5702_s28   ;;  %s4531_s27 = sphi %s4604_s27, %s5701_s27  }
   0x9   : > { %s4629_s11 = sadd.s32 1, %s4543_s30   ;;  %s179_s12 = sadd.s32 1, %s4539_s29 }
   0xa   : > { %s176_s13 = ssub.s32 %s4543_s30, %s4629_s11  ;;  %p189_p0 = scmp.ne.s32.totalorder %s4539_s29, %s4535_s28 }
   0xb   : > { %p177_p1 = scmp.eq.s32.totalorder %s176_s13, 0  ;;  %p190_p2 = scmp.eq.s32.totalorder %s4625_s9, 1 }
   0xc   : > { %p195_p3 = scmp.ne.s32.totalorder %s4535_s28, %s4531_s27  ;;  %p196_p4 = scmp.eq.s32.totalorder %s3430_s10, 1 }
   0xd   : > { %s4640_s14 = scalar_select %p177_p1, %s4539_s29, %s179_s12  }
   0xe   : > { %p4642_p5 = por %p190_p2, %p189_p0  ;;  %p4646_p6 = por %p196_p4, %p195_p3 }
   0xf   : > { %p3432_p7 = scmp.ge.s32.totalorder %s4543_s30, 1  ;;  %p261_p8 = scmp.lt.s32.totalorder %s4543_s30, 3 }
  0x11   : > { %p262_p9 = pnand %p3432_p7, %p261_p8 }
  0x12   : > { %s4653_s17 = sand.u32 (!%p262_p9), 1, %s4535_s28   ;;  %p3435_p10 = scmp.ne.s32.totalorder (!%p262_p9), %s4625_s9, 0 }
  0x13   : > { %265 = sbr.rel (%p262_p9) target bundleno = 10805 (0x2a35), region = 48  ;;  %s3433_s18 = sshll.u32 (!%p262_p9), %s4653_s17, 3 }
  0x14   : > { %s4656_s19 = scalar_lea.vmem (!%p262_p9), [#allocation8], %s3433_s18  ;;  %s4658_s20 = scalar_lea.vmem (!%p262_p9), [#allocation10], %s3433_s18 }
  0x1a   : > { %301 = sbr.rel (%p3435_p10) target bundleno = 34 (0x22), region = 52  ;;  %v302_v0 = vlaneseq (!%p3435_p10)  ;;  %s5695_s2 = sld [smem:[#allocation14_spill]] (!%p3435_p10)  ;;  %vm310_vm0 = vcmask (!%p3435_p10), 254976   ;;  %v4545_v2 = vmov (!%p3435_p10), 0.0   ;;  %vm307_vm1 = vcmask (!%p3435_p10), 123904  }
  0x1b   : > { %314 = vst [vmem:[#allocation6] sm:$0x3] (!%p3435_p10), %v4545_v2  ;;  %315 = vst [vmem:[#allocation7] sm:$0x3] (!%p3435_p10), %v4545_v2 }
  0x1c   : > { %312 = vst.msk [vmem:[#allocation4] sm:$0x3] (!%p3435_p10), %vm310_vm0, %v4545_v2  ;;  %313 = vst.msk [vmem:[#allocation5] sm:$0x3] (!%p3435_p10), %vm310_vm0, %v4545_v2  ;;  %v303_v3 = vand.u32 (!%p3435_p10), 127, %v302_v0 }
  0x1e   : > { %vm304_vm2 = vcmp.eq.s32.totalorder (!%p3435_p10), %v303_v3, 14 }
  0x1f   : > { %v3436_v4 = vsel (!%p3435_p10), %vm304_vm2, 1.0, %v4545_v2 }
  0x20   : > { %v309_v1 = vld [vmem:[%s5695_s2] sm:$0x3] (!%p3435_p10)  ;;  %308 = vst.msk [vmem:[#allocation2] sm:$0x3] (!%p3435_p10), %vm307_vm1, %v3436_v4 }
  0x21   : > { %311 = vst.msk [vmem:[#allocation3] sm:$0x3] %vm310_vm0, %v309_v1 }
  0x22 PF: > { %vm326_vm3 = vcmask 123904   ;;  %vm330_vm4 = vcmask 254976   ;;  %v4223_v20 = vld [vmem:[%s5677_s3] sm:$0xff]   ;;  %s4546_s25 = smov 48   ;;  %v4547_v21 = vmov 0.0   ;;  %v4224_v22 = vld [vmem:[%s5677_s3 + $0x8] sm:$0xff]   ;;  %v318_v62 = vlaneseq }
  0x23   : > { %3783 = vmatprep.subr.bf16.mxu0 %v4547_v21  ;;  %3803 = vmatprep.subr.bf16.mxu1 %v4547_v21  ;;  %v4225_v23 = vld [vmem:[%s5677_s3 + $0x10] sm:$0xff]   ;;  %v4226_v24 = vld [vmem:[%s5677_s3 + $0x18] sm:$0xff]   ;;  %v4227_v25 = vld [vmem:[%s5677_s3 + $0x20] sm:$0xff]   ;;  %vm4548_vm5 = vmmov 0   ;;  %s5683_s18 = smov 16   ;;  %vm357_vm6 = vcmask 386176  }
  0x24   : > { %v324_v19 = vld [vmem:[#allocation4] sm:$0x3]  ;;  %3784 = vmatpush3.bf16.msra.mxu0 %v4223_v20  ;;  %v4228_v31 = vld [vmem:[%s5677_s3 + $0x28] sm:$0xff]   ;;  %v4229_v32 = vld [vmem:[%s5677_s3 + $0x30] sm:$0xff]   ;;  %3799 = vmatprep.mubr.msk.bf16.mxu0 %vm4548_vm5, %v4547_v21  ;;  %vm363_vm7 = vcmask 648576   ;;  %s5696_s4 = sld [smem:[#allocation15_spill]] }
  0x25   : > { %3785 = vmatprep.subr.bf16.mxu0 %v4547_v21  ;;  %3807 = vmatprep.mubr.msk.bf16.mxu1 %vm4548_vm5, %v4547_v21  ;;  %v4230_v33 = vld [vmem:[%s5677_s3 + $0x38] sm:$0xff]   ;;  %s5687_s23 = smov 32   ;;  %v325_v48 = vld [vmem:[#allocation5] sm:$0x3]  ;;  %v4232_v61 = vld [vmem:[%s5675_s1 + $0x8] sm:$0xff]   ;;  %v511_v2 = vshrl.u32 %v318_v62, 7 }
  0x26   : > { %v4231_v60 = vld [vmem:[%s5675_s1] sm:$0xff]   ;;  %v4551_v63 = vmov 1966171168   ;;  %s5689_s12 = smov 64   ;;  %vm550_vm8 = vcmask 261120   ;;  %vm656_vm10 = vcmask 1040384  }
  0x27   : > { %3804 = vmatpush3.bf16.msra.mxu1 %v4231_v60  ;;  %v508_v0 = vunpack.c.l.s4 %v4551_v63  ;;  %v4553_v20 = vmov -1e+30   ;;  %v4248_v60 = vld [vmem:[%s5674_s0 + $0x30] sm:$0xff]   ;;  %vm899_vm11 = vcmask 1041409   ;;  %vm955_vm12 = vcmask 517376   ;;  %s5685_s10 = smov 112  }
  0x28   : > { %v322_v5 = vld [vmem:[#allocation2] sm:$0x3]  ;;  %v323_v6 = vld [vmem:[#allocation3] sm:$0x3]  ;;  %3786 = vmatpush3.bf16.msra.mxu0 %v4224_v22  ;;  %3805 = vmatprep.subr.bf16.mxu1 %v4547_v21  ;;  %s5697_s13 = smov 16   ;;  %s5699_s21 = smov 112  }
  0x29   : > { %v327_v7 = vsel %vm326_vm3, %v322_v5, 0.0  ;;  %v331_v8 = vsel %vm330_vm4, %v323_v6, 0.0  ;;  %3787 = vmatprep.subr.bf16.mxu0 %v4547_v21  ;;  %v509_v1 = vunpack.c.0.s8 %v508_v0  ;;  %s5700_s26 = smov 64   ;;  %s4555_s22 = smov 96  }
  0x2a   : > { %328 = vadd.xlane.f32.xlu0 %v327_v7  ;;  %v4715_v41 = vld [vmem:[%s5696_s4] ss:$0 sm:$0xff] }
  0x2b   : > { %3806 = vmatpush3.bf16.msra.mxu1 %v4232_v61  ;;  %v4249_v61 = vld [vmem:[%s5674_s0 + $0x78] sm:$0xff]  }
  0x2c   : > { %3788 = vmatpush3.bf16.msra.mxu0 %v4225_v23  ;;  %3811 = vmatprep.subr.bf16.mxu1 %v4547_v21 }
  0x2d   : > { %3789 = vmatprep.subr.bf16.mxu0 %v4547_v21 }
  0x2e   : > { %332 = vadd.xlane.f32.xlu0 %v331_v8 }
  0x30   : > { %3790 = vmatpush3.bf16.msra.mxu0 %v4226_v24 }
  0x31   : > { %3791 = vmatprep.subr.bf16.mxu0 %v4547_v21 }
  0x34   : > { %3792 = vmatpush3.bf16.msra.mxu0 %v4227_v25 }
  0x35   : > { %3793 = vmatprep.subr.bf16.mxu0 %v4547_v21 }
  0x38   : > { %3794 = vmatpush3.bf16.msra.mxu0 %v4228_v31 }
  0x39   : > { %3795 = vmatprep.subr.bf16.mxu0 %v4547_v21 }
  0x3c   : > { %3796 = vmatpush3.bf16.msra.mxu0 %v4229_v32 }
  0x3d   : > { %3797 = vmatprep.subr.bf16.mxu0 %v4547_v21 }
  0x40   : > { %3798 = vmatpush3.bf16.msra.mxu0 %v4230_v33 }
  0x41   : > { %3839 = vmatprep.subr.bf16.mxu0 %v4547_v21 }
  0xb7   : > { %v329_v9 = vpop.xlane.xlu0 %328 }
  0xbb   : > { %v333_v10 = vpop.xlane.xlu0 %332 }
  0xbc   : > { %v334_v11 = vadd.f32 %v333_v10, %v329_v9  ;;  %v4741_v9 = vsub.s32 0, %v511_v2 }
  0xbe   : > { %v335_v12 = vmul.f32 0.020833334, %v334_v11 }
  0xc0   : > { %v336_v13 = vsub.f32 %v322_v5, %v335_v12  ;;  %v337_v14 = vsub.f32 %v323_v6, %v335_v12  ;;  %v4735_v5 = vsub.s32 %v509_v1, %v511_v2 }
  0xc2   : > { %v338_v15 = vmul.f32 %v336_v13, %v336_v13  ;;  %v342_v17 = vmul.f32 %v337_v14, %v337_v14 }
  0xc4   : > { %v339_v16 = vsel %vm326_vm3, %v338_v15, 0.0  ;;  %v343_v18 = vsel %vm330_vm4, %v342_v17, 0.0  ;;  %v4233_v15 = vld [vmem:[%s5675_s1 + $0x10] sm:$0xff]   ;;  %v4234_v17 = vld [vmem:[%s5675_s1 + $0x18] sm:$0xff]  }
  0xc5   : > { %340 = vadd.xlane.f32.xlu1 %v339_v16 }
  0xc9   : > { %344 = vadd.xlane.f32.xlu1 %v343_v18 }
  0xda   : > { %360 = vrot.lane.b32.xlu1 %v324_v19, %s4546_s25  ;;  %v319_v19 = vand.u32 127, %v318_v62  ;;  %v4250_v62 = vld [vmem:[%s5674_s0 + $0x38] sm:$0xff]   ;;  %s4556_s25 = smov [#allocation10]  }
  0xdc   : > { %vm320_vm9 = vcmp.lt.s32.totalorder %v319_v19, 16 }
  0xdd   : > { %v4761_v22 = vsel %vm320_vm9, 0.0, %v4553_v20 }
 0x152   : > { %v341_v26 = vpop.xlane.xlu1 %340 }
 0x156   : > { %v345_v27 = vpop.xlane.xlu1 %344 }
 0x157   : > { %v346_v28 = vadd.f32 %v345_v27, %v341_v26 }
 0x159   : > { %v347_v29 = vmul.f32 0.020833334, %v346_v28 }
 0x15a   : > { %v361_v37 = vpop.permute.xlu1 %360 }
 0x15b   : > { %v348_v30 = vadd.f32 1e-05, %v347_v29 }
 0x15d   : > { %4367 = vrsqrt.f32 %v348_v30 }
 0x167   : > { %v4368_v34 = vpop.eup %4367 }
 0x168   : > { %v352_v35 = vmul.f32 %v4368_v34, %v337_v14  ;;  %v350_v36 = vmul.f32 %v4368_v34, %v336_v13 }
 0x16a   : > { %354 = vrot.lane.b32.xlu0 %v352_v35, %s5683_s18  ;;  %351 = vst.msk [vmem:[#allocation6] sm:$0x3] %vm326_vm3, %v350_v36  ;;  %v4235_v35 = vld [vmem:[%s5674_s0 + $0x40] sm:$0xff]   ;;  %s4453_s18 = sshll.u32 %s4556_s25, 4  ;;  %s4454_s18 = int_to_ptr.vmem [resolvable:$false] %s4453_s18 }
 0x16b   : > { %v4236_v36 = vld [vmem:[%s5674_s0] sm:$0xff]  }
 0x1dc   : > { %v355_v38 = vpop.permute.xlu0 %354 }
 0x1dd   : > { %358 = vst.msk [vmem:[#allocation6] sm:$0x3] %vm357_vm6, %v355_v38  ;;  %v4238_v38 = vld [vmem:[%s5674_s0 + $0x8] sm:$0xff]  }
 0x1de   : > { %364 = vst.msk [vmem:[#allocation6] sm:$0x3] %vm363_vm7, %v361_v37  ;;  %v4237_v37 = vld [vmem:[%s5674_s0 + $0x48] sm:$0xff]  }
 0x1e5   : > { %v365_v39 = vld [vmem:[#allocation6] sm:$0x3] }
 0x1e6   : > { %v366_v40 = vpack.c.bf16 %v365_v39, %v365_v39  ;;  %v4239_v39 = vld [vmem:[%s5674_s0 + $0x50] sm:$0xff]  }
 0x1e8   : > { %3800 = vmatmul.mubr.bf16.vlgmr.msra.gmra.mrb[0].mxu0 %v366_v40  ;;  %v4240_v40 = vld [vmem:[%s5674_s0 + $0x10] sm:$0xff]  }
 0x1e9   : > { %3855 = vmatprep.mubr.msk.bf16.mxu0 %vm4548_vm5, %v4547_v21  ;;  %3840 = vmatpush3.bf16.msra.mxu0 %v4235_v35 }
 0x1ea   : > { %3841 = vmatprep.subr.bf16.mxu0 %v4547_v21 }
 0x1ed   : > { %3842 = vmatpush3.bf16.msra.mxu0 %v4237_v37 }
 0x1ee   : > { %3843 = vmatprep.subr.bf16.mxu0 %v4547_v21 }
 0x1f1   : > { %3844 = vmatpush3.bf16.msra.mxu0 %v4239_v39 }
 0x1f2   : > { %3845 = vmatprep.subr.bf16.mxu0 %v4547_v21 }
 0x2bb   : > { %v471_v42 = vpop.f32.mrb[0].mxu0 }
 0x2bc   : > { %v472_v43 = vadd.f32 %v4715_v41, %v471_v42  ;;  %v3801_v44 = vpop.f32.mrb[1].mxu0  ;;  %v4241_v42 = vld [vmem:[%s5674_s0 + $0x58] sm:$0xff]  }
 0x2bd   : > { %v474_v45 = vpop.f32.mrb[2].mxu0  ;;  %3846 = vmatpush3.bf16.msra.mxu0 %v4241_v42 }
 0x2be   : > { %4369 = vtanh.f32 %v472_v43  ;;  %v3802_v46 = vpop.f32.mrb[3].mxu0  ;;  %v3446_v49 = vmul.f32 -1.442695, %v472_v43  ;;  %3847 = vmatprep.subr.bf16.mxu0 %v4547_v21 }
 0x2c0   : > { %4371 = vpow2.f32 %v3446_v49 }
 0x2c8   : > { %v4370_v47 = vpop.eup %4369 }
 0x2c9   : > { %490 = vrot.lane.b32.xlu1 %v4370_v47, %s5687_s23 }
 0x2ca   : > { %v4372_v50 = vpop.eup %4371 }
 0x2cb   : > { %v480_v51 = vadd.f32 1.0, %v4372_v50 }
 0x2cd   : > { %485 = vrot.lane.b32.xlu1 %v325_v48, %s5687_s23  ;;  %4373 = vrcp.f32 %v480_v51 }
 0x2d7   : > { %v4374_v52 = vpop.eup %4373 }
 0x33b   : > { %v491_v53 = vpop.permute.xlu1 %490 }
 0x33c   : > { %v493_v54 = vmul.f32 %v4374_v52, %v491_v53  ;;  %v4242_v53 = vld [vmem:[%s5674_s0 + $0x18] sm:$0xff]  }
 0x33e   : > { %495 = vrot.lane.b32.xlu0 %v493_v54, %s5687_s23  ;;  %v4243_v54 = vld [vmem:[%s5674_s0 + $0x60] sm:$0xff]  }
 0x33f   : > { %v486_v55 = vpop.permute.xlu1 %485  ;;  %3848 = vmatpush3.bf16.msra.mxu0 %v4243_v54  ;;  %v4256_v54 = vld [vmem:[%s5679_s5 + $0x28] sm:$0xff]  }
 0x340   : > { %v488_v56 = vmul.f32 %v4374_v52, %v486_v55  ;;  %3849 = vmatprep.subr.bf16.mxu0 %v4547_v21  ;;  %v4244_v55 = vld [vmem:[%s5674_s0 + $0x20] sm:$0xff]  }
 0x3b0   : > { %v496_v57 = vpop.permute.xlu0 %495 }
 0x3b1   : > { %v4721_v58 = vadd.f32 %v496_v57, %v488_v56  ;;  %v4245_v56 = vld [vmem:[%s5674_s0 + $0x68] sm:$0xff]  }
 0x3b2   : > { %3850 = vmatpush3.bf16.msra.mxu0 %v4245_v56  ;;  %v4246_v57 = vld [vmem:[%s5674_s0 + $0x28] sm:$0xff]   ;;  %v4258_v56 = vld [vmem:[%s5679_s5 + $0x38] sm:$0xff]  }
 0x3b3   : > { %4375 = vtanh.f32 %v4721_v58  ;;  %3851 = vmatprep.subr.bf16.mxu0 %v4547_v21 }
 0x3bd   : > { %v4376_v59 = vpop.eup %4375 }
 0x3be   : > { %501 = vrot.lane.b32.xlu1 %v4376_v59, %s5687_s23  ;;  %v4247_v59 = vld [vmem:[%s5674_s0 + $0x70] sm:$0xff]  }
 0x3bf   : > { %3852 = vmatpush3.bf16.msra.mxu0 %v4247_v59 }
 0x3c0   : > { %3853 = vmatprep.subr.bf16.mxu0 %v4547_v21 }
 0x3c3   : > { %3854 = vmatpush3.bf16.msra.mxu0 %v4249_v61 }
 0x3c4   : > { %3879 = vmatprep.subr.bf16.mxu0 %v4547_v21 }
 0x430   : > { %v502_v3 = vpop.permute.xlu1 %501 }
 0x431   : > { %v4733_v4 = vmul.f32 %v4374_v52, %v502_v3 }
 0x433   : > { %v505_v6 = vpack.c.bf16 %v4733_v4, %v4733_v4 }
 0x435   : > { %v513_v7 = vrot.slane %v505_v6, %v4735_v5 }
 0x437   : > { %v520_v8 = vrot.slane %v513_v7, %v4735_v5 }
 0x439   : > { %v3447_v10 = vpack.i.b16 %v520_v8, %v520_v8  ;;  %v522_v11 = vunpack.i.h.s16 %v520_v8 }
 0x43b   : > { %v535_v12 = vrot.slane %v3447_v10, %v4741_v9  ;;  %v594_v13 = vpack.i.b16 %v522_v11, %v522_v11 }
 0x43d   : > { %536 = vrot.lane.b32.xlu0 %v535_v12, %s5689_s12  ;;  %v598_v14 = vrot.slane %v594_v13, %v4741_v9 }
 0x43f   : > { %599 = vrot.lane.b32.xlu1 %v598_v14, %s5689_s12 }
 0x4af   : > { %v537_v16 = vpop.permute.xlu0 %536 }
 0x4b0   : > { %3808 = vmatmul.mubr.msk.bf16.vlgmr.msra.gmra.mrb[0].mxu1 %vm550_vm8, %v537_v16 }
 0x4b1   : > { %3812 = vmatpush3.bf16.msra.mxu1 %v4233_v15  ;;  %3815 = vmatprep.mubr.msk.bf16.mxu1 %vm4548_vm5, %v4547_v21  ;;  %v600_v18 = vpop.permute.xlu1 %599 }
 0x4b2   : > { %3813 = vmatprep.subr.bf16.mxu1 %v4547_v21 }
 0x4b5   : > { %3814 = vmatpush3.bf16.msra.mxu1 %v4234_v17 }
 0x4b6   : > { %3819 = vmatprep.subr.bf16.mxu1 %v4547_v21 }
 0x4b8   : > { %3816 = vmatmul.mubr.msk.bf16.vlgmr.msra.gmra.mrb[4].mxu1 %vm550_vm8, %v600_v18 }
 0x4b9   : > { %3835 = vmatprep.mubr.msk.bf16.mxu1 %vm4548_vm5, %v4547_v21  ;;  %3820 = vmatpush3.bf16.msra.mxu1 %v4236_v36 }
 0x4ba   : > { %3821 = vmatprep.subr.bf16.mxu1 %v4547_v21 }
 0x4bd   : > { %3822 = vmatpush3.bf16.msra.mxu1 %v4238_v38 }
 0x4be   : > { %3823 = vmatprep.subr.bf16.mxu1 %v4547_v21 }
 0x4c1   : > { %3824 = vmatpush3.bf16.msra.mxu1 %v4240_v40 }
 0x4c2   : > { %3825 = vmatprep.subr.bf16.mxu1 %v4547_v21 }
 0x4c5   : > { %3826 = vmatpush3.bf16.msra.mxu1 %v4242_v53  ;;  %v4255_v53 = vld [vmem:[%s5679_s5 + $0x20] sm:$0xff]  }
 0x4c6   : > { %3827 = vmatprep.subr.bf16.mxu1 %v4547_v21 }
 0x4c9   : > { %3828 = vmatpush3.bf16.msra.mxu1 %v4244_v55  ;;  %v4257_v55 = vld [vmem:[%s5679_s5 + $0x30] sm:$0xff]  }
 0x4ca   : > { %3829 = vmatprep.subr.bf16.mxu1 %v4547_v21 }
 0x4cd   : > { %3830 = vmatpush3.bf16.msra.mxu1 %v4246_v57 }
 0x4ce   : > { %3831 = vmatprep.subr.bf16.mxu1 %v4547_v21 }
 0x4d1   : > { %3832 = vmatpush3.bf16.msra.mxu1 %v4248_v60 }
 0x4d2   : > { %3833 = vmatprep.subr.bf16.mxu1 %v4547_v21 }
 0x4d5   : > { %3834 = vmatpush3.bf16.msra.mxu1 %v4250_v62 }
 0x4d6   : > { %3859 = vmatprep.subr.bf16.mxu1 %v4547_v21 }
 0x583   : > { %v588_v23 = vpop.f32.mrb[0].mxu1 }
 0x584   : > { %v589_v24 = vadd.f32 %v588_v23, %v4761_v22  ;;  %v3809_v25 = vpop.f32.mrb[1].mxu1 }
 0x585   : > { %v591_v26 = vpop.f32.mrb[2].mxu1 }
 0x586   : > { %v3810_v27 = vpop.f32.mrb[3].mxu1  ;;  %v657_v28 = vsel %vm656_vm10, %v589_v24, -inf }
 0x587   : > { %658 = vmax.xlane.f32.xlu1 %v657_v28 }
 0x58b   : > { %v650_v29 = vpop.f32.mrb[4].mxu1 }
 0x58c   : > { %v651_v30 = vadd.f32 %v650_v29, %v4761_v22  ;;  %v3817_v31 = vpop.f32.mrb[5].mxu1 }
 0x58d   : > { %v653_v32 = vpop.f32.mrb[6].mxu1 }
 0x58e   : > { %v3818_v33 = vpop.f32.mrb[7].mxu1  ;;  %v660_v34 = vsel %vm656_vm10, %v651_v30, -inf }
 0x58f   : > { %661 = vmax.xlane.f32.xlu0 %v660_v34 }
 0x614   : > { %v659_v43 = vpop.xlane.xlu1 %658 }
 0x615   : > { %v663_v44 = vsub.f32 %v589_v24, %v659_v43 }
 0x617   : > { %v665_v47 = vmul.f32 1.442695, %v663_v44  ;;  %v4251_v44 = vld [vmem:[%s5679_s5] sm:$0xff]  }
 0x61c   : > { %v662_v45 = vpop.xlane.xlu0 %661 }
 0x61d   : > { %v664_v46 = vsub.f32 %v651_v30, %v662_v45  ;;  %v4252_v45 = vld [vmem:[%s5679_s5 + $0x8] sm:$0xff]  }
 0x61f   : > { %v667_v48 = vmul.f32 1.442695, %v664_v46  ;;  %v4253_v46 = vld [vmem:[%s5679_s5 + $0x10] sm:$0xff]  }
 0x621   : > { %4377 = vpow2.f32 %v667_v48 }
 0x622   : > { %4379 = vpow2.f32 %v665_v47  ;;  %v4254_v47 = vld [vmem:[%s5679_s5 + $0x18] sm:$0xff]  }
 0x62b   : > { %v4378_v49 = vpop.eup %4377 }
 0x62c   : > { %v672_v50 = vsel %vm656_vm10, %v4378_v49, 0.0  ;;  %v4380_v51 = vpop.eup %4379 }
 0x62d   : > { %673 = vadd.xlane.f32.xlu0 %v672_v50  ;;  %v669_v52 = vsel %vm656_vm10, %v4380_v51, 0.0 }
 0x631   : > { %670 = vadd.xlane.f32.xlu0 %v669_v52 }
 0x647   : > { %890 = vrot.lane.b32.xlu0 %v4733_v4, %s5689_s12 }
 0x6ba   : > { %v674_v63 = vpop.xlane.xlu0 %673 }
 0x6bb   : > { %4381 = vrcp.f32 %v674_v63 }
 0x6be   : > { %v671_v0 = vpop.xlane.xlu0 %670 }
 0x6bf   : > { %4383 = vrcp.f32 %v671_v0 }
 0x6c2   : > { %v891_v1 = vpop.permute.xlu0 %890 }
 0x6c3   : > { %v893_v2 = vsel %vm330_vm4, %v891_v1, 0.0 }
 0x6c4   : > { %894 = vadd.xlane.f32.xlu1 %v893_v2 }
 0x6c5   : > { %v4382_v3 = vpop.eup %4381 }
 0x6c6   : > { %v678_v6 = vmul.f32 %v4382_v3, %v4378_v49 }
 0x6c8   : > { %v680_v7 = vpack.c.bf16 %v678_v6, %v678_v6  ;;  %v1072_v10 = vrot.slane %v678_v6, 7 }
 0x6c9   : > { %v4384_v8 = vpop.eup %4383 }
 0x6ca   : > { %3856 = vmatmul.mubr.bf16.vlgmr.msra.gmra.mrb[4].mxu0 %v680_v7  ;;  %v676_v11 = vmul.f32 %v4384_v8, %v4380_v51  ;;  %v4902_v7 = vld [vmem:[%s5680_s6] ss:$0 sm:$0xff] }
 0x6cb   : > { %3895 = vmatprep.mubr.msk.bf16.mxu0 %vm4548_vm5, %v4547_v21 }
 0x6cc   : > { %v679_v12 = vpack.c.bf16 %v676_v11, %v676_v11  ;;  %v1073_v13 = vsel %vm899_vm11, %v1072_v10, %v676_v11 }
 0x6cd   : > { %1075 = vst [vmem:[%s4658_s20] sm:$0x3] %v1073_v13 }
 0x6ce   : > { %3836 = vmatmul.mubr.bf16.vlgmr.msra.gmra.mrb[8].mxu1 %v679_v12 }
 0x6cf   : > { %3875 = vmatprep.mubr.msk.bf16.mxu1 %vm4548_vm5, %v4547_v21  ;;  %3860 = vmatpush3.bf16.msra.mxu1 %v4251_v44 }
 0x6d0   : > { %3861 = vmatprep.subr.bf16.mxu1 %v4547_v21 }
 0x6d3   : > { %3862 = vmatpush3.bf16.msra.mxu1 %v4252_v45 }
 0x6d4   : > { %3863 = vmatprep.subr.bf16.mxu1 %v4547_v21 }
 0x6d7   : > { %3864 = vmatpush3.bf16.msra.mxu1 %v4253_v46 }
 0x6d8   : > { %3865 = vmatprep.subr.bf16.mxu1 %v4547_v21 }
 0x6db   : > { %3866 = vmatpush3.bf16.msra.mxu1 %v4254_v47 }
 0x6dc   : > { %3867 = vmatprep.subr.bf16.mxu1 %v4547_v21 }
 0x6df   : > { %3868 = vmatpush3.bf16.msra.mxu1 %v4255_v53 }
 0x6e0   : > { %3869 = vmatprep.subr.bf16.mxu1 %v4547_v21 }
 0x6e3   : > { %3870 = vmatpush3.bf16.msra.mxu1 %v4256_v54 }
 0x6e4   : > { %3871 = vmatprep.subr.bf16.mxu1 %v4547_v21 }
 0x6e7   : > { %3872 = vmatpush3.bf16.msra.mxu1 %v4257_v55 }
 0x6e8   : > { %3873 = vmatprep.subr.bf16.mxu1 %v4547_v21 }
 0x6eb   : > { %3874 = vmatpush3.bf16.msra.mxu1 %v4258_v56 }
 0x6ec   : > { %3899 = vmatprep.subr.bf16.mxu1 %v4547_v21 }
 0x751   : > { %v895_v27 = vpop.xlane.xlu1 %894 }
 0x79d   : > { %v4842_v14 = vpop.f32.mrb[4].mxu0 }
 0x79e   : > { %v3857_v15 = vpop.f32.mrb[5].mxu0  ;;  %v898_v17 = vrot.slane %v4842_v14, 7 }
 0x79f   : > { %v886_v16 = vpop.f32.mrb[6].mxu0 }
 0x7a0   : > { %v3858_v18 = vpop.f32.mrb[7].mxu0 }
 0x7a1   : > { %v4845_v19 = vpop.f32.mrb[8].mxu1 }
 0x7a2   : > { %v3837_v20 = vpop.f32.mrb[9].mxu1  ;;  %v900_v23 = vsel %vm899_vm11, %v898_v17, %v4845_v19 }
 0x7a3   : > { %v798_v24 = vpop.f32.mrb[10].mxu1  ;;  %v902_v25 = vsel %vm330_vm4, %v900_v23, 0.0 }
 0x7a4   : > { %v3838_v26 = vpop.f32.mrb[11].mxu1  ;;  %903 = vadd.xlane.f32.xlu1 %v902_v25 }
 0x831   : > { %v4850_v28 = vpop.xlane.xlu1 %903 }
 0x832   : > { %v905_v29 = vadd.f32 %v4850_v28, %v895_v27 }
 0x834   : > { %v906_v30 = vmul.f32 0.015625, %v905_v29 }
 0x836   : > { %v907_v31 = vsub.f32 %v4733_v4, %v906_v30  ;;  %v909_v33 = vrot.slane %v906_v30, 1  ;;  %v912_v36 = vsub.f32 %v4845_v19, %v906_v30 }
 0x838   : > { %v914_v32 = vmul.f32 %v907_v31, %v907_v31  ;;  %v913_v34 = vsub.f32 %v4842_v14, %v909_v33  ;;  %v922_v38 = vmul.f32 %v912_v36, %v912_v36 }
 0x83a   : > { %916 = vrot.lane.b32.xlu1 %v914_v32, %s5689_s12  ;;  %v923_v35 = vmul.f32 %v913_v34, %v913_v34 }
 0x83c   : > { %v926_v37 = vrot.slane %v923_v35, 7 }
 0x83e   : > { %v927_v39 = vsel %vm899_vm11, %v926_v37, %v922_v38 }
 0x83f   : > { %v929_v40 = vsel %vm330_vm4, %v927_v39, 0.0 }
 0x85e   : > { %930 = vadd.xlane.f32.xlu1 %v929_v40  ;;  %v4264_v40 = vld [vmem:[%s5677_s3 + $0x28] sm:$0xff]  }
 0x8ac   : > { %v917_v42 = vpop.permute.xlu1 %916 }
 0x8ad   : > { %v919_v43 = vsel %vm330_vm4, %v917_v42, 0.0  ;;  %v4265_v42 = vld [vmem:[%s5677_s3 + $0x30] sm:$0xff]  }
 0x8ae   : > { %920 = vadd.xlane.f32.xlu0 %v919_v43  ;;  %v4266_v43 = vld [vmem:[%s5677_s3 + $0x38] sm:$0xff]  }
 0x8eb   : > { %v931_v48 = vpop.xlane.xlu1 %930 }
 0x93b   : > { %v921_v49 = vpop.xlane.xlu0 %920 }
 0x93c   : > { %v932_v50 = vadd.f32 %v931_v48, %v921_v49 }
 0x93e   : > { %v933_v51 = vmul.f32 0.015625, %v932_v50 }
 0x940   : > { %v934_v52 = vadd.f32 1e-05, %v933_v51 }
 0x942   : > { %4385 = vrsqrt.f32 %v934_v52 }
 0x94c   : > { %v4386_v57 = vpop.eup %4385 }
 0x94d   : > { %v936_v59 = vmul.f32 %v4386_v57, %v907_v31  ;;  %v943_v60 = vrot.slane %v4386_v57, 1  ;;  %v946_v62 = vmul.f32 %v4386_v57, %v912_v36 }
 0x94f   : > { %938 = vrot.lane.b32.xlu0 %v936_v59, %s5689_s12  ;;  %v947_v61 = vmul.f32 %v943_v60, %v913_v34  ;;  %v4263_v34 = vld [vmem:[%s5677_s3 + $0x20] sm:$0xff]  }
 0x951   : > { %v950_v63 = vrot.slane %v947_v61, 7 }
 0x953   : > { %v951_v0 = vsel %vm899_vm11, %v950_v63, %v946_v62 }
 0x954   : > { %952 = vrot.lane.b32.xlu1 %v951_v0, %s5687_s23 }
 0x9c1   : > { %v939_v1 = vpop.permute.xlu0 %938 }
 0x9c2   : > { %941 = vst.msk [vmem:[#allocation7] sm:$0x3] %vm330_vm4, %v939_v1 }
 0x9c6   : > { %v953_v2 = vpop.permute.xlu1 %952 }
 0x9c7   : > { %956 = vst.msk [vmem:[#allocation7] sm:$0x3] %vm955_vm12, %v953_v2 }
 0x9ce   : > { %v957_v3 = vld [vmem:[#allocation7] sm:$0x3] }
 0x9cf   : > { %v958_v6 = vpack.c.bf16 %v957_v3, %v957_v3 }
 0x9d1   : > { %3876 = vmatmul.mubr.bf16.vlgmr.msra.gmra.mrb[12].mxu1 %v958_v6 }
 0x9d2   : > { %3903 = vmatprep.mubr.msk.bf16.mxu1 %vm4548_vm5, %v4547_v21 }
 0xaa4   : > { %v1063_v8 = vpop.f32.mrb[12].mxu1 }
 0xaa5   : > { %v1064_v10 = vadd.f32 %v4902_v7, %v1063_v8  ;;  %v3877_v11 = vpop.f32.mrb[13].mxu1 }
 0xaa6   : > { %v1066_v12 = vpop.f32.mrb[14].mxu1  ;;  %v4267_v11 = vld [vmem:[%s5675_s1] sm:$0xff]  }
 0xaa7   : > { %1069 = vst [vmem:[%s4656_s19] sm:$0x3] %v1064_v10  ;;  %v3878_v13 = vpop.f32.mrb[15].mxu1  ;;  %v1076_v15 = vsel %vm326_vm3, %v1064_v10, 0.0  ;;  %3900 = vmatpush3.bf16.msra.mxu1 %v4267_v11  ;;  %v4268_v12 = vld [vmem:[%s5675_s1 + $0x8] sm:$0xff]  }
 0xaa8   : > { %1077 = vadd.xlane.f32.xlu0 %v1076_v15  ;;  %3901 = vmatprep.subr.bf16.mxu1 %v4547_v21 }
 0xaab   : > { %3902 = vmatpush3.bf16.msra.mxu1 %v4268_v12 }
 0xaac   : > { %3907 = vmatprep.subr.bf16.mxu1 %v4547_v21 }
 0xb35   : > { %v1078_v16 = vpop.xlane.xlu0 %1077 }
 0xb36   : > { %v1079_v17 = vadd.f32 %v1078_v16, %v4850_v28  ;;  %v4261_v28 = vld [vmem:[%s5677_s3 + $0x10] sm:$0xff]  }
 0xb38   : > { %v1080_v18 = vmul.f32 0.020833334, %v1079_v17 }
 0xb3a   : > { %v1083_v20 = vrot.slane %v1080_v18, 1  ;;  %v1081_v23 = vsub.f32 %v1064_v10, %v1080_v18  ;;  %v1086_v24 = vsub.f32 %v4845_v19, %v1080_v18  ;;  %v4260_v19 = vld [vmem:[%s5677_s3 + $0x8] sm:$0xff]  }
 0xb3c   : > { %v1087_v25 = vsub.f32 %v4842_v14, %v1083_v20  ;;  %v1088_v26 = vmul.f32 %v1081_v23, %v1081_v23  ;;  %v1092_v30 = vmul.f32 %v1086_v24, %v1086_v24  ;;  %v4259_v14 = vld [vmem:[%s5677_s3] sm:$0xff]  }
 0xb3d   : > { %3880 = vmatpush3.bf16.msra.mxu0 %v4259_v14 }
 0xb3e   : > { %v1089_v27 = vsel %vm326_vm3, %v1088_v26, 0.0  ;;  %v1093_v29 = vmul.f32 %v1087_v25, %v1087_v25  ;;  %3881 = vmatprep.subr.bf16.mxu0 %v4547_v21  ;;  %v4269_v26 = vld [vmem:[%s5675_s1 + $0x10] sm:$0xff]  }
 0xb3f   : > { %1090 = vadd.xlane.f32.xlu1 %v1089_v27 }
 0xb40   : > { %v1096_v31 = vrot.slane %v1093_v29, 7  ;;  %v4270_v29 = vld [vmem:[%s5675_s1 + $0x18] sm:$0xff]  }
 0xb41   : > { %3882 = vmatpush3.bf16.msra.mxu0 %v4260_v19 }
 0xb42   : > { %v1097_v32 = vsel %vm899_vm11, %v1096_v31, %v1092_v30  ;;  %3883 = vmatprep.subr.bf16.mxu0 %v4547_v21 }
 0xb43   : > { %v1099_v33 = vsel %vm330_vm4, %v1097_v32, 0.0 }
 0xb44   : > { %1100 = vadd.xlane.f32.xlu0 %v1099_v33 }
 0xb45   : > { %3884 = vmatpush3.bf16.msra.mxu0 %v4261_v28 }
 0xb46   : > { %3885 = vmatprep.subr.bf16.mxu0 %v4547_v21 }
 0xb50   : > { %1122 = vrot.lane.b32.xlu1 %v4733_v4, %s5685_s10  ;;  %v4262_v4 = vld [vmem:[%s5677_s3 + $0x18] sm:$0xff]   ;;  %s5698_s10 = smov 32  }
 0xb51   : > { %3886 = vmatpush3.bf16.msra.mxu0 %v4262_v4 }
 0xb52   : > { %3887 = vmatprep.subr.bf16.mxu0 %v4547_v21 }
 0xb55   : > { %3888 = vmatpush3.bf16.msra.mxu0 %v4263_v34 }
 0xb56   : > { %3889 = vmatprep.subr.bf16.mxu0 %v4547_v21 }
 0xb59   : > { %3890 = vmatpush3.bf16.msra.mxu0 %v4264_v40  ;;  %v4272_v40 = vld [vmem:[%s5674_s0] sm:$0xff]  }
 0xb5a   : > { %3891 = vmatprep.subr.bf16.mxu0 %v4547_v21 }
 0xb5d   : > { %3892 = vmatpush3.bf16.msra.mxu0 %v4265_v42  ;;  %v4273_v42 = vld [vmem:[%s5674_s0 + $0x48] sm:$0xff]  }
 0xb5e   : > { %3893 = vmatprep.subr.bf16.mxu0 %v4547_v21 }
 0xb61   : > { %3894 = vmatpush3.bf16.msra.mxu0 %v4266_v43  ;;  %v4274_v43 = vld [vmem:[%s5674_s0 + $0x8] sm:$0xff]  }
 0xb62   : > { %3915 = vmatprep.subr.bf16.mxu0 %v4547_v21 }
 0xbcc   : > { %v1091_v35 = vpop.xlane.xlu1 %1090 }
 0xbd0   : > { %v1123_v52 = vpop.permute.xlu1 %1122 }
 0xbd1   : > { %v1101_v36 = vpop.xlane.xlu0 %1100 }
 0xbd2   : > { %v1102_v37 = vadd.f32 %v1101_v36, %v1091_v35 }
 0xbd4   : > { %v1103_v38 = vmul.f32 0.020833334, %v1102_v37 }
 0xbd6   : > { %v1104_v39 = vadd.f32 1e-05, %v1103_v38 }
 0xbd8   : > { %4387 = vrsqrt.f32 %v1104_v39  ;;  %v4271_v39 = vld [vmem:[%s5674_s0 + $0x40] sm:$0xff]  }
 0xbe2   : > { %v4388_v44 = vpop.eup %4387 }
 0xbe3   : > { %v1109_v45 = vrot.slane %v4388_v44, 1  ;;  %v1106_v46 = vmul.f32 %v4388_v44, %v1081_v23  ;;  %v1112_v48 = vmul.f32 %v4388_v44, %v1086_v24  ;;  %v4275_v44 = vld [vmem:[%s5674_s0 + $0x50] sm:$0xff]  }
 0xbe5   : > { %v1113_v47 = vmul.f32 %v1109_v45, %v1087_v25  ;;  %1107 = vst.msk [vmem:[#allocation6] sm:$0x3] %vm326_vm3, %v1106_v46  ;;  %v4276_v45 = vld [vmem:[%s5674_s0 + $0x10] sm:$0xff]   ;;  %v4277_v46 = vld [vmem:[%s5674_s0 + $0x58] sm:$0xff]  }
 0xbe7   : > { %v1116_v49 = vrot.slane %v1113_v47, 7 }
 0xbe9   : > { %v1117_v50 = vsel %vm899_vm11, %v1116_v49, %v1112_v48 }
 0xbea   : > { %1118 = vrot.lane.b32.xlu0 %v1117_v50, %s5697_s13 }
 0xc5c   : > { %v1119_v51 = vpop.permute.xlu0 %1118 }
 0xc5d   : > { %1121 = vst.msk [vmem:[#allocation6] sm:$0x3] %vm357_vm6, %v1119_v51 }
 0xc5e   : > { %1125 = vst.msk [vmem:[#allocation6] sm:$0x3] %vm363_vm7, %v1123_v52 }
 0xc65   : > { %v1126_v53 = vld [vmem:[#allocation6] sm:$0x3] }
 0xc66   : > { %v1127_v54 = vpack.c.bf16 %v1126_v53, %v1126_v53 }
 0xc68   : > { %3896 = vmatmul.mubr.bf16.vlgmr.msra.gmra.mrb[8].mxu0 %v1127_v54 }
 0xc69   : > { %3931 = vmatprep.mubr.msk.bf16.mxu0 %vm4548_vm5, %v4547_v21  ;;  %3916 = vmatpush3.bf16.msra.mxu0 %v4272_v40 }
 0xc6a   : > { %3917 = vmatprep.subr.bf16.mxu0 %v4547_v21 }
 0xc6d   : > { %3918 = vmatpush3.bf16.msra.mxu0 %v4274_v43 }
 0xc6e   : > { %3919 = vmatprep.subr.bf16.mxu0 %v4547_v21 }
 0xc71   : > { %3920 = vmatpush3.bf16.msra.mxu0 %v4276_v45 }
 0xc72   : > { %3921 = vmatprep.subr.bf16.mxu0 %v4547_v21 }
 0xd3b   : > { %v1226_v55 = vpop.f32.mrb[8].mxu0 }
 0xd3c   : > { %v1227_v56 = vadd.f32 %v4715_v41, %v1226_v55  ;;  %v3897_v57 = vpop.f32.mrb[9].mxu0 }
 0xd3d   : > { %v1229_v59 = vpop.f32.mrb[10].mxu0  ;;  %v4278_v57 = vld [vmem:[%s5674_s0 + $0x18] sm:$0xff]  }
 0xd3e   : > { %4389 = vtanh.f32 %v1227_v56  ;;  %v3898_v60 = vpop.f32.mrb[11].mxu0  ;;  %v3487_v62 = vmul.f32 -1.442695, %v1227_v56  ;;  %v4279_v59 = vld [vmem:[%s5674_s0 + $0x60] sm:$0xff]   ;;  %3922 = vmatpush3.bf16.msra.mxu0 %v4278_v57 }
 0xd3f   : > { %3923 = vmatprep.subr.bf16.mxu0 %v4547_v21  ;;  %v4280_v60 = vld [vmem:[%s5674_s0 + $0x20] sm:$0xff]  }
 0xd40   : > { %4391 = vpow2.f32 %v3487_v62  ;;  %v4282_v62 = vld [vmem:[%s5674_s0 + $0x28] sm:$0xff]   ;;  %v4291_v57 = vld [vmem:[%s5679_s5 + $0x20] sm:$0xff]  }
 0xd42   : > { %3924 = vmatpush3.bf16.msra.mxu0 %v4280_v60  ;;  %v4293_v60 = vld [vmem:[%s5679_s5 + $0x30] sm:$0xff]  }
 0xd43   : > { %3925 = vmatprep.subr.bf16.mxu0 %v4547_v21 }
 0xd46   : > { %3926 = vmatpush3.bf16.msra.mxu0 %v4282_v62 }
 0xd47   : > { %3927 = vmatprep.subr.bf16.mxu0 %v4547_v21 }
 0xd48   : > { %v4390_v61 = vpop.eup %4389 }
 0xd49   : > { %1241 = vrot.lane.b32.xlu1 %v4390_v61, %s5687_s23  ;;  %v4281_v61 = vld [vmem:[%s5674_s0 + $0x68] sm:$0xff]  }
 0xd4a   : > { %v4392_v63 = vpop.eup %4391 }
 0xd4b   : > { %v1235_v0 = vadd.f32 1.0, %v4392_v63  ;;  %v4283_v63 = vld [vmem:[%s5674_s0 + $0x70] sm:$0xff]  }
 0xd4d   : > { %4393 = vrcp.f32 %v1235_v0  ;;  %v4284_v0 = vld [vmem:[%s5674_s0 + $0x30] sm:$0xff]  }
 0xd4e   : > { %3928 = vmatpush3.bf16.msra.mxu0 %v4284_v0 }
 0xd4f   : > { %3929 = vmatprep.subr.bf16.mxu0 %v4547_v21 }
 0xd57   : > { %v4394_v1 = vpop.eup %4393 }
 0xd58   : > { %v1239_v6 = vmul.f32 %v4394_v1, %v4721_v58 }
 0xdbb   : > { %v1242_v2 = vpop.permute.xlu1 %1241 }
 0xdbc   : > { %v1244_v3 = vmul.f32 %v4394_v1, %v1242_v2  ;;  %v4286_v2 = vld [vmem:[%s5674_s0 + $0x38] sm:$0xff]  }
 0xdbd   : > { %3930 = vmatpush3.bf16.msra.mxu0 %v4286_v2 }
 0xdbe   : > { %1246 = vrot.lane.b32.xlu0 %v1244_v3, %s5687_s23  ;;  %3955 = vmatprep.subr.bf16.mxu0 %v4547_v21 }
 0xe30   : > { %v1247_v41 = vpop.permute.xlu0 %1246 }
 0xe31   : > { %v4958_v8 = vadd.f32 %v1247_v41, %v1239_v6 }
 0xe33   : > { %4395 = vtanh.f32 %v4958_v8 }
 0xe3d   : > { %v4396_v10 = vpop.eup %4395 }
 0xe3e   : > { %1252 = vrot.lane.b32.xlu1 %v4396_v10, %s5687_s23 }
 0xeb0   : > { %v1253_v58 = vpop.permute.xlu1 %1252 }
 0xeb1   : > { %v4970_v13 = vmul.f32 %v4394_v1, %v1253_v58  ;;  %v4285_v1 = vld [vmem:[%s5674_s0 + $0x78] sm:$0xff]  }
 0xeb3   : > { %v1256_v15 = vpack.c.bf16 %v4970_v13, %v4970_v13 }
 0xeb5   : > { %v1264_v16 = vrot.slane %v1256_v15, %v4735_v5 }
 0xeb7   : > { %v1271_v17 = vrot.slane %v1264_v16, %v4735_v5 }
 0xeb9   : > { %v3488_v18 = vpack.i.b16 %v1271_v17, %v1271_v17  ;;  %v1273_v20 = vunpack.i.h.s16 %v1271_v17 }
 0xebb   : > { %v1286_v23 = vrot.slane %v3488_v18, %v4741_v9  ;;  %v1344_v24 = vpack.i.b16 %v1273_v20, %v1273_v20 }
 0xebd   : > { %1287 = vrot.lane.b32.xlu0 %v1286_v23, %s5689_s12  ;;  %v1348_v25 = vrot.slane %v1344_v24, %v4741_v9 }
 0xebf   : > { %1349 = vrot.lane.b32.xlu1 %v1348_v25, %s5689_s12 }
 0xf2f   : > { %v1288_v27 = vpop.permute.xlu0 %1287 }
 0xf30   : > { %3904 = vmatmul.mubr.msk.bf16.vlgmr.msra.gmra.mrb[16].mxu1 %vm550_vm8, %v1288_v27 }
 0xf31   : > { %3908 = vmatpush3.bf16.msra.mxu1 %v4269_v26  ;;  %3911 = vmatprep.mubr.msk.bf16.mxu1 %vm4548_vm5, %v4547_v21  ;;  %v1350_v30 = vpop.permute.xlu1 %1349 }
 0xf32   : > { %3909 = vmatprep.subr.bf16.mxu1 %v4547_v21 }
 0xf35   : > { %3910 = vmatpush3.bf16.msra.mxu1 %v4270_v29 }
 0xf36   : > { %3935 = vmatprep.subr.bf16.mxu1 %v4547_v21 }
 0xf38   : > { %3912 = vmatmul.mubr.msk.bf16.vlgmr.msra.gmra.mrb[20].mxu1 %vm550_vm8, %v1350_v30 }
 0xf39   : > { %3951 = vmatprep.mubr.msk.bf16.mxu1 %vm4548_vm5, %v4547_v21  ;;  %3936 = vmatpush3.bf16.msra.mxu1 %v4271_v39 }
 0xf3a   : > { %3937 = vmatprep.subr.bf16.mxu1 %v4547_v21 }
 0xf3d   : > { %3938 = vmatpush3.bf16.msra.mxu1 %v4273_v42 }
 0xf3e   : > { %3939 = vmatprep.subr.bf16.mxu1 %v4547_v21 }
 0xf41   : > { %3940 = vmatpush3.bf16.msra.mxu1 %v4275_v44 }
 0xf42   : > { %3941 = vmatprep.subr.bf16.mxu1 %v4547_v21 }
 0xf45   : > { %3942 = vmatpush3.bf16.msra.mxu1 %v4277_v46 }
 0xf46   : > { %3943 = vmatprep.subr.bf16.mxu1 %v4547_v21 }
 0xf49   : > { %3944 = vmatpush3.bf16.msra.mxu1 %v4279_v59  ;;  %v4292_v59 = vld [vmem:[%s5679_s5 + $0x28] sm:$0xff]  }
 0xf4a   : > { %3945 = vmatprep.subr.bf16.mxu1 %v4547_v21 }
 0xf4d   : > { %3946 = vmatpush3.bf16.msra.mxu1 %v4281_v61  ;;  %v4294_v61 = vld [vmem:[%s5679_s5 + $0x38] sm:$0xff]  }
 0xf4e   : > { %3947 = vmatprep.subr.bf16.mxu1 %v4547_v21 }
 0xf51   : > { %3948 = vmatpush3.bf16.msra.mxu1 %v4283_v63 }
 0xf52   : > { %3949 = vmatprep.subr.bf16.mxu1 %v4547_v21 }
 0xf55   : > { %3950 = vmatpush3.bf16.msra.mxu1 %v4285_v1 }
 0xf56   : > { %3975 = vmatprep.subr.bf16.mxu1 %v4547_v21 }
0x1003   : > { %v1338_v31 = vpop.f32.mrb[16].mxu1 }
0x1004   : > { %v1339_v32 = vadd.f32 %v1338_v31, %v4761_v22  ;;  %v3905_v33 = vpop.f32.mrb[17].mxu1 }
0x1005   : > { %v1341_v14 = vpop.f32.mrb[18].mxu1 }
0x1006   : > { %v3906_v19 = vpop.f32.mrb[19].mxu1  ;;  %v1406_v28 = vsel %vm656_vm10, %v1339_v32, -inf }
0x1007   : > { %1407 = vmax.xlane.f32.xlu1 %v1406_v28 }
0x100b   : > { %v1400_v4 = vpop.f32.mrb[20].mxu1 }
0x100c   : > { %v1401_v34 = vadd.f32 %v1400_v4, %v4761_v22  ;;  %v3913_v35 = vpop.f32.mrb[21].mxu1 }
0x100d   : > { %v1403_v36 = vpop.f32.mrb[22].mxu1 }
0x100e   : > { %v3914_v37 = vpop.f32.mrb[23].mxu1  ;;  %v1409_v38 = vsel %vm656_vm10, %v1401_v34, -inf }
0x100f   : > { %1410 = vmax.xlane.f32.xlu0 %v1409_v38 }
0x1094   : > { %v1408_v47 = vpop.xlane.xlu1 %1407 }
0x1095   : > { %v1412_v48 = vsub.f32 %v1339_v32, %v1408_v47 }
0x1097   : > { %v1414_v51 = vmul.f32 1.442695, %v1412_v48  ;;  %v4287_v48 = vld [vmem:[%s5679_s5] sm:$0xff]  }
0x109c   : > { %v1411_v49 = vpop.xlane.xlu0 %1410 }
0x109d   : > { %v1413_v50 = vsub.f32 %v1401_v34, %v1411_v49  ;;  %v4288_v49 = vld [vmem:[%s5679_s5 + $0x8] sm:$0xff]  }
0x109f   : > { %v1416_v52 = vmul.f32 1.442695, %v1413_v50  ;;  %v4289_v50 = vld [vmem:[%s5679_s5 + $0x10] sm:$0xff]  }
0x10a1   : > { %4397 = vpow2.f32 %v1416_v52 }
0x10a2   : > { %4399 = vpow2.f32 %v1414_v51  ;;  %v4290_v51 = vld [vmem:[%s5679_s5 + $0x18] sm:$0xff]  }
0x10ab   : > { %v4398_v53 = vpop.eup %4397 }
0x10ac   : > { %v1421_v54 = vsel %vm656_vm10, %v4398_v53, 0.0  ;;  %v4400_v55 = vpop.eup %4399 }
0x10ad   : > { %1422 = vadd.xlane.f32.xlu0 %v1421_v54  ;;  %v1418_v56 = vsel %vm656_vm10, %v4400_v55, 0.0 }
0x10b1   : > { %1419 = vadd.xlane.f32.xlu0 %v1418_v56 }
0x10c7   : > { %1639 = vrot.lane.b32.xlu0 %v4970_v13, %s5689_s12 }
0x113a   : > { %v1423_v3 = vpop.xlane.xlu0 %1422 }
0x113b   : > { %4401 = vrcp.f32 %v1423_v3 }
0x113e   : > { %v1420_v6 = vpop.xlane.xlu0 %1419 }
0x113f   : > { %4403 = vrcp.f32 %v1420_v6 }
0x1142   : > { %v1640_v41 = vpop.permute.xlu0 %1639 }
0x1143   : > { %v1642_v10 = vsel %vm330_vm4, %v1640_v41, 0.0 }
0x1144   : > { %1643 = vadd.xlane.f32.xlu1 %v1642_v10 }
0x1145   : > { %v4402_v11 = vpop.eup %4401 }
0x1146   : > { %v1427_v12 = vmul.f32 %v4402_v11, %v4398_v53 }
0x1148   : > { %v1429_v58 = vpack.c.bf16 %v1427_v12, %v1427_v12  ;;  %v1814_v16 = vrot.slane %v1427_v12, 7 }
0x1149   : > { %v4404_v15 = vpop.eup %4403 }
0x114a   : > { %3952 = vmatmul.mubr.bf16.vlgmr.msra.gmra.mrb[24].mxu1 %v1429_v58  ;;  %v1425_v17 = vmul.f32 %v4404_v15, %v4400_v55 }
0x114b   : > { %3991 = vmatprep.mubr.msk.bf16.mxu1 %vm4548_vm5, %v4547_v21 }
0x114c   : > { %v1428_v18 = vpack.c.bf16 %v1425_v17, %v1425_v17  ;;  %v1815_v20 = vsel %vm899_vm11, %v1814_v16, %v1425_v17 }
0x114d   : > { %3520 = vst [vmem:[%s4658_s20 + $0x2] sm:$0x3] %v1815_v20 }
0x114e   : > { %3932 = vmatmul.mubr.bf16.vlgmr.msra.gmra.mrb[12].mxu0 %v1428_v18 }
0x114f   : > { %3971 = vmatprep.mubr.msk.bf16.mxu0 %vm4548_vm5, %v4547_v21  ;;  %3956 = vmatpush3.bf16.msra.mxu0 %v4287_v48 }
0x1150   : > { %3957 = vmatprep.subr.bf16.mxu0 %v4547_v21 }
0x1153   : > { %3958 = vmatpush3.bf16.msra.mxu0 %v4288_v49 }
0x1154   : > { %3959 = vmatprep.subr.bf16.mxu0 %v4547_v21 }
0x1157   : > { %3960 = vmatpush3.bf16.msra.mxu0 %v4289_v50 }
0x1158   : > { %3961 = vmatprep.subr.bf16.mxu0 %v4547_v21 }
0x115b   : > { %3962 = vmatpush3.bf16.msra.mxu0 %v4290_v51 }
0x115c   : > { %3963 = vmatprep.subr.bf16.mxu0 %v4547_v21 }
0x115f   : > { %3964 = vmatpush3.bf16.msra.mxu0 %v4291_v57 }
0x1160   : > { %3965 = vmatprep.subr.bf16.mxu0 %v4547_v21 }
0x1163   : > { %3966 = vmatpush3.bf16.msra.mxu0 %v4292_v59  ;;  %v5183_v59 = vld [vmem:[%s5696_s4] ss:$0 sm:$0xff]  ;;  %s4455_s4 = scalar_lea.vmem %s4454_s18, 256 }
0x1164   : > { %3967 = vmatprep.subr.bf16.mxu0 %v4547_v21 }
0x1167   : > { %3968 = vmatpush3.bf16.msra.mxu0 %v4293_v60 }
0x1168   : > { %3969 = vmatprep.subr.bf16.mxu0 %v4547_v21 }
0x116b   : > { %3970 = vmatpush3.bf16.msra.mxu0 %v4294_v61 }
0x116c   : > { %4011 = vmatprep.subr.bf16.mxu0 %v4547_v21 }
0x11d1   : > { %v1644_v19 = vpop.xlane.xlu1 %1643 }
0x121d   : > { %v5073_v23 = vpop.f32.mrb[24].mxu1 }
0x121e   : > { %v3953_v24 = vpop.f32.mrb[25].mxu1  ;;  %v1647_v26 = vrot.slane %v5073_v23, 7 }
0x121f   : > { %v1635_v25 = vpop.f32.mrb[26].mxu1 }
0x1220   : > { %v3954_v27 = vpop.f32.mrb[27].mxu1 }
0x1221   : > { %v5076_v29 = vpop.f32.mrb[12].mxu0 }
0x1222   : > { %v3933_v30 = vpop.f32.mrb[13].mxu0  ;;  %v1648_v31 = vsel %vm899_vm11, %v1647_v26, %v5076_v29 }
0x1223   : > { %v1547_v32 = vpop.f32.mrb[14].mxu0  ;;  %v1650_v33 = vsel %vm330_vm4, %v1648_v31, 0.0 }
0x1224   : > { %v3934_v14 = vpop.f32.mrb[15].mxu0  ;;  %1651 = vadd.xlane.f32.xlu1 %v1650_v33 }
0x12b1   : > { %v5081_v28 = vpop.xlane.xlu1 %1651 }
0x12b2   : > { %v1653_v4 = vadd.f32 %v5081_v28, %v1644_v19 }
0x12b4   : > { %v1654_v34 = vmul.f32 0.015625, %v1653_v4 }
0x12b6   : > { %v1655_v35 = vsub.f32 %v4970_v13, %v1654_v34  ;;  %v1657_v37 = vrot.slane %v1654_v34, 1  ;;  %v1660_v40 = vsub.f32 %v5076_v29, %v1654_v34 }
0x12b8   : > { %v1662_v36 = vmul.f32 %v1655_v35, %v1655_v35  ;;  %v1661_v38 = vsub.f32 %v5073_v23, %v1657_v37  ;;  %v1670_v43 = vmul.f32 %v1660_v40, %v1660_v40 }
0x12ba   : > { %1664 = vrot.lane.b32.xlu1 %v1662_v36, %s5689_s12  ;;  %v1671_v39 = vmul.f32 %v1661_v38, %v1661_v38  ;;  %v4299_v36 = vld [vmem:[%s5677_s3 + $0x20] sm:$0xff]  }
0x12bc   : > { %v1674_v42 = vrot.slane %v1671_v39, 7 }
0x12be   : > { %v1675_v44 = vsel %vm899_vm11, %v1674_v42, %v1670_v43  ;;  %v4300_v43 = vld [vmem:[%s5677_s3 + $0x28] sm:$0xff]  }
0x12bf   : > { %v1677_v45 = vsel %vm330_vm4, %v1675_v44, 0.0  ;;  %v4301_v44 = vld [vmem:[%s5677_s3 + $0x30] sm:$0xff]  }
0x12de   : > { %1678 = vadd.xlane.f32.xlu1 %v1677_v45  ;;  %v4302_v45 = vld [vmem:[%s5677_s3 + $0x38] sm:$0xff]  }
0x132c   : > { %v1665_v46 = vpop.permute.xlu1 %1664 }
0x132d   : > { %v1667_v47 = vsel %vm330_vm4, %v1665_v46, 0.0 }
0x132e   : > { %1668 = vadd.xlane.f32.xlu0 %v1667_v47 }
0x136b   : > { %v1679_v52 = vpop.xlane.xlu1 %1678 }
0x13bb   : > { %v1669_v53 = vpop.xlane.xlu0 %1668 }
0x13bc   : > { %v1680_v54 = vadd.f32 %v1679_v52, %v1669_v53 }
0x13be   : > { %v1681_v55 = vmul.f32 0.015625, %v1680_v54 }
0x13c0   : > { %v1682_v56 = vadd.f32 1e-05, %v1681_v55 }
0x13c2   : > { %4405 = vrsqrt.f32 %v1682_v56 }
0x13cc   : > { %v4406_v62 = vpop.eup %4405 }
0x13cd   : > { %v1684_v63 = vmul.f32 %v4406_v62, %v1655_v35  ;;  %v1691_v0 = vrot.slane %v4406_v62, 1  ;;  %v1694_v2 = vmul.f32 %v4406_v62, %v1660_v40 }
0x13cf   : > { %1686 = vrot.lane.b32.xlu0 %v1684_v63, %s5689_s12  ;;  %v1695_v1 = vmul.f32 %v1691_v0, %v1661_v38  ;;  %s3319_s12 = scalar_lea.sflag [#allocation11], %s4653_s17 }
0x13d1   : > { %v1698_v3 = vrot.slane %v1695_v1, 7 }
0x13d3   : > { %v1699_v6 = vsel %vm899_vm11, %v1698_v3, %v1694_v2 }
0x13d4   : > { %1700 = vrot.lane.b32.xlu1 %v1699_v6, %s5698_s10 }
0x1441   : > { %v1687_v41 = vpop.permute.xlu0 %1686 }
0x1442   : > { %1689 = vst.msk [vmem:[#allocation7] sm:$0x3] %vm330_vm4, %v1687_v41 }
0x1446   : > { %v1701_v10 = vpop.permute.xlu1 %1700 }
0x1447   : > { %1703 = vst.msk [vmem:[#allocation7] sm:$0x3] %vm955_vm12, %v1701_v10 }
0x144e   : > { %v1704_v11 = vld [vmem:[#allocation7] sm:$0x3] }
0x144f   : > { %v1705_v12 = vpack.c.bf16 %v1704_v11, %v1704_v11 }
0x1451   : > { %3972 = vmatmul.mubr.bf16.vlgmr.msra.gmra.mrb[16].mxu0 %v1705_v12 }
0x1452   : > { %4027 = vmatprep.mubr.msk.bf16.mxu0 %vm4548_vm5, %v4547_v21 }
0x1524   : > { %v1804_v58 = vpop.f32.mrb[16].mxu0 }
0x1525   : > { %v1805_v15 = vadd.f32 %v4902_v7, %v1804_v58  ;;  %v3973_v16 = vpop.f32.mrb[17].mxu0 }
0x1526   : > { %v1807_v17 = vpop.f32.mrb[18].mxu0  ;;  %v4303_v16 = vld [vmem:[%s5675_s1] sm:$0xff]  }
0x1527   : > { %3519 = vst [vmem:[%s4656_s19 + $0x2] sm:$0x3] %v1805_v15  ;;  %v3974_v18 = vpop.f32.mrb[19].mxu0  ;;  %v1819_v20 = vsel %vm326_vm3, %v1805_v15, 0.0  ;;  %v4304_v17 = vld [vmem:[%s5675_s1 + $0x8] sm:$0xff]  }
0x1528   : > { %1820 = vadd.xlane.f32.xlu0 %v1819_v20 }
0x15b5   : > { %v1821_v24 = vpop.xlane.xlu0 %1820 }
0x15b6   : > { %v1822_v25 = vadd.f32 %v1821_v24, %v5081_v28  ;;  %v4297_v28 = vld [vmem:[%s5677_s3 + $0x10] sm:$0xff]  }
0x15b8   : > { %v1823_v26 = vmul.f32 0.020833334, %v1822_v25 }
0x15ba   : > { %v1826_v27 = vrot.slane %v1823_v26, 1  ;;  %v1824_v30 = vsub.f32 %v1805_v15, %v1823_v26  ;;  %v1829_v31 = vsub.f32 %v5076_v29, %v1823_v26  ;;  %v4295_v29 = vld [vmem:[%s5677_s3] sm:$0xff]  }
0x15bb   : > { %3976 = vmatpush3.bf16.msra.mxu1 %v4295_v29 }
0x15bc   : > { %v1830_v32 = vsub.f32 %v5073_v23, %v1826_v27  ;;  %v1831_v33 = vmul.f32 %v1824_v30, %v1824_v30  ;;  %v1835_v19 = vmul.f32 %v1829_v31, %v1829_v31  ;;  %v4296_v23 = vld [vmem:[%s5677_s3 + $0x8] sm:$0xff]   ;;  %3977 = vmatprep.subr.bf16.mxu1 %v4547_v21 }
0x15be   : > { %v1832_v7 = vsel %vm326_vm3, %v1831_v33, 0.0  ;;  %v1836_v14 = vmul.f32 %v1830_v32, %v1830_v32  ;;  %v4305_v33 = vld [vmem:[%s5675_s1 + $0x10] sm:$0xff]  }
0x15bf   : > { %1833 = vadd.xlane.f32.xlu1 %v1832_v7  ;;  %3978 = vmatpush3.bf16.msra.mxu1 %v4296_v23 }
0x15c0   : > { %v1839_v4 = vrot.slane %v1836_v14, 7  ;;  %3979 = vmatprep.subr.bf16.mxu1 %v4547_v21  ;;  %v4306_v14 = vld [vmem:[%s5675_s1 + $0x18] sm:$0xff]  }
0x15c2   : > { %v1840_v34 = vsel %vm899_vm11, %v1839_v4, %v1835_v19 }
0x15c3   : > { %v1842_v35 = vsel %vm330_vm4, %v1840_v34, 0.0  ;;  %3980 = vmatpush3.bf16.msra.mxu1 %v4297_v28 }
0x15c4   : > { %1843 = vadd.xlane.f32.xlu0 %v1842_v35  ;;  %3981 = vmatprep.subr.bf16.mxu1 %v4547_v21 }
0x15d0   : > { %1865 = vrot.lane.b32.xlu1 %v4970_v13, %s5699_s21  ;;  %v4298_v13 = vld [vmem:[%s5677_s3 + $0x18] sm:$0xff]  }
0x15d1   : > { %3982 = vmatpush3.bf16.msra.mxu1 %v4298_v13 }
0x15d2   : > { %3983 = vmatprep.subr.bf16.mxu1 %v4547_v21 }
0x15d5   : > { %3984 = vmatpush3.bf16.msra.mxu1 %v4299_v36 }
0x15d6   : > { %3985 = vmatprep.subr.bf16.mxu1 %v4547_v21 }
0x15d9   : > { %3986 = vmatpush3.bf16.msra.mxu1 %v4300_v43  ;;  %v4308_v43 = vld [vmem:[%s5674_s0] sm:$0xff]  }
0x15da   : > { %3987 = vmatprep.subr.bf16.mxu1 %v4547_v21  ;;  %4012 = vmatpush3.bf16.msra.mxu0 %v4308_v43 }
0x15db   : > { %4013 = vmatprep.subr.bf16.mxu0 %v4547_v21 }
0x15dd   : > { %3988 = vmatpush3.bf16.msra.mxu1 %v4301_v44  ;;  %v4309_v44 = vld [vmem:[%s5674_s0 + $0x48] sm:$0xff]  }
0x15de   : > { %3989 = vmatprep.subr.bf16.mxu1 %v4547_v21 }
0x15e1   : > { %3990 = vmatpush3.bf16.msra.mxu1 %v4302_v45  ;;  %v4310_v45 = vld [vmem:[%s5674_s0 + $0x8] sm:$0xff]  }
0x15e2   : > { %3995 = vmatprep.subr.bf16.mxu1 %v4547_v21  ;;  %4014 = vmatpush3.bf16.msra.mxu0 %v4310_v45 }
0x15e3   : > { %4015 = vmatprep.subr.bf16.mxu0 %v4547_v21 }
0x164c   : > { %v1834_v37 = vpop.xlane.xlu1 %1833 }
0x1650   : > { %v1866_v54 = vpop.permute.xlu1 %1865 }
0x1651   : > { %v1844_v38 = vpop.xlane.xlu0 %1843 }
0x1652   : > { %v1845_v39 = vadd.f32 %v1844_v38, %v1834_v37 }
0x1654   : > { %v1846_v40 = vmul.f32 0.020833334, %v1845_v39 }
0x1656   : > { %v1847_v42 = vadd.f32 1e-05, %v1846_v40 }
0x1658   : > { %4407 = vrsqrt.f32 %v1847_v42  ;;  %v4307_v42 = vld [vmem:[%s5674_s0 + $0x40] sm:$0xff]  }
0x1662   : > { %v4408_v46 = vpop.eup %4407 }
0x1663   : > { %v1852_v47 = vrot.slane %v4408_v46, 1  ;;  %v1849_v48 = vmul.f32 %v4408_v46, %v1824_v30  ;;  %v1855_v50 = vmul.f32 %v4408_v46, %v1829_v31  ;;  %v4311_v46 = vld [vmem:[%s5674_s0 + $0x50] sm:$0xff]  }
0x1665   : > { %v1856_v49 = vmul.f32 %v1852_v47, %v1830_v32  ;;  %1850 = vst.msk [vmem:[#allocation6] sm:$0x3] %vm326_vm3, %v1849_v48  ;;  %v4312_v47 = vld [vmem:[%s5674_s0 + $0x10] sm:$0xff]   ;;  %v4313_v48 = vld [vmem:[%s5674_s0 + $0x58] sm:$0xff]  }
0x1666   : > { %4016 = vmatpush3.bf16.msra.mxu0 %v4312_v47 }
0x1667   : > { %v1859_v51 = vrot.slane %v1856_v49, 7  ;;  %4017 = vmatprep.subr.bf16.mxu0 %v4547_v21 }
0x1669   : > { %v1860_v52 = vsel %vm899_vm11, %v1859_v51, %v1855_v50 }
0x166a   : > { %1861 = vrot.lane.b32.xlu0 %v1860_v52, %s5697_s13 }
0x16dc   : > { %v1862_v53 = vpop.permute.xlu0 %1861 }
0x16dd   : > { %1864 = vst.msk [vmem:[#allocation6] sm:$0x3] %vm357_vm6, %v1862_v53 }
0x16de   : > { %1868 = vst.msk [vmem:[#allocation6] sm:$0x3] %vm363_vm7, %v1866_v54 }
0x16e5   : > { %v1869_v55 = vld [vmem:[#allocation6] sm:$0x3] }
0x16e6   : > { %v1870_v56 = vpack.c.bf16 %v1869_v55, %v1869_v55 }
0x16e8   : > { %3992 = vmatmul.mubr.bf16.vlgmr.msra.gmra.mrb[28].mxu1 %v1870_v56 }
0x16e9   : > { %3999 = vmatprep.mubr.msk.bf16.mxu1 %vm4548_vm5, %v4547_v21  ;;  %3996 = vmatpush3.bf16.msra.mxu1 %v4303_v16 }
0x16ea   : > { %3997 = vmatprep.subr.bf16.mxu1 %v4547_v21 }
0x16ed   : > { %3998 = vmatpush3.bf16.msra.mxu1 %v4304_v17 }
0x16ee   : > { %4003 = vmatprep.subr.bf16.mxu1 %v4547_v21 }
0x17bb   : > { %v1969_v57 = vpop.f32.mrb[28].mxu1 }
0x17bc   : > { %v1970_v60 = vadd.f32 %v5183_v59, %v1969_v57  ;;  %v3993_v61 = vpop.f32.mrb[29].mxu1 }
0x17bd   : > { %v1972_v62 = vpop.f32.mrb[30].mxu1  ;;  %v4314_v61 = vld [vmem:[%s5674_s0 + $0x18] sm:$0xff]  }
0x17be   : > { %4409 = vtanh.f32 %v1970_v60  ;;  %v3994_v63 = vpop.f32.mrb[31].mxu1  ;;  %v3529_v1 = vmul.f32 -1.442695, %v1970_v60  ;;  %v4315_v62 = vld [vmem:[%s5674_s0 + $0x60] sm:$0xff]   ;;  %4018 = vmatpush3.bf16.msra.mxu0 %v4314_v61 }
0x17bf   : > { %4019 = vmatprep.subr.bf16.mxu0 %v4547_v21  ;;  %v4316_v63 = vld [vmem:[%s5674_s0 + $0x20] sm:$0xff]  }
0x17c0   : > { %4411 = vpow2.f32 %v3529_v1  ;;  %v4318_v1 = vld [vmem:[%s5674_s0 + $0x28] sm:$0xff]   ;;  %v4327_v61 = vld [vmem:[%s5679_s5 + $0x20] sm:$0xff]  }
0x17c2   : > { %4020 = vmatpush3.bf16.msra.mxu0 %v4316_v63  ;;  %v4329_v63 = vld [vmem:[%s5679_s5 + $0x30] sm:$0xff]  }
0x17c3   : > { %4021 = vmatprep.subr.bf16.mxu0 %v4547_v21 }
0x17c6   : > { %4022 = vmatpush3.bf16.msra.mxu0 %v4318_v1 }
0x17c7   : > { %4023 = vmatprep.subr.bf16.mxu0 %v4547_v21 }
0x17c8   : > { %v4410_v0 = vpop.eup %4409 }
0x17c9   : > { %1984 = vrot.lane.b32.xlu1 %v4410_v0, %s5698_s10  ;;  %v4317_v0 = vld [vmem:[%s5674_s0 + $0x68] sm:$0xff]  }
0x17ca   : > { %v4412_v2 = vpop.eup %4411 }
0x17cb   : > { %v1978_v3 = vadd.f32 1.0, %v4412_v2  ;;  %v4319_v2 = vld [vmem:[%s5674_s0 + $0x70] sm:$0xff]  }
0x17cd   : > { %4413 = vrcp.f32 %v1978_v3  ;;  %v4320_v3 = vld [vmem:[%s5674_s0 + $0x30] sm:$0xff]  }
0x17ce   : > { %4024 = vmatpush3.bf16.msra.mxu0 %v4320_v3 }
0x17cf   : > { %4025 = vmatprep.subr.bf16.mxu0 %v4547_v21 }
0x17d7   : > { %v4414_v6 = vpop.eup %4413 }
0x17d8   : > { %v1982_v11 = vmul.f32 %v4414_v6, %v4958_v8 }
0x183b   : > { %v1985_v41 = vpop.permute.xlu1 %1984 }
0x183c   : > { %v1987_v10 = vmul.f32 %v4414_v6, %v1985_v41  ;;  %v4322_v41 = vld [vmem:[%s5674_s0 + $0x38] sm:$0xff]  }
0x183d   : > { %4026 = vmatpush3.bf16.msra.mxu0 %v4322_v41 }
0x183e   : > { %1989 = vrot.lane.b32.xlu0 %v1987_v10, %s5698_s10  ;;  %4051 = vmatprep.subr.bf16.mxu0 %v4547_v21 }
0x18b0   : > { %v1990_v12 = vpop.permute.xlu0 %1989 }
0x18b1   : > { %v5189_v58 = vadd.f32 %v1990_v12, %v1982_v11 }
0x18b3   : > { %4415 = vtanh.f32 %v5189_v58 }
0x18bd   : > { %v4416_v15 = vpop.eup %4415 }
0x18be   : > { %1995 = vrot.lane.b32.xlu1 %v4416_v15, %s5698_s10 }
0x1930   : > { %v1996_v8 = vpop.permute.xlu1 %1995 }
0x1931   : > { %v5201_v18 = vmul.f32 %v4414_v6, %v1996_v8  ;;  %v4321_v6 = vld [vmem:[%s5674_s0 + $0x78] sm:$0xff]  }
0x1933   : > { %v1999_v20 = vpack.c.bf16 %v5201_v18, %v5201_v18 }
0x1935   : > { %v2007_v24 = vrot.slane %v1999_v20, %v4735_v5 }
0x1937   : > { %v2014_v25 = vrot.slane %v2007_v24, %v4735_v5 }
0x1939   : > { %v3530_v26 = vpack.i.b16 %v2014_v25, %v2014_v25  ;;  %v2016_v27 = vunpack.i.h.s16 %v2014_v25 }
0x193b   : > { %v2029_v30 = vrot.slane %v3530_v26, %v4741_v9  ;;  %v2087_v31 = vpack.i.b16 %v2016_v27, %v2016_v27 }
0x193d   : > { %2030 = vrot.lane.b32.xlu0 %v2029_v30, %s5700_s26  ;;  %v2091_v32 = vrot.slane %v2087_v31, %v4741_v9 }
0x193f   : > { %2092 = vrot.lane.b32.xlu1 %v2091_v32, %s5700_s26 }
0x19af   : > { %v2031_v7 = vpop.permute.xlu0 %2030 }
0x19b0   : > { %4000 = vmatmul.mubr.msk.bf16.vlgmr.msra.gmra.mrb[32].mxu1 %vm550_vm8, %v2031_v7 }
0x19b1   : > { %4004 = vmatpush3.bf16.msra.mxu1 %v4305_v33  ;;  %4007 = vmatprep.mubr.msk.bf16.mxu1 %vm4548_vm5, %v4547_v21  ;;  %v2093_v19 = vpop.permute.xlu1 %2092 }
0x19b2   : > { %4005 = vmatprep.subr.bf16.mxu1 %v4547_v21 }
0x19b5   : > { %4006 = vmatpush3.bf16.msra.mxu1 %v4306_v14 }
0x19b6   : > { %4031 = vmatprep.subr.bf16.mxu1 %v4547_v21 }
0x19b8   : > { %4008 = vmatmul.mubr.msk.bf16.vlgmr.msra.gmra.mrb[36].mxu1 %vm550_vm8, %v2093_v19 }
0x19b9   : > { %4047 = vmatprep.mubr.msk.bf16.mxu1 %vm4548_vm5, %v4547_v21  ;;  %4032 = vmatpush3.bf16.msra.mxu1 %v4307_v42 }
0x19ba   : > { %4033 = vmatprep.subr.bf16.mxu1 %v4547_v21 }
0x19bd   : > { %4034 = vmatpush3.bf16.msra.mxu1 %v4309_v44 }
0x19be   : > { %4035 = vmatprep.subr.bf16.mxu1 %v4547_v21 }
0x19c1   : > { %4036 = vmatpush3.bf16.msra.mxu1 %v4311_v46 }
0x19c2   : > { %4037 = vmatprep.subr.bf16.mxu1 %v4547_v21 }
0x19c5   : > { %4038 = vmatpush3.bf16.msra.mxu1 %v4313_v48 }
0x19c6   : > { %4039 = vmatprep.subr.bf16.mxu1 %v4547_v21 }
0x19c9   : > { %4040 = vmatpush3.bf16.msra.mxu1 %v4315_v62  ;;  %v4328_v62 = vld [vmem:[%s5679_s5 + $0x28] sm:$0xff]  }
0x19ca   : > { %4041 = vmatprep.subr.bf16.mxu1 %v4547_v21 }
0x19cd   : > { %4042 = vmatpush3.bf16.msra.mxu1 %v4317_v0  ;;  %v4330_v0 = vld [vmem:[%s5679_s5 + $0x38] sm:$0xff]  }
0x19ce   : > { %4043 = vmatprep.subr.bf16.mxu1 %v4547_v21 }
0x19d1   : > { %4044 = vmatpush3.bf16.msra.mxu1 %v4319_v2 }
0x19d2   : > { %4045 = vmatprep.subr.bf16.mxu1 %v4547_v21 }
0x19d5   : > { %4046 = vmatpush3.bf16.msra.mxu1 %v4321_v6 }
0x19d6   : > { %4071 = vmatprep.subr.bf16.mxu1 %v4547_v21 }
0x1a83   : > { %v2081_v4 = vpop.f32.mrb[32].mxu1 }
0x1a84   : > { %v2082_v34 = vadd.f32 %v2081_v4, %v4761_v22  ;;  %v4001_v35 = vpop.f32.mrb[33].mxu1 }
0x1a85   : > { %v2084_v29 = vpop.f32.mrb[34].mxu1 }
0x1a86   : > { %v4002_v23 = vpop.f32.mrb[35].mxu1  ;;  %v2149_v28 = vsel %vm656_vm10, %v2082_v34, -inf }
0x1a87   : > { %2150 = vmax.xlane.f32.xlu1 %v2149_v28 }
0x1a8b   : > { %v2143_v13 = vpop.f32.mrb[36].mxu1 }
0x1a8c   : > { %v2144_v36 = vadd.f32 %v2143_v13, %v4761_v22  ;;  %v4009_v37 = vpop.f32.mrb[37].mxu1 }
0x1a8d   : > { %v2146_v38 = vpop.f32.mrb[38].mxu1 }
0x1a8e   : > { %v4010_v39 = vpop.f32.mrb[39].mxu1  ;;  %v2152_v40 = vsel %vm656_vm10, %v2144_v36, -inf }
0x1a8f   : > { %2153 = vmax.xlane.f32.xlu0 %v2152_v40 }
0x1b14   : > { %v2151_v49 = vpop.xlane.xlu1 %2150 }
0x1b15   : > { %v2155_v50 = vsub.f32 %v2082_v34, %v2151_v49 }
0x1b17   : > { %v2157_v53 = vmul.f32 1.442695, %v2155_v50  ;;  %v4323_v50 = vld [vmem:[%s5679_s5] sm:$0xff]  }
0x1b1c   : > { %v2154_v51 = vpop.xlane.xlu0 %2153 }
0x1b1d   : > { %v2156_v52 = vsub.f32 %v2144_v36, %v2154_v51  ;;  %v4324_v51 = vld [vmem:[%s5679_s5 + $0x8] sm:$0xff]  }
0x1b1f   : > { %v2159_v54 = vmul.f32 1.442695, %v2156_v52  ;;  %v4325_v52 = vld [vmem:[%s5679_s5 + $0x10] sm:$0xff]  }
0x1b21   : > { %4417 = vpow2.f32 %v2159_v54 }
0x1b22   : > { %4419 = vpow2.f32 %v2157_v53  ;;  %v4326_v53 = vld [vmem:[%s5679_s5 + $0x18] sm:$0xff]  }
0x1b2b   : > { %v4418_v55 = vpop.eup %4417 }
0x1b2c   : > { %v2164_v56 = vsel %vm656_vm10, %v4418_v55, 0.0  ;;  %v4420_v57 = vpop.eup %4419 }
0x1b2d   : > { %2165 = vadd.xlane.f32.xlu0 %v2164_v56  ;;  %v2161_v60 = vsel %vm656_vm10, %v4420_v57, 0.0 }
0x1b31   : > { %2162 = vadd.xlane.f32.xlu0 %v2161_v60 }
0x1b47   : > { %2382 = vrot.lane.b32.xlu0 %v5201_v18, %s5700_s26 }
0x1bba   : > { %v2166_v10 = vpop.xlane.xlu0 %2165 }
0x1bbb   : > { %4421 = vrcp.f32 %v2166_v10 }
0x1bbe   : > { %v2163_v11 = vpop.xlane.xlu0 %2162 }
0x1bbf   : > { %4423 = vrcp.f32 %v2163_v11 }
0x1bc2   : > { %v2383_v12 = vpop.permute.xlu0 %2382 }
0x1bc3   : > { %v2385_v15 = vsel %vm330_vm4, %v2383_v12, 0.0 }
0x1bc4   : > { %2386 = vadd.xlane.f32.xlu1 %v2385_v15 }
0x1bc5   : > { %v4422_v16 = vpop.eup %4421 }
0x1bc6   : > { %v2170_v17 = vmul.f32 %v4422_v16, %v4418_v55 }
0x1bc8   : > { %v2172_v8 = vpack.c.bf16 %v2170_v17, %v2170_v17  ;;  %v2557_v24 = vrot.slane %v2170_v17, 7 }
0x1bc9   : > { %v4424_v20 = vpop.eup %4423 }
0x1bca   : > { %4048 = vmatmul.mubr.bf16.vlgmr.msra.gmra.mrb[40].mxu1 %v2172_v8  ;;  %v2168_v25 = vmul.f32 %v4424_v20, %v4420_v57  ;;  %v5364_v20 = vld [vmem:[%s5680_s6] ss:$0 sm:$0xff] }
0x1bcb   : > { %4087 = vmatprep.mubr.msk.bf16.mxu1 %vm4548_vm5, %v4547_v21 }
0x1bcc   : > { %v2171_v26 = vpack.c.bf16 %v2168_v25, %v2168_v25  ;;  %v2558_v27 = vsel %vm899_vm11, %v2557_v24, %v2168_v25 }
0x1bcd   : > { %3562 = vst [vmem:[%s4658_s20 + $0x4] sm:$0x3] %v2558_v27 }
0x1bce   : > { %4028 = vmatmul.mubr.bf16.vlgmr.msra.gmra.mrb[20].mxu0 %v2171_v26 }
0x1bcf   : > { %4067 = vmatprep.mubr.msk.bf16.mxu0 %vm4548_vm5, %v4547_v21  ;;  %4052 = vmatpush3.bf16.msra.mxu0 %v4323_v50 }
0x1bd0   : > { %4053 = vmatprep.subr.bf16.mxu0 %v4547_v21 }
0x1bd3   : > { %4054 = vmatpush3.bf16.msra.mxu0 %v4324_v51 }
0x1bd4   : > { %4055 = vmatprep.subr.bf16.mxu0 %v4547_v21 }
0x1bd7   : > { %4056 = vmatpush3.bf16.msra.mxu0 %v4325_v52 }
0x1bd8   : > { %4057 = vmatprep.subr.bf16.mxu0 %v4547_v21 }
0x1bdb   : > { %4058 = vmatpush3.bf16.msra.mxu0 %v4326_v53 }
0x1bdc   : > { %4059 = vmatprep.subr.bf16.mxu0 %v4547_v21 }
0x1bdf   : > { %4060 = vmatpush3.bf16.msra.mxu0 %v4327_v61 }
0x1be0   : > { %4061 = vmatprep.subr.bf16.mxu0 %v4547_v21 }
0x1be3   : > { %4062 = vmatpush3.bf16.msra.mxu0 %v4328_v62 }
0x1be4   : > { %4063 = vmatprep.subr.bf16.mxu0 %v4547_v21 }
0x1be7   : > { %4064 = vmatpush3.bf16.msra.mxu0 %v4329_v63 }
0x1be8   : > { %4065 = vmatprep.subr.bf16.mxu0 %v4547_v21 }
0x1beb   : > { %4066 = vmatpush3.bf16.msra.mxu0 %v4330_v0 }
0x1bec   : > { %4107 = vmatprep.subr.bf16.mxu0 %v4547_v21 }
0x1c51   : > { %v2387_v23 = vpop.xlane.xlu1 %2386 }
0x1c9d   : > { %v5304_v30 = vpop.f32.mrb[40].mxu1 }
0x1c9e   : > { %v4049_v31 = vpop.f32.mrb[41].mxu1  ;;  %v2390_v33 = vrot.slane %v5304_v30, 7 }
0x1c9f   : > { %v2378_v32 = vpop.f32.mrb[42].mxu1 }
0x1ca0   : > { %v4050_v7 = vpop.f32.mrb[43].mxu1 }
0x1ca1   : > { %v5307_v14 = vpop.f32.mrb[20].mxu0 }
0x1ca2   : > { %v4029_v19 = vpop.f32.mrb[21].mxu0  ;;  %v2391_v4 = vsel %vm899_vm11, %v2390_v33, %v5307_v14 }
0x1ca3   : > { %v2290_v34 = vpop.f32.mrb[22].mxu0  ;;  %v2393_v35 = vsel %vm330_vm4, %v2391_v4, 0.0 }
0x1ca4   : > { %v4030_v29 = vpop.f32.mrb[23].mxu0  ;;  %2394 = vadd.xlane.f32.xlu1 %v2393_v35 }
0x1d31   : > { %v5312_v28 = vpop.xlane.xlu1 %2394 }
0x1d32   : > { %v2396_v13 = vadd.f32 %v5312_v28, %v2387_v23 }
0x1d34   : > { %v2397_v36 = vmul.f32 0.015625, %v2396_v13 }
0x1d36   : > { %v2398_v37 = vsub.f32 %v5201_v18, %v2397_v36  ;;  %v2400_v39 = vrot.slane %v2397_v36, 1  ;;  %v2403_v43 = vsub.f32 %v5307_v14, %v2397_v36 }
0x1d38   : > { %v2405_v38 = vmul.f32 %v2398_v37, %v2398_v37  ;;  %v2404_v40 = vsub.f32 %v5304_v30, %v2400_v39  ;;  %v2413_v45 = vmul.f32 %v2403_v43, %v2403_v43 }
0x1d3a   : > { %2407 = vrot.lane.b32.xlu1 %v2405_v38, %s5700_s26  ;;  %v2414_v42 = vmul.f32 %v2404_v40, %v2404_v40 }
0x1d3c   : > { %v2417_v44 = vrot.slane %v2414_v42, 7 }
0x1d3e   : > { %v2418_v46 = vsel %vm899_vm11, %v2417_v44, %v2413_v45 }
0x1d3f   : > { %v2420_v47 = vsel %vm330_vm4, %v2418_v46, 0.0 }
0x1d5e   : > { %2421 = vadd.xlane.f32.xlu1 %v2420_v47  ;;  %v4336_v47 = vld [vmem:[%s5677_s3 + $0x28] sm:$0xff]  }
0x1dac   : > { %v2408_v48 = vpop.permute.xlu1 %2407 }
0x1dad   : > { %v2410_v49 = vsel %vm330_vm4, %v2408_v48, 0.0  ;;  %v4337_v48 = vld [vmem:[%s5677_s3 + $0x30] sm:$0xff]  }
0x1dae   : > { %2411 = vadd.xlane.f32.xlu0 %v2410_v49  ;;  %v4338_v49 = vld [vmem:[%s5677_s3 + $0x38] sm:$0xff]  }
0x1deb   : > { %v2422_v54 = vpop.xlane.xlu1 %2421 }
0x1e3b   : > { %v2412_v55 = vpop.xlane.xlu0 %2411 }
0x1e3c   : > { %v2423_v56 = vadd.f32 %v2422_v54, %v2412_v55 }
0x1e3e   : > { %v2424_v57 = vmul.f32 0.015625, %v2423_v56 }
0x1e40   : > { %v2425_v60 = vadd.f32 1e-05, %v2424_v57 }
0x1e42   : > { %4425 = vrsqrt.f32 %v2425_v60 }
0x1e4c   : > { %v4426_v1 = vpop.eup %4425 }
0x1e4d   : > { %v2427_v2 = vmul.f32 %v4426_v1, %v2398_v37  ;;  %v2434_v3 = vrot.slane %v4426_v1, 1  ;;  %v2437_v41 = vmul.f32 %v4426_v1, %v2403_v43 }
0x1e4f   : > { %2429 = vrot.lane.b32.xlu0 %v2427_v2, %s5700_s26  ;;  %v2438_v6 = vmul.f32 %v2434_v3, %v2404_v40  ;;  %v4335_v40 = vld [vmem:[%s5677_s3 + $0x20] sm:$0xff]  }
0x1e51   : > { %v2441_v10 = vrot.slane %v2438_v6, 7 }
0x1e53   : > { %v2442_v11 = vsel %vm899_vm11, %v2441_v10, %v2437_v41 }
0x1e54   : > { %2443 = vrot.lane.b32.xlu1 %v2442_v11, %s5698_s10 }
0x1ec1   : > { %v2430_v12 = vpop.permute.xlu0 %2429 }
0x1ec2   : > { %2432 = vst.msk [vmem:[#allocation7] sm:$0x3] %vm330_vm4, %v2430_v12 }
0x1ec6   : > { %v2444_v15 = vpop.permute.xlu1 %2443 }
0x1ec7   : > { %2446 = vst.msk [vmem:[#allocation7] sm:$0x3] %vm955_vm12, %v2444_v15 }
0x1ece   : > { %v2447_v16 = vld [vmem:[#allocation7] sm:$0x3] }
0x1ecf   : > { %v2448_v17 = vpack.c.bf16 %v2447_v16, %v2447_v16 }
0x1ed1   : > { %4068 = vmatmul.mubr.bf16.vlgmr.msra.gmra.mrb[24].mxu0 %v2448_v17 }
0x1ed2   : > { %4123 = vmatprep.mubr.msk.bf16.mxu0 %vm4548_vm5, %v4547_v21 }
0x1fa4   : > { %v2547_v8 = vpop.f32.mrb[24].mxu0 }
0x1fa5   : > { %v2548_v24 = vadd.f32 %v5364_v20, %v2547_v8  ;;  %v4069_v25 = vpop.f32.mrb[25].mxu0 }
0x1fa6   : > { %v2550_v26 = vpop.f32.mrb[26].mxu0  ;;  %v4339_v25 = vld [vmem:[%s5675_s1] sm:$0xff]  }
0x1fa7   : > { %3561 = vst [vmem:[%s4656_s19 + $0x4] sm:$0x3] %v2548_v24  ;;  %v4070_v27 = vpop.f32.mrb[27].mxu0  ;;  %v2562_v31 = vsel %vm326_vm3, %v2548_v24, 0.0  ;;  %v4340_v26 = vld [vmem:[%s5675_s1 + $0x8] sm:$0xff]  }
0x1fa8   : > { %2563 = vadd.xlane.f32.xlu0 %v2562_v31 }
0x2035   : > { %v2564_v32 = vpop.xlane.xlu0 %2563 }
0x2036   : > { %v2565_v33 = vadd.f32 %v2564_v32, %v5312_v28  ;;  %v4333_v28 = vld [vmem:[%s5677_s3 + $0x10] sm:$0xff]  }
0x2038   : > { %v2566_v7 = vmul.f32 0.020833334, %v2565_v33 }
0x203a   : > { %v2569_v19 = vrot.slane %v2566_v7, 1  ;;  %v2567_v4 = vsub.f32 %v2548_v24, %v2566_v7  ;;  %v2572_v34 = vsub.f32 %v5307_v14, %v2566_v7  ;;  %v4331_v14 = vld [vmem:[%s5677_s3] sm:$0xff]  }
0x203b   : > { %4072 = vmatpush3.bf16.msra.mxu1 %v4331_v14 }
0x203c   : > { %v2573_v35 = vsub.f32 %v5304_v30, %v2569_v19  ;;  %v2574_v29 = vmul.f32 %v2567_v4, %v2567_v4  ;;  %v2578_v36 = vmul.f32 %v2572_v34, %v2572_v34  ;;  %v4332_v30 = vld [vmem:[%s5677_s3 + $0x8] sm:$0xff]   ;;  %4073 = vmatprep.subr.bf16.mxu1 %v4547_v21 }
0x203e   : > { %v2575_v23 = vsel %vm326_vm3, %v2574_v29, 0.0  ;;  %v2579_v13 = vmul.f32 %v2573_v35, %v2573_v35  ;;  %v4341_v29 = vld [vmem:[%s5675_s1 + $0x10] sm:$0xff]  }
0x203f   : > { %2576 = vadd.xlane.f32.xlu1 %v2575_v23  ;;  %4074 = vmatpush3.bf16.msra.mxu1 %v4332_v30 }
0x2040   : > { %v2582_v37 = vrot.slane %v2579_v13, 7  ;;  %4075 = vmatprep.subr.bf16.mxu1 %v4547_v21 }
0x2042   : > { %v2583_v38 = vsel %vm899_vm11, %v2582_v37, %v2578_v36 }
0x2043   : > { %v2585_v39 = vsel %vm330_vm4, %v2583_v38, 0.0  ;;  %4076 = vmatpush3.bf16.msra.mxu1 %v4333_v28 }
0x2044   : > { %2586 = vadd.xlane.f32.xlu0 %v2585_v39  ;;  %4077 = vmatprep.subr.bf16.mxu1 %v4547_v21 }
0x2050   : > { %2608 = vrot.lane.b32.xlu1 %v5201_v18, %s5699_s21  ;;  %v4334_v18 = vld [vmem:[%s5677_s3 + $0x18] sm:$0xff]  }
0x2051   : > { %4078 = vmatpush3.bf16.msra.mxu1 %v4334_v18 }
0x2052   : > { %4079 = vmatprep.subr.bf16.mxu1 %v4547_v21 }
0x2055   : > { %4080 = vmatpush3.bf16.msra.mxu1 %v4335_v40 }
0x2056   : > { %4081 = vmatprep.subr.bf16.mxu1 %v4547_v21 }
0x2059   : > { %4082 = vmatpush3.bf16.msra.mxu1 %v4336_v47  ;;  %v4347_v47 = vld [vmem:[%s5674_s0 + $0x50] sm:$0xff]  }
0x205a   : > { %4083 = vmatprep.subr.bf16.mxu1 %v4547_v21 }
0x205d   : > { %4084 = vmatpush3.bf16.msra.mxu1 %v4337_v48  ;;  %v4348_v48 = vld [vmem:[%s5674_s0 + $0x10] sm:$0xff]  }
0x205e   : > { %4085 = vmatprep.subr.bf16.mxu1 %v4547_v21 }
0x2061   : > { %4086 = vmatpush3.bf16.msra.mxu1 %v4338_v49  ;;  %v4349_v49 = vld [vmem:[%s5674_s0 + $0x58] sm:$0xff]  }
0x2062   : > { %4091 = vmatprep.subr.bf16.mxu1 %v4547_v21 }
0x20cc   : > { %v2577_v42 = vpop.xlane.xlu1 %2576 }
0x20d0   : > { %v2609_v60 = vpop.permute.xlu1 %2608 }
0x20d1   : > { %v2587_v43 = vpop.xlane.xlu0 %2586 }
0x20d2   : > { %v2588_v44 = vadd.f32 %v2587_v43, %v2577_v42 }
0x20d4   : > { %v2589_v45 = vmul.f32 0.020833334, %v2588_v44  ;;  %v4343_v44 = vld [vmem:[%s5674_s0 + $0x40] sm:$0xff]  }
0x20d6   : > { %v2590_v46 = vadd.f32 1e-05, %v2589_v45  ;;  %v4344_v45 = vld [vmem:[%s5674_s0] sm:$0xff]  }
0x20d7   : > { %4108 = vmatpush3.bf16.msra.mxu0 %v4344_v45 }
0x20d8   : > { %4427 = vrsqrt.f32 %v2590_v46  ;;  %v4346_v46 = vld [vmem:[%s5674_s0 + $0x8] sm:$0xff]   ;;  %4109 = vmatprep.subr.bf16.mxu0 %v4547_v21 }
0x20db   : > { %4110 = vmatpush3.bf16.msra.mxu0 %v4346_v46 }
0x20dc   : > { %4111 = vmatprep.subr.bf16.mxu0 %v4547_v21 }
0x20df   : > { %4112 = vmatpush3.bf16.msra.mxu0 %v4348_v48  ;;  %v4360_v48 = vld [vmem:[%s5679_s5 + $0x8] sm:$0xff]  }
0x20e0   : > { %4113 = vmatprep.subr.bf16.mxu0 %v4547_v21 }
0x20e2   : > { %v4428_v50 = vpop.eup %4427 }
0x20e3   : > { %v2592_v51 = vmul.f32 %v4428_v50, %v2567_v4  ;;  %v2595_v52 = vrot.slane %v4428_v50, 1  ;;  %v2598_v54 = vmul.f32 %v4428_v50, %v2572_v34 }
0x20e5   : > { %2593 = vst.msk [vmem:[#allocation6] sm:$0x3] %vm326_vm3, %v2592_v51  ;;  %v2599_v53 = vmul.f32 %v2595_v52, %v2573_v35 }
0x20e7   : > { %v2602_v55 = vrot.slane %v2599_v53, 7 }
0x20e9   : > { %v2603_v56 = vsel %vm899_vm11, %v2602_v55, %v2598_v54 }
0x20ea   : > { %2604 = vrot.lane.b32.xlu0 %v2603_v56, %s5697_s13  ;;  %s3348_s13 = sshll.u32 %s4658_s20, 4  ;;  %s5588_s13 = int_to_ptr.vmem [resolvable:$true] %s3348_s13 }
0x20eb   : > { %s4449_s23 = scalar_lea.vmem %s5588_s13, 128  ;;  %p4456_p0 = scmp.lt.s32.totalorder %s5588_s13, %s4454_s18 }
0x20ec   : > { %p4450_p11 = scmp.ne.s32.totalorder %s5588_s13, %s4449_s23  ;;  %p4457_p1 = scmp.lt.s32.totalorder %s4455_s4, %s4449_s23 }
0x20ee   : > { %p4451_p12 = pnand %p4450_p11, %p4642_p5  ;;  %p4458_p2 = por %p4457_p1, %p4456_p0 }
0x20f0   : > { %p4452_p13 = pneg %p4451_p12 }
0x20f2   : > { %p4459_p3 = pnand %p4458_p2, %p4452_p13 }
0x215c   : > { %v2605_v57 = vpop.permute.xlu0 %2604 }
0x215d   : > { %2607 = vst.msk [vmem:[#allocation6] sm:$0x3] %vm357_vm6, %v2605_v57 }
0x215e   : > { %2611 = vst.msk [vmem:[#allocation6] sm:$0x3] %vm363_vm7, %v2609_v60 }
0x2165   : > { %v2612_v61 = vld [vmem:[#allocation6] sm:$0x3] }
0x2166   : > { %v2613_v62 = vpack.c.bf16 %v2612_v61, %v2612_v61 }
0x2168   : > { %4088 = vmatmul.mubr.bf16.vlgmr.msra.gmra.mrb[44].mxu1 %v2613_v62  ;;  %v4350_v62 = vld [vmem:[%s5674_s0 + $0x18] sm:$0xff]  }
0x2169   : > { %4095 = vmatprep.mubr.msk.bf16.mxu1 %vm4548_vm5, %v4547_v21  ;;  %4092 = vmatpush3.bf16.msra.mxu1 %v4339_v25 }
0x216a   : > { %4093 = vmatprep.subr.bf16.mxu1 %v4547_v21  ;;  %4114 = vmatpush3.bf16.msra.mxu0 %v4350_v62 }
0x216b   : > { %4115 = vmatprep.subr.bf16.mxu0 %v4547_v21 }
0x216d   : > { %4094 = vmatpush3.bf16.msra.mxu1 %v4340_v26 }
0x216e   : > { %4099 = vmatprep.subr.bf16.mxu1 %v4547_v21 }
0x223b   : > { %v2712_v63 = vpop.f32.mrb[44].mxu1 }
0x223c   : > { %v2713_v0 = vadd.f32 %v5183_v59, %v2712_v63  ;;  %v4089_v1 = vpop.f32.mrb[45].mxu1  ;;  %v4351_v63 = vld [vmem:[%s5674_s0 + $0x60] sm:$0xff]  }
0x223d   : > { %v2715_v2 = vpop.f32.mrb[46].mxu1  ;;  %v4353_v1 = vld [vmem:[%s5674_s0 + $0x68] sm:$0xff]  }
0x223e   : > { %4429 = vtanh.f32 %v2713_v0  ;;  %v4090_v3 = vpop.f32.mrb[47].mxu1  ;;  %v3571_v41 = vmul.f32 -1.442695, %v2713_v0  ;;  %v4352_v0 = vld [vmem:[%s5674_s0 + $0x20] sm:$0xff]   ;;  %v4354_v2 = vld [vmem:[%s5674_s0 + $0x28] sm:$0xff]  }
0x223f   : > { %4116 = vmatpush3.bf16.msra.mxu0 %v4352_v0  ;;  %v4355_v3 = vld [vmem:[%s5674_s0 + $0x70] sm:$0xff]  }
0x2240   : > { %4431 = vpow2.f32 %v3571_v41  ;;  %4117 = vmatprep.subr.bf16.mxu0 %v4547_v21  ;;  %v4357_v41 = vld [vmem:[%s5674_s0 + $0x78] sm:$0xff]  }
0x2243   : > { %4118 = vmatpush3.bf16.msra.mxu0 %v4354_v2 }
0x2244   : > { %4119 = vmatprep.subr.bf16.mxu0 %v4547_v21 }
0x2248   : > { %v4430_v6 = vpop.eup %4429 }
0x2249   : > { %2727 = vrot.lane.b32.xlu1 %v4430_v6, %s5698_s10  ;;  %v4356_v6 = vld [vmem:[%s5674_s0 + $0x30] sm:$0xff]  }
0x224a   : > { %v4432_v10 = vpop.eup %4431  ;;  %4120 = vmatpush3.bf16.msra.mxu0 %v4356_v6 }
0x224b   : > { %v2721_v11 = vadd.f32 1.0, %v4432_v10  ;;  %4121 = vmatprep.subr.bf16.mxu0 %v4547_v21  ;;  %v4358_v10 = vld [vmem:[%s5674_s0 + $0x38] sm:$0xff]  }
0x224d   : > { %4433 = vrcp.f32 %v2721_v11 }
0x224e   : > { %4122 = vmatpush3.bf16.msra.mxu0 %v4358_v10 }
0x224f   : > { %4147 = vmatprep.subr.bf16.mxu0 %v4547_v21 }
0x2257   : > { %v4434_v12 = vpop.eup %4433 }
0x2258   : > { %v2725_v17 = vmul.f32 %v4434_v12, %v5189_v58 }
0x22bb   : > { %v2728_v15 = vpop.permute.xlu1 %2727 }
0x22bc   : > { %v2730_v16 = vmul.f32 %v4434_v12, %v2728_v15 }
0x22be   : > { %2732 = vrot.lane.b32.xlu0 %v2730_v16, %s5698_s10 }
0x2330   : > { %v2733_v59 = vpop.permute.xlu0 %2732 }
0x2331   : > { %v5420_v8 = vadd.f32 %v2733_v59, %v2725_v17 }
0x2333   : > { %4435 = vtanh.f32 %v5420_v8 }
0x233d   : > { %v4436_v24 = vpop.eup %4435 }
0x233e   : > { %2738 = vrot.lane.b32.xlu1 %v4436_v24, %s5698_s10 }
0x23b0   : > { %v2739_v58 = vpop.permute.xlu1 %2738 }
0x23b1   : > { %v5432_v27 = vmul.f32 %v4434_v12, %v2739_v58 }
0x23b3   : > { %v2742_v31 = vpack.c.bf16 %v5432_v27, %v5432_v27 }
0x23b5   : > { %v2750_v32 = vrot.slane %v2742_v31, %v4735_v5 }
0x23b7   : > { %v2757_v33 = vrot.slane %v2750_v32, %v4735_v5  ;;  %v4342_v5 = vld [vmem:[%s5675_s1 + $0x18] sm:$0xff]  }
0x23b9   : > { %v3572_v7 = vpack.i.b16 %v2757_v33, %v2757_v33  ;;  %v2759_v19 = vunpack.i.h.s16 %v2757_v33 }
0x23bb   : > { %v2772_v4 = vrot.slane %v3572_v7, %v4741_v9  ;;  %v2830_v34 = vpack.i.b16 %v2759_v19, %v2759_v19 }
0x23bd   : > { %2773 = vrot.lane.b32.xlu0 %v2772_v4, %s5700_s26  ;;  %v2834_v35 = vrot.slane %v2830_v34, %v4741_v9 }
0x23bf   : > { %2835 = vrot.lane.b32.xlu1 %v2834_v35, %s5700_s26 }
0x242f   : > { %v2774_v23 = vpop.permute.xlu0 %2773 }
0x2430   : > { %4096 = vmatmul.mubr.msk.bf16.vlgmr.msra.gmra.mrb[48].mxu1 %vm550_vm8, %v2774_v23 }
0x2431   : > { %4100 = vmatpush3.bf16.msra.mxu1 %v4341_v29  ;;  %4103 = vmatprep.mubr.msk.bf16.mxu1 %vm4548_vm5, %v4547_v21  ;;  %v2836_v9 = vpop.permute.xlu1 %2835 }
0x2432   : > { %4101 = vmatprep.subr.bf16.mxu1 %v4547_v21 }
0x2435   : > { %4102 = vmatpush3.bf16.msra.mxu1 %v4342_v5 }
0x2436   : > { %4127 = vmatprep.subr.bf16.mxu1 %v4547_v21 }
0x2438   : > { %4104 = vmatmul.mubr.msk.bf16.vlgmr.msra.gmra.mrb[52].mxu1 %vm550_vm8, %v2836_v9 }
0x2439   : > { %4143 = vmatprep.mubr.msk.bf16.mxu1 %vm4548_vm5, %v4547_v21  ;;  %4128 = vmatpush3.bf16.msra.mxu1 %v4343_v44 }
0x243a   : > { %4129 = vmatprep.subr.bf16.mxu1 %v4547_v21 }
0x2503   : > { %v2824_v13 = vpop.f32.mrb[48].mxu1 }
0x2504   : > { %v2825_v36 = vadd.f32 %v2824_v13, %v4761_v22  ;;  %v4097_v37 = vpop.f32.mrb[49].mxu1 }
0x2505   : > { %v2827_v38 = vpop.f32.mrb[50].mxu1 }
0x2506   : > { %v4098_v39 = vpop.f32.mrb[51].mxu1  ;;  %v2892_v14 = vsel %vm656_vm10, %v2825_v36, -inf }
0x2507   : > { %2893 = vmax.xlane.f32.xlu1 %v2892_v14 }
0x250b   : > { %v2886_v30 = vpop.f32.mrb[52].mxu1 }
0x250c   : > { %v2887_v28 = vadd.f32 %v2886_v30, %v4761_v22  ;;  %v4105_v18 = vpop.f32.mrb[53].mxu1  ;;  %v4345_v22 = vld [vmem:[%s5674_s0 + $0x48] sm:$0xff]  }
0x250d   : > { %v2889_v40 = vpop.f32.mrb[54].mxu1  ;;  %4130 = vmatpush3.bf16.msra.mxu1 %v4345_v22 }
0x250e   : > { %v4106_v42 = vpop.f32.mrb[55].mxu1  ;;  %v2895_v43 = vsel %vm656_vm10, %v2887_v28, -inf  ;;  %4131 = vmatprep.subr.bf16.mxu1 %v4547_v21 }
0x250f   : > { %2896 = vmax.xlane.f32.xlu0 %v2895_v43 }
0x2511   : > { %4132 = vmatpush3.bf16.msra.mxu1 %v4347_v47 }
0x2512   : > { %4133 = vmatprep.subr.bf16.mxu1 %v4547_v21 }
0x2515   : > { %4134 = vmatpush3.bf16.msra.mxu1 %v4349_v49  ;;  %v4361_v49 = vld [vmem:[%s5679_s5 + $0x10] sm:$0xff]  }
0x2516   : > { %4135 = vmatprep.subr.bf16.mxu1 %v4547_v21 }
0x2519   : > { %4136 = vmatpush3.bf16.msra.mxu1 %v4351_v63 }
0x251a   : > { %4137 = vmatprep.subr.bf16.mxu1 %v4547_v21 }
0x251d   : > { %4138 = vmatpush3.bf16.msra.mxu1 %v4353_v1 }
0x251e   : > { %4139 = vmatprep.subr.bf16.mxu1 %v4547_v21 }
0x2521   : > { %4140 = vmatpush3.bf16.msra.mxu1 %v4355_v3 }
0x2522   : > { %4141 = vmatprep.subr.bf16.mxu1 %v4547_v21 }
0x2525   : > { %4142 = vmatpush3.bf16.msra.mxu1 %v4357_v41 }
0x2594   : > { %v2894_v50 = vpop.xlane.xlu1 %2893 }
0x2595   : > { %v2898_v51 = vsub.f32 %v2825_v36, %v2894_v50  ;;  %v4362_v50 = vld [vmem:[%s5679_s5 + $0x18] sm:$0xff]  }
0x2597   : > { %v2900_v54 = vmul.f32 1.442695, %v2898_v51 }
0x259c   : > { %v2897_v52 = vpop.xlane.xlu0 %2896 }
0x259d   : > { %v2899_v53 = vsub.f32 %v2887_v28, %v2897_v52 }
0x259f   : > { %v2902_v55 = vmul.f32 1.442695, %v2899_v53 }
0x25a1   : > { %4437 = vpow2.f32 %v2902_v55 }
0x25a2   : > { %4439 = vpow2.f32 %v2900_v54 }
0x25ab   : > { %v4438_v56 = vpop.eup %4437 }
0x25ac   : > { %v2907_v57 = vsel %vm656_vm10, %v4438_v56, 0.0  ;;  %v4440_v60 = vpop.eup %4439 }
0x25ad   : > { %2908 = vadd.xlane.f32.xlu0 %v2907_v57  ;;  %v2904_v61 = vsel %vm656_vm10, %v4440_v60, 0.0  ;;  %v4364_v57 = vld [vmem:[%s5679_s5 + $0x28] sm:$0xff]  }
0x25b1   : > { %2905 = vadd.xlane.f32.xlu0 %v2904_v61  ;;  %v4366_v61 = vld [vmem:[%s5679_s5 + $0x38] sm:$0xff]  }
0x25c7   : > { %3125 = vrot.lane.b32.xlu0 %v5432_v27, %s5700_s26 }
0x263a   : > { %v2909_v11 = vpop.xlane.xlu0 %2908 }
0x263b   : > { %4441 = vrcp.f32 %v2909_v11 }
0x263e   : > { %v2906_v12 = vpop.xlane.xlu0 %2905 }
0x263f   : > { %4443 = vrcp.f32 %v2906_v12 }
0x2642   : > { %v3126_v15 = vpop.permute.xlu0 %3125 }
0x2643   : > { %3307 = vst.msk [vmem:[#allocation4] sm:$0x3] %vm330_vm4, %v3126_v15  ;;  %v3128_v16 = vsel %vm330_vm4, %v3126_v15, 0.0 }
0x2644   : > { %3129 = vadd.xlane.f32.xlu1 %v3128_v16 }
0x2645   : > { %v4442_v17 = vpop.eup %4441 }
0x2646   : > { %v2913_v59 = vmul.f32 %v4442_v17, %v4438_v56  ;;  %v4363_v56 = vld [vmem:[%s5679_s5 + $0x20] sm:$0xff]  }
0x2648   : > { %v2915_v24 = vpack.c.bf16 %v2913_v59, %v2913_v59  ;;  %v3300_v26 = vrot.slane %v2913_v59, 7 }
0x2649   : > { %v4444_v25 = vpop.eup %4443 }
0x264a   : > { %4144 = vmatmul.mubr.bf16.vlgmr.msra.gmra.mrb[56].mxu1 %v2915_v24  ;;  %v2911_v58 = vmul.f32 %v4444_v25, %v4440_v60  ;;  %v4365_v60 = vld [vmem:[%s5679_s5 + $0x30] sm:$0xff]  }
0x264c   : > { %v2914_v31 = vpack.c.bf16 %v2911_v58, %v2911_v58  ;;  %v3301_v32 = vsel %vm899_vm11, %v3300_v26, %v2911_v58 }
0x264d   : > { %3604 = vst [vmem:[%s4658_s20 + $0x6] sm:$0x3] %v3301_v32 }
0x264e   : > { %4124 = vmatmul.mubr.bf16.vlgmr.msra.gmra.mrb[28].mxu0 %v2914_v31 }
0x264f   : > { %4163 = vmatprep.mubr.msk.bf16.mxu0 %vm4548_vm5, %v4547_v21 }
0x26d1   : > { %v3130_v36 = vpop.xlane.xlu1 %3129 }
0x271d   : > { %v3118_v33 = vpop.f32.mrb[56].mxu1 }
0x271e   : > { %v4145_v7 = vpop.f32.mrb[57].mxu1  ;;  %v3133_v4 = vrot.slane %v3118_v33, 7 }
0x271f   : > { %v3121_v19 = vpop.f32.mrb[58].mxu1 }
0x2720   : > { %v4146_v34 = vpop.f32.mrb[59].mxu1 }
0x2721   : > { %v3030_v35 = vpop.f32.mrb[28].mxu0 }
0x2722   : > { %v4125_v29 = vpop.f32.mrb[29].mxu0  ;;  %v3134_v23 = vsel %vm899_vm11, %v3133_v4, %v3030_v35 }
0x2723   : > { %v3033_v5 = vpop.f32.mrb[30].mxu0  ;;  %v3136_v9 = vsel %vm330_vm4, %v3134_v23, 0.0  ;;  %3306 = vst.msk [vmem:[#allocation3] sm:$0x3] %vm330_vm4, %v3134_v23 }
0x2724   : > { %v4126_v13 = vpop.f32.mrb[31].mxu0  ;;  %3137 = vadd.xlane.f32.xlu1 %v3136_v9 }
0x27b1   : > { %v3138_v37 = vpop.xlane.xlu1 %3137 }
0x27b2   : > { %v3139_v38 = vadd.f32 %v3138_v37, %v3130_v36 }
0x27b4   : > { %v3140_v39 = vmul.f32 0.015625, %v3139_v38 }
0x27b6   : > { %v3141_v14 = vsub.f32 %v5432_v27, %v3140_v39  ;;  %v3143_v28 = vrot.slane %v3140_v39, 1  ;;  %v3146_v42 = vsub.f32 %v3030_v35, %v3140_v39  ;;  %v4359_v27 = vld [vmem:[%s5679_s5] sm:$0xff]  }
0x27b7   : > { %4148 = vmatpush3.bf16.msra.mxu0 %v4359_v27 }
0x27b8   : > { %v3148_v30 = vmul.f32 %v3141_v14, %v3141_v14  ;;  %v3147_v18 = vsub.f32 %v3118_v33, %v3143_v28  ;;  %v3156_v44 = vmul.f32 %v3146_v42, %v3146_v42  ;;  %4149 = vmatprep.subr.bf16.mxu0 %v4547_v21 }
0x27ba   : > { %3150 = vrot.lane.b32.xlu1 %v3148_v30, %s5700_s26  ;;  %v3157_v40 = vmul.f32 %v3147_v18, %v3147_v18 }
0x27bb   : > { %4150 = vmatpush3.bf16.msra.mxu0 %v4360_v48 }
0x27bc   : > { %v3160_v43 = vrot.slane %v3157_v40, 7  ;;  %4151 = vmatprep.subr.bf16.mxu0 %v4547_v21 }
0x27be   : > { %v3161_v45 = vsel %vm899_vm11, %v3160_v43, %v3156_v44 }
0x27bf   : > { %v3163_v22 = vsel %vm330_vm4, %v3161_v45, 0.0  ;;  %4152 = vmatpush3.bf16.msra.mxu0 %v4361_v49 }
0x27c0   : > { %4153 = vmatprep.subr.bf16.mxu0 %v4547_v21 }
0x27c3   : > { %4154 = vmatpush3.bf16.msra.mxu0 %v4362_v50 }
0x27c4   : > { %4155 = vmatprep.subr.bf16.mxu0 %v4547_v21 }
0x27c7   : > { %4156 = vmatpush3.bf16.msra.mxu0 %v4363_v56 }
0x27c8   : > { %4157 = vmatprep.subr.bf16.mxu0 %v4547_v21 }
0x27cb   : > { %4158 = vmatpush3.bf16.msra.mxu0 %v4364_v57 }
0x27cc   : > { %4159 = vmatprep.subr.bf16.mxu0 %v4547_v21 }
0x27cf   : > { %4160 = vmatpush3.bf16.msra.mxu0 %v4365_v60 }
0x27d0   : > { %4161 = vmatprep.subr.bf16.mxu0 %v4547_v21 }
0x27d3   : > { %4162 = vmatpush3.bf16.msra.mxu0 %v4366_v61 }
0x27de   : > { %3164 = vadd.xlane.f32.xlu1 %v3163_v22 }
0x282c   : > { %v3151_v46 = vpop.permute.xlu1 %3150 }
0x282d   : > { %v3153_v47 = vsel %vm330_vm4, %v3151_v46, 0.0 }
0x282e   : > { %3154 = vadd.xlane.f32.xlu0 %v3153_v47 }
0x286b   : > { %v3165_v51 = vpop.xlane.xlu1 %3164 }
0x28bb   : > { %v3155_v52 = vpop.xlane.xlu0 %3154 }
0x28bc   : > { %v3166_v53 = vadd.f32 %v3165_v51, %v3155_v52 }
0x28be   : > { %v3167_v54 = vmul.f32 0.015625, %v3166_v53 }
0x28c0   : > { %v3168_v55 = vadd.f32 1e-05, %v3167_v54 }
0x28c2   : > { %4445 = vrsqrt.f32 %v3168_v55 }
0x28cc   : > { %v4446_v62 = vpop.eup %4445 }
0x28cd   : > { %v3170_v63 = vmul.f32 %v4446_v62, %v3141_v14  ;;  %v3177_v0 = vrot.slane %v4446_v62, 1  ;;  %v3180_v2 = vmul.f32 %v4446_v62, %v3146_v42 }
0x28cf   : > { %3172 = vrot.lane.b32.xlu0 %v3170_v63, %s5700_s26  ;;  %v3181_v1 = vmul.f32 %v3177_v0, %v3147_v18  ;;  %s3613_s26 = sshll.u32 %s4625_s9, 7 }
0x28d0   : > { %s5585_s21 = scalar_lea.hbm %s5682_s8, %s3613_s26 }
0x28d1   : > { %v3184_v3 = vrot.slane %v3181_v1, 7 }
0x28d3   : > { %3309 = vrot.lane.b32.xlu0 %v5420_v8, %s4555_s22  ;;  %v3185_v6 = vsel %vm899_vm11, %v3184_v3, %v3180_v2 }
0x28d4   : > { %3186 = vrot.lane.b32.xlu1 %v3185_v6, %s5698_s10 }
0x2941   : > { %v3173_v21 = vpop.permute.xlu0 %3172 }
0x2942   : > { %3175 = vst.msk [vmem:[#allocation7] sm:$0x3] %vm330_vm4, %v3173_v21 }
0x2945   : > { %v3310_v41 = vpop.permute.xlu0 %3309 }
0x2946   : > { %3312 = vst.msk [vmem:[#allocation5] sm:$0x3] %vm330_vm4, %v3310_v41  ;;  %v3187_v10 = vpop.permute.xlu1 %3186 }
0x2947   : > { %3189 = vst.msk [vmem:[#allocation7] sm:$0x3] %vm955_vm12, %v3187_v10 }
0x294e   : > { %v3190_v11 = vld [vmem:[#allocation7] sm:$0x3] }
0x294f   : > { %v3191_v12 = vpack.c.bf16 %v3190_v11, %v3190_v11 }
0x2951   : > { %4164 = vmatmul.mubr.bf16.vlgmr.msra.gmra.mrb[32].mxu0 %v3191_v12 }
0x2952   : > { %4462 = shalt.err (!%p4459_p3)
}
0x2953   : > { %s4463_s20 = scalar_lea.hbm %s5585_s21, 128  ;;  %s4467_s2 = scalar_lea.hbm %s5682_s8, 256 }
0x2954   : > { %p4464_p4 = scmp.ne.s32.totalorder %s5585_s21, %s4463_s20  ;;  %p4468_p9 = scmp.lt.u32.totalorder %s5585_s21, %s5682_s8 }
0x2955   : > { %p4469_p10 = scmp.lt.u32.totalorder %s4467_s2, %s4463_s20  ;;  %p4471_p12 = scmp.lt.u32.totalorder %s4463_s20, %s5585_s21 }
0x2956   : > { %p4465_p7 = pnand %p4464_p4, %p4642_p5 }
0x2957   : > { %p4470_p11 = por %p4469_p10, %p4468_p9 }
0x2958   : > { %p4466_p8 = pneg %p4465_p7 }
0x2959   : > { %p4472_p13 = por %p4471_p12, %p4470_p11 }
0x295b   : > { %p4473_p0 = pnand %p4472_p13, %p4466_p8 }
0x295d   : > { %4476 = shalt.err (!%p4473_p0)
}
0x295e   : > { %s4557_s23 = smov 2   ;;  %s3332_s4 = sshll.u32 %s4656_s19, 4  ;;  %s5626_s4 = int_to_ptr.vmem [resolvable:$true] %s3332_s4 }
0x295f   : > { %4168 = dma.vmem_to_hbm [thread:$0]  (%p4642_p5), %s5588_s13, 128, %s5585_s21, %s3319_s12, %s5698_s10, %s5698_s10, %s4557_s23  }
0x2960   : > { %s5624_s24 = scalar_lea.hbm %s5681_s7, %s3613_s26  ;;  %s3314_s21 = scalar_lea.sflag [#allocation9], %s4653_s17 }
0x2961   : > { %s4477_s13 = scalar_lea.vmem %s5626_s4, 128  ;;  %s4558_s9 = smov [#allocation8]  }
0x2962   : > { %p4478_p1 = scmp.ne.s32.totalorder %s5626_s4, %s4477_s13  ;;  %s4481_s12 = sshll.u32 %s4558_s9, 4  ;;  %s4482_s12 = int_to_ptr.vmem [resolvable:$false] %s4481_s12 }
0x2963   : > { %s4483_s26 = scalar_lea.vmem %s4482_s12, 256  ;;  %p4484_p4 = scmp.lt.s32.totalorder %s5626_s4, %s4482_s12 }
0x2964   : > { %p4479_p2 = pnand %p4478_p1, %p4642_p5  ;;  %p4485_p7 = scmp.lt.s32.totalorder %s4483_s26, %s4477_s13 }
0x2966   : > { %p4480_p3 = pneg %p4479_p2  ;;  %p4486_p8 = por %p4485_p7, %p4484_p4 }
0x2968   : > { %p4487_p9 = pnand %p4486_p8, %p4480_p3 }
0x2a24   : > { %v3290_v8 = vpop.f32.mrb[32].mxu0 }
0x2a25   : > { %v3291_v15 = vadd.f32 %v5364_v20, %v3290_v8  ;;  %v4165_v16 = vpop.f32.mrb[33].mxu0 }
0x2a26   : > { %v3293_v17 = vpop.f32.mrb[34].mxu0 }
0x2a27   : > { %3603 = vst [vmem:[%s4656_s19 + $0x6] sm:$0x3] %v3291_v15  ;;  %3305 = vst.msk [vmem:[#allocation2] sm:$0x3] %vm326_vm3, %v3291_v15  ;;  %v4166_v59 = vpop.f32.mrb[35].mxu0 }
0x2a28   : > { %4490 = shalt.err (!%p4487_p9)
}
0x2a29   : > { %s4491_s19 = scalar_lea.hbm %s5624_s24, 128  ;;  %s4495_s18 = scalar_lea.hbm %s5681_s7, 256 }
0x2a2a   : > { %p4492_p10 = scmp.ne.s32.totalorder %s5624_s24, %s4491_s19  ;;  %p4496_p13 = scmp.lt.u32.totalorder %s5624_s24, %s5681_s7 }
0x2a2b   : > { %p4497_p0 = scmp.lt.u32.totalorder %s4495_s18, %s4491_s19  ;;  %p4499_p2 = scmp.lt.u32.totalorder %s4491_s19, %s5624_s24 }
0x2a2c   : > { %p4493_p11 = pnand %p4492_p10, %p4642_p5 }
0x2a2d   : > { %p4498_p1 = por %p4497_p0, %p4496_p13 }
0x2a2e   : > { %p4494_p12 = pneg %p4493_p11 }
0x2a2f   : > { %p4500_p3 = por %p4499_p2, %p4498_p1 }
0x2a31   : > { %p4501_p4 = pnand %p4500_p3, %p4494_p12 }
0x2a33   : > { %4504 = shalt.err (!%p4501_p4)
}
0x2a34   : > { %4167 = dma.vmem_to_hbm [thread:$0]  (%p4642_p5), %s5626_s4, 128, %s5624_s24, %s3314_s21, %s5698_s10, %s5698_s10, %s4557_s23  }
0x2a35 PF: > { %p4178_p7 = scmp.ge.s32.totalorder %s4543_s30, 2  ;;  %s3363_s13 = sand.u32 1, %s4531_s27  }
0x2a36   : > { %s3364_s9 = scalar_lea.sflag [#allocation9], %s3363_s13 }
0x2a37   : > { %p4172_p8 = pnand %p4178_p7, %p4646_p6 }
0x2a39   : > { %4522 = dma.done.wait (!%p4172_p8), %s3364_s9, 128  }
0x2a3a   : > { %4524 = vsyncadd (!%p4172_p8), %s3364_s9, 4294967168  ;;  %s3373_s15 = scalar_lea.sflag [#allocation11], %s3363_s13 }
0x2a3b   : > { %4526 = dma.done.wait (!%p4172_p8), %s3373_s15, 128  }
0x2a3c   : > { %4528 = vsyncadd (!%p4172_p8), %s3373_s15, 4294967168  ;;  %p22_p5 = scmp.ge.s32.totalorder %s4629_s11, 4   ;;  %s5701_s27 = smov %s4535_s28 }
0x2a3d   : > { %s5702_s28 = smov %s4539_s29  ;;  %s5703_s29 = smov %s4640_s14 }
0x2a3e   : > { %s5704_s30 = smov %s4629_s11  ;;  %24 = sbr.rel (!%p22_p5) target bundleno = 8 (0x8), region = 107 }
0x2a45   :  { %3378 = vsyncpa [#allocation9], 1 }
0x2a46   :  { %3380 = vsyncpa [#allocation9 + $0x1], 1 }
0x2a47   :  { %3381 = vsyncpa [#allocation11], 1 }
0x2a48   :  { %3383 = vsyncpa [#allocation11 + $0x1], 1 }

</bundles_post_ra>
